<compile_context>
chip_gen: v7x
topology: tpu7x:2x2x1
jax: 0.10.0
libtpu: 0.0.40
codegen_flags: <defaults>
</compile_context>

<pallas_src>
import math
import functools

import numpy as np
import jax
import jax.numpy as jnp
from jax.experimental import pallas as pl
from jax.experimental.pallas import tpu as pltpu


# ---------------------------------------------------------------------------
# Fused Pallas kernel: MLP1 -> DSVF filter bank (+overlap-add) -> MLP2
# ---------------------------------------------------------------------------
def _fused_kernel(x_ref, wp_ref, bp_ref, kbig_ref, o_ref, *, n_glu1, n_glu2, n, T, BB):
    """One grid step = BB batch elements (BB*T time samples).

    x_ref:    (BB*T, 1)      f32 input samples
    wp_ref:   (L, 128, 128)  bf16 zero-padded Linear weights (split GLU halves + out layers)
    bp_ref:   (L, 128)       f32 zero-padded biases
    kbig_ref: (T, n*T)       bf16 folded DSVF block-FFT + overlap-add operator
    o_ref:    (T, BB)        f32 output; column b = batch element b of this block
    """
    f32 = jnp.float32
    bf16 = jnp.bfloat16
    x = x_ref[...]                                                    # (BB*T, 1)
    idx = 0

    # ---- MLP1 ---------------------------------------------------------------
    # First Linear(1, 2*h0)+GLU: K=1 contraction -> VPU broadcast, not MXU.
    a = x * wp_ref[idx, 0:1, :].astype(f32) + bp_ref[idx:idx + 1, :]  # (BB*T, 128)
    g = x * wp_ref[idx + 1, 0:1, :].astype(f32) + bp_ref[idx + 1:idx + 2, :]
    h = a * jax.nn.sigmoid(g)                                         # padded cols stay 0
    idx += 2
    for _ in range(n_glu1 - 1):
        hb = h.astype(bf16)
        a = jnp.dot(hb, wp_ref[idx], preferred_element_type=f32) + bp_ref[idx:idx + 1, :]
        g = jnp.dot(hb, wp_ref[idx + 1], preferred_element_type=f32) + bp_ref[idx + 1:idx + 2, :]
        h = a * jax.nn.sigmoid(g)
        idx += 2
    hb = h.astype(bf16)
    z = jnp.dot(hb, wp_ref[idx], preferred_element_type=f32) + bp_ref[idx:idx + 1, :]
    idx += 1                                                          # (BB*T, 128), cols [0:n] live

    # ---- DSVF bank + MLP2 first GLU layer folded into the Kbig matmuls -------
    #   a_b = Kbig @ [stack_i outer(z_b[:, i], Wa2[i, :])]   (== (filters(z_b)) @ Wa2)
    ia, ib = idx, idx + 1
    kb = kbig_ref[...]                                                # (T, n*T) bf16, resident
    wa_rows = [wp_ref[ia, i:i + 1, :].astype(f32) for i in range(n)]  # hoisted row loads
    wb_rows = [wp_ref[ib, i:i + 1, :].astype(f32) for i in range(n)]
    ba2 = bp_ref[ia:ia + 1, :]
    bb2 = bp_ref[ib:ib + 1, :]
    h_parts = []
    for b in range(BB):                                               # static unroll over block
        zb = z[b * T:(b + 1) * T, :]                                  # (T, 128) sublane slice
        pa = jnp.concatenate([zb[:, i:i + 1] * wa_rows[i] for i in range(n)], axis=0)
        pb = jnp.concatenate([zb[:, i:i + 1] * wb_rows[i] for i in range(n)], axis=0)
        a = jnp.dot(kb, pa.astype(bf16), preferred_element_type=f32) + ba2   # (T, 128)
        g = jnp.dot(kb, pb.astype(bf16), preferred_element_type=f32) + bb2
        h_parts.append(a * jax.nn.sigmoid(g))
    h = jnp.concatenate(h_parts, axis=0)                              # (BB*T, 128)
    idx += 2

    # ---- remaining MLP2 layers -----------------------------------------------
    for _ in range(n_glu2 - 1):
        hb = h.astype(bf16)
        a = jnp.dot(hb, wp_ref[idx], preferred_element_type=f32) + bp_ref[idx:idx + 1, :]
        g = jnp.dot(hb, wp_ref[idx + 1], preferred_element_type=f32) + bp_ref[idx + 1:idx + 2, :]
        h = a * jax.nn.sigmoid(g)
        idx += 2
    hb = h.astype(bf16)
    o_wide = jnp.dot(hb, wp_ref[idx], preferred_element_type=f32) + bp_ref[idx:idx + 1, :]
    # Pack the BB scalar output columns into one lane-dense (T, BB) store.
    o_ref[...] = jnp.concatenate(
        [o_wide[b * T:(b + 1) * T, 0:1] for b in range(BB)], axis=1)


def fused_forward(x2d, wpack, bpack, kbig, *, B, T, n, BB, n_glu1, n_glu2):
    assert B % BB == 0, "batch must be divisible by the per-step block size BB"
    G = B // BB
    L = wpack.shape[0]
    kernel = functools.partial(_fused_kernel, n_glu1=n_glu1, n_glu2=n_glu2, n=n, T=T, BB=BB)
    flops = int(2 * B * T * 128 * 128 * L + 4 * B * T * (n * T) * 128)
    transcendentals = int(B * T * 128 * (n_glu1 + n_glu2))
    bytes_accessed = int(4 * x2d.size + 2 * wpack.size + 4 * bpack.size
                         + 2 * kbig.size + 4 * B * T)
    return pl.pallas_call(
        kernel,
        grid=(G,),
        in_specs=[
            pl.BlockSpec((BB * T, 1), lambda s: (s, 0)),           # per-step input rows
            pl.BlockSpec((L, 128, 128), lambda s: (0, 0, 0)),      # packed weights (resident)
            pl.BlockSpec((L, 128), lambda s: (0, 0)),              # packed biases  (resident)
            pl.BlockSpec((T, n * T), lambda s: (0, 0)),            # folded filter operator
        ],
        out_specs=pl.BlockSpec((T, BB), lambda s: (s, 0)),
        out_shape=jax.ShapeDtypeStruct((G * T, BB), jnp.float32),
        compiler_params=pltpu.CompilerParams(
            dimension_semantics=("parallel",),
            vmem_limit_bytes=16 * 1024 * 1024),
        cost_estimate=pl.CostEstimate(flops=flops, transcendentals=transcendentals,
                                      bytes_accessed=bytes_accessed),
    )(x2d, wpack, bpack, kbig)


# ---------------------------------------------------------------------------
# Host-side construction: DSVF block-FFT + overlap-add folded into (T, n*T)
# (numpy float64 throughout, cast down at the end)
# ---------------------------------------------------------------------------
def build_filter_operator(g_p, R_p, m_hp, m_bp, m_lp, N, T):
    nfft = 2 ** math.ceil(math.log2(2 * N - 1))
    F = nfft // 2 + 1
    n = g_p.shape[0]

    g = np.tan(np.pi * (1.0 / (1.0 + np.exp(-g_p))) / 2.0)
    R = np.log1p(np.exp(R_p))                                   # softplus
    g2 = g * g
    b = np.stack([g2 * m_lp + g * m_bp + m_hp,
                  2 * g2 * m_lp - 2 * m_hp,
                  g2 * m_lp - g * m_bp + m_hp], axis=-1)        # (n, 3)
    a = np.stack([g2 + 2 * R * g + 1,
                  2 * g2 - 2,
                  g2 - 2 * R * g + 1], axis=-1)                 # (n, 3)
    H = np.fft.rfft(b, n=nfft, axis=-1) / np.fft.rfft(a, n=nfft, axis=-1)   # (n, F) complex128

    # Exact DFT / inverse-DFT tables: fold irfft(rfft(seg) * H)[:2N] into W_i (N, 2N).
    t = np.arange(N)[:, None]
    f = np.arange(F)[None, :]
    C = np.cos(2.0 * np.pi * t * f / nfft)                      # Re of forward rDFT
    D = -np.sin(2.0 * np.pi * t * f / nfft)                     # Im of forward rDFT
    fp = np.arange(F)[:, None]
    tp = np.arange(2 * N)[None, :]
    wgt = np.where((np.arange(F) == 0) | (np.arange(F) == nfft // 2), 1.0, 2.0)[:, None]
    ICt = wgt * np.cos(2.0 * np.pi * fp * tp / nfft) / nfft     # (F, 2N)
    ISt = -wgt * np.sin(2.0 * np.pi * fp * tp / nfft) / nfft    # (F, 2N)

    Hre, Him = H.real, H.imag
    A = C[None] * Hre[:, None, :] - D[None] * Him[:, None, :]
    Bm = C[None] * Him[:, None, :] + D[None] * Hre[:, None, :]
    Wblk = A @ ICt + Bm @ ISt                                   # (n, N, 2N)

    # Per-filter (T, T) operator with the overlap-add shift baked in
    # (block j gets block j's first part + block j-1's tail; matches torch training branch).
    nb = T // N
    K = np.zeros((n, T, T))
    for i in range(n):
        Wf = Wblk[i, :, :N].T            # [out_t, in_t']
        Wo = Wblk[i, :, N:2 * N].T
        for j in range(nb):
            K[i, j * N:(j + 1) * N, j * N:(j + 1) * N] = Wf
            if j > 0:
                K[i, j * N:(j + 1) * N, (j - 1) * N:j * N] = Wo
    Kbig = np.concatenate([K[i] for i in range(n)], axis=1)     # (T, n*T)
    return Kbig.astype(np.float32), H, nfft


# ---------------------------------------------------------------------------
# Parameters (deterministic synthetic, bf16-representable weights) + packing
# ---------------------------------------------------------------------------
def build_params(key, layers, n, N, T):
    assert T % N == 0 and T % 8 == 0
    l1 = list(layers)
    l2 = list(reversed(l1))
    glu1_dims = [(1, l1[0])] + [(l1[i - 1], l1[i]) for i in range(1, len(l1))]
    glu2_dims = [(n, l2[0])] + [(l2[i - 1], l2[i]) for i in range(1, len(l2))]

    def q(w):  # round to bf16, return the exact f32 upcast (shared by kernel & reference)
        return np.asarray(jnp.asarray(w, dtype=jnp.bfloat16).astype(jnp.float32))

    def make_glu_stack(key, dims):
        glu = []
        for (din, dout) in dims:
            key, k1, k2, k3, k4 = jax.random.split(key, 5)
            Wa = q(jax.random.normal(k1, (din, dout), jnp.float32) / np.sqrt(din))
            ba = np.asarray(0.1 * jax.random.normal(k2, (1, dout), jnp.float32))
            Wb = q(jax.random.normal(k3, (din, dout), jnp.float32) / np.sqrt(din))
            bb = np.asarray(0.1 * jax.random.normal(k4, (1, dout), jnp.float32))
            glu.append((Wa, ba, Wb, bb))
        return key, glu

    def make_lin(key, din, dout):
        key, kw, kb = jax.random.split(key, 3)
        W = q(jax.random.normal(kw, (din, dout), jnp.float32) / np.sqrt(din))
        b = np.asarray(0.1 * jax.random.normal(kb, (1, dout), jnp.float32))
        return key, (W, b)

    key, mlp1_glu = make_glu_stack(key, glu1_dims)
    key, mlp1_out = make_lin(key, l1[-1], n)
    key, mlp2_glu = make_glu_stack(key, glu2_dims)
    key, mlp2_out = make_lin(key, l2[-1], 1)

    # Pack all Linear weights/biases into one slab each (order = kernel's visit order).
    specs = []
    for (Wa, ba, Wb, bb) in mlp1_glu:
        specs += [(Wa, ba), (Wb, bb)]
    specs.append(mlp1_out)
    for (Wa, ba, Wb, bb) in mlp2_glu:
        specs += [(Wa, ba), (Wb, bb)]
    specs.append(mlp2_out)
    L = len(specs)
    Wpack = np.zeros((L, 128, 128), np.float32)
    Bpack = np.zeros((L, 128), np.float32)
    for k, (W, b) in enumerate(specs):
        assert W.shape[0] <= 128 and W.shape[1] <= 128
        Wpack[k, :W.shape[0], :W.shape[1]] = W
        Bpack[k, :b.shape[1]] = b[0]

    # DSVF params per filter (from __init__: g=0, R=0, m_*=1) + tiny deterministic
    # per-filter offsets so the n filters differ.
    fidx = np.arange(n, dtype=np.float64)
    g_p = 0.1 * fidx - 0.2
    R_p = 0.05 * fidx
    m_hp = np.ones(n)
    m_bp = 1.0 + 0.05 * fidx
    m_lp = 1.0 - 0.03 * fidx
    Kbig, H, nfft = build_filter_operator(g_p, R_p, m_hp, m_bp, m_lp, N, T)

    return dict(
        mlp1_glu=mlp1_glu, mlp1_out=mlp1_out, mlp2_glu=mlp2_glu, mlp2_out=mlp2_out,
        Wpack=jnp.asarray(Wpack, dtype=jnp.bfloat16),   # exact: weights were bf16-rounded
        Bpack=jnp.asarray(Bpack),
        Kbig=jnp.asarray(Kbig, dtype=jnp.bfloat16),
        H=H, n=n, N=N, T=T, nfft=nfft,
        n_glu1=len(glu1_dims), n_glu2=len(glu2_dims),
    )


# ---------------------------------------------------------------------------
# Model forward (single fused Pallas call) + pure-JAX reference
# ---------------------------------------------------------------------------
def model_forward(x, params, *, BB):
    B, T, _ = x.shape
    assert T == params["T"], "Kbig operator was folded for this specific T"
    out2d = fused_forward(
        x.reshape(B * T, 1), params["Wpack"], params["Bpack"], params["Kbig"],
        B=B, T=T, n=params["n"], BB=BB,
        n_glu1=params["n_glu1"], n_glu2=params["n_glu2"])
    G = B // BB
    # out2d[s*T + t, b] = y[batch s*BB + b, time t]
    return jnp.transpose(out2d.reshape(G, T, BB), (0, 2, 1)).reshape(B, T, 1)


def ref_forward(x, params):
    """Mirrors the torch training-mode forward with real jnp rfft/irfft (f32 activations)."""
    B, T, _ = x.shape
    n, N, nfft = params["n"], params["N"], params["nfft"]
    nb = T // N
    H = jnp.asarray(np.asarray(params["H"], np.complex64))

    h = x.reshape(B * T, 1)
    for Wa, ba, Wb, bb in params["mlp1_glu"]:
        h = (h @ Wa + ba) * jax.nn.sigmoid(h @ Wb + bb)
    Wo, bo = params["mlp1_out"]
    z = (h @ Wo + bo).reshape(B, T, n)

    yts = []
    for i in range(n):
        seg = z[:, :, i].reshape(B, nb, N)
        X = jnp.fft.rfft(seg, n=nfft, axis=-1)
        y = jnp.fft.irfft(X * H[i][None, None, :], n=nfft, axis=-1)
        if nb == 1:
            yt_i = y[:, :, :N].reshape(B, T)
        else:
            first = y[:, :, :N]
            overlap = jnp.pad(y[:, :-1, N:2 * N], ((0, 0), (1, 0), (0, 0)))
            yt_i = (first + overlap).reshape(B, T)
        yts.append(yt_i[..., None])
    h = jnp.concatenate(yts, axis=-1).reshape(B * T, n)

    for Wa, ba, Wb, bb in params["mlp2_glu"]:
        h = (h @ Wa + ba) * jax.nn.sigmoid(h @ Wb + bb)
    Wo2, bo2 = params["mlp2_out"]
    return (h @ Wo2 + bo2).reshape(B, T, 1)


if __name__ == "__main__":
    layers = [8, 16]      # MODEL1(layers=[8,16], n=4, N=16)
    n, N = 4, 16
    B, T = 16, 64         # T multiple of N (and of 8 for the sublane tile)
    BB = 4                # batch elements per grid step -> grid=(4,), M=BB*T=256 per matmul

    key = jax.random.PRNGKey(0)
    kparams, kx = jax.random.split(key)
    params = build_params(kparams, list(layers), n, N, T)
    x = jax.random.normal(kx, (B, T, 1), jnp.float32)

    out = jax.block_until_ready(model_forward(x, params, BB=BB))
    assert out.shape == (B, T, 1)

    ref = jax.block_until_ready(ref_forward(x, params))
    # bf16 MXU operands (Wpack/Kbig + activation casts) move the error to the ~1e-2 scale.
    np.testing.assert_allclose(np.asarray(out), np.asarray(ref), rtol=2.5e-2, atol=2.5e-2)

    print("KERNEL_OK")
</pallas_src>

<mosaic_0001>
module attributes {stable_mosaic.version = 11 : i64} {
  func.func @_fused_kernel(%arg0: i32, %arg1: memref<256x1xf32, #tpu.memory_space<vmem>>, %arg2: memref<10x128x128xbf16, #tpu.memory_space<vmem>>, %arg3: memref<10x128xf32, #tpu.memory_space<vmem>>, %arg4: memref<64x256xbf16, #tpu.memory_space<vmem>>, %arg5: memref<64x4xf32, #tpu.memory_space<vmem>>) attributes {dimension_semantics = [#tpu.dimension_semantics<parallel>], iteration_bounds = array<i64: 4>, scalar_prefetch = 0 : i64, scratch_operands = 0 : i64, tpu.core_type = #tpu.core_type<tc>, window_params = [{transform_indices = @transform_0, window_bounds = array<i64: 256, 1>}, {pipeline_mode = #tpu.pipeline_mode<synchronous>, transform_indices = @transform_1, window_bounds = array<i64: 10, 128, 128>}, {pipeline_mode = #tpu.pipeline_mode<synchronous>, transform_indices = @transform_2, window_bounds = array<i64: 10, 128>}, {pipeline_mode = #tpu.pipeline_mode<synchronous>, transform_indices = @transform_3, window_bounds = array<i64: 64, 256>}, {transform_indices = @transform_4, window_bounds = array<i64: 64, 4>}]} {
    %c0 = arith.constant 0 : index
    %c0_0 = arith.constant 0 : index
    %0 = vector.load %arg1[%c0, %c0_0] : memref<256x1xf32, #tpu.memory_space<vmem>>, vector<256x1xf32>
    %c0_1 = arith.constant 0 : index
    %c0_2 = arith.constant 0 : index
    %c0_3 = arith.constant 0 : index
    %1 = vector.load %arg2[%c0_1, %c0_2, %c0_3] : memref<10x128x128xbf16, #tpu.memory_space<vmem>>, vector<1x1x128xbf16>
    %2 = vector.shape_cast %1 : vector<1x1x128xbf16> to vector<1x128xbf16>
    %3 = arith.extf %2 : vector<1x128xbf16> to vector<1x128xf32>
    %4 = vector.broadcast %0 : vector<256x1xf32> to vector<256x128xf32>
    %5 = vector.broadcast %3 : vector<1x128xf32> to vector<256x128xf32>
    %6 = arith.mulf %4, %5 : vector<256x128xf32>
    %c0_4 = arith.constant 0 : index
    %c0_5 = arith.constant 0 : index
    %7 = vector.load %arg3[%c0_4, %c0_5] : memref<10x128xf32, #tpu.memory_space<vmem>>, vector<1x128xf32>
    %8 = vector.broadcast %7 : vector<1x128xf32> to vector<256x128xf32>
    %9 = arith.addf %6, %8 : vector<256x128xf32>
    %c1 = arith.constant 1 : index
    %c0_6 = arith.constant 0 : index
    %c0_7 = arith.constant 0 : index
    %10 = vector.load %arg2[%c1, %c0_6, %c0_7] : memref<10x128x128xbf16, #tpu.memory_space<vmem>>, vector<1x1x128xbf16>
    %11 = vector.shape_cast %10 : vector<1x1x128xbf16> to vector<1x128xbf16>
    %12 = arith.extf %11 : vector<1x128xbf16> to vector<1x128xf32>
    %13 = vector.broadcast %0 : vector<256x1xf32> to vector<256x128xf32>
    %14 = vector.broadcast %12 : vector<1x128xf32> to vector<256x128xf32>
    %15 = arith.mulf %13, %14 : vector<256x128xf32>
    %c1_8 = arith.constant 1 : index
    %c0_9 = arith.constant 0 : index
    %16 = vector.load %arg3[%c1_8, %c0_9] : memref<10x128xf32, #tpu.memory_space<vmem>>, vector<1x128xf32>
    %17 = vector.broadcast %16 : vector<1x128xf32> to vector<256x128xf32>
    %18 = arith.addf %15, %17 : vector<256x128xf32>
    %19 = arith.negf %18 : vector<256x128xf32>
    %20 = math.exp %19 : vector<256x128xf32>
    %cst = arith.constant 1.000000e+00 : f32
    %21 = vector.broadcast %cst : f32 to vector<256x128xf32>
    %22 = arith.addf %21, %20 : vector<256x128xf32>
    %23 = arith.divf %21, %22 : vector<256x128xf32>
    %24 = arith.mulf %9, %23 : vector<256x128xf32>
    %25 = arith.truncf %24 : vector<256x128xf32> to vector<256x128xbf16>
    %c2 = arith.constant 2 : index
    %c0_10 = arith.constant 0 : index
    %c0_11 = arith.constant 0 : index
    %26 = vector.load %arg2[%c2, %c0_10, %c0_11] : memref<10x128x128xbf16, #tpu.memory_space<vmem>>, vector<1x128x128xbf16>
    %27 = vector.shape_cast %26 : vector<1x128x128xbf16> to vector<128x128xbf16>
    %cst_12 = arith.constant dense<0.000000e+00> : vector<256x128xf32>
    %28 = tpu.matmul %25, %27, %cst_12 {dimension_numbers = #tpu.dot_dimension_numbers<[1], [0], [0], [1], [0, 0, 1, 1], [], []>} : vector<256x128xbf16>, vector<128x128xbf16>, vector<256x128xf32> -> vector<256x128xf32>
    %c2_13 = arith.constant 2 : index
    %c0_14 = arith.constant 0 : index
    %29 = vector.load %arg3[%c2_13, %c0_14] : memref<10x128xf32, #tpu.memory_space<vmem>>, vector<1x128xf32>
    %30 = vector.broadcast %29 : vector<1x128xf32> to vector<256x128xf32>
    %31 = arith.addf %28, %30 : vector<256x128xf32>
    %c3 = arith.constant 3 : index
    %c0_15 = arith.constant 0 : index
    %c0_16 = arith.constant 0 : index
    %32 = vector.load %arg2[%c3, %c0_15, %c0_16] : memref<10x128x128xbf16, #tpu.memory_space<vmem>>, vector<1x128x128xbf16>
    %33 = vector.shape_cast %32 : vector<1x128x128xbf16> to vector<128x128xbf16>
    %cst_17 = arith.constant dense<0.000000e+00> : vector<256x128xf32>
    %34 = tpu.matmul %25, %33, %cst_17 {dimension_numbers = #tpu.dot_dimension_numbers<[1], [0], [0], [1], [0, 0, 1, 1], [], []>} : vector<256x128xbf16>, vector<128x128xbf16>, vector<256x128xf32> -> vector<256x128xf32>
    %c3_18 = arith.constant 3 : index
    %c0_19 = arith.constant 0 : index
    %35 = vector.load %arg3[%c3_18, %c0_19] : memref<10x128xf32, #tpu.memory_space<vmem>>, vector<1x128xf32>
    %36 = vector.broadcast %35 : vector<1x128xf32> to vector<256x128xf32>
    %37 = arith.addf %34, %36 : vector<256x128xf32>
    %38 = arith.negf %37 : vector<256x128xf32>
    %39 = math.exp %38 : vector<256x128xf32>
    %cst_20 = arith.constant 1.000000e+00 : f32
    %40 = vector.broadcast %cst_20 : f32 to vector<256x128xf32>
    %41 = arith.addf %40, %39 : vector<256x128xf32>
    %42 = arith.divf %40, %41 : vector<256x128xf32>
    %43 = arith.mulf %31, %42 : vector<256x128xf32>
    %44 = arith.truncf %43 : vector<256x128xf32> to vector<256x128xbf16>
    %c4 = arith.constant 4 : index
    %c0_21 = arith.constant 0 : index
    %c0_22 = arith.constant 0 : index
    %45 = vector.load %arg2[%c4, %c0_21, %c0_22] : memref<10x128x128xbf16, #tpu.memory_space<vmem>>, vector<1x128x128xbf16>
    %46 = vector.shape_cast %45 : vector<1x128x128xbf16> to vector<128x128xbf16>
    %cst_23 = arith.constant dense<0.000000e+00> : vector<256x128xf32>
    %47 = tpu.matmul %44, %46, %cst_23 {dimension_numbers = #tpu.dot_dimension_numbers<[1], [0], [0], [1], [0, 0, 1, 1], [], []>} : vector<256x128xbf16>, vector<128x128xbf16>, vector<256x128xf32> -> vector<256x128xf32>
    %c4_24 = arith.constant 4 : index
    %c0_25 = arith.constant 0 : index
    %48 = vector.load %arg3[%c4_24, %c0_25] : memref<10x128xf32, #tpu.memory_space<vmem>>, vector<1x128xf32>
    %49 = vector.broadcast %48 : vector<1x128xf32> to vector<256x128xf32>
    %50 = arith.addf %47, %49 : vector<256x128xf32>
    %c0_26 = arith.constant 0 : index
    %c0_27 = arith.constant 0 : index
    %51 = vector.load %arg4[%c0_26, %c0_27] : memref<64x256xbf16, #tpu.memory_space<vmem>>, vector<64x256xbf16>
    %c5 = arith.constant 5 : index
    %c0_28 = arith.constant 0 : index
    %c0_29 = arith.constant 0 : index
    %52 = vector.load %arg2[%c5, %c0_28, %c0_29] : memref<10x128x128xbf16, #tpu.memory_space<vmem>>, vector<1x1x128xbf16>
    %53 = vector.shape_cast %52 : vector<1x1x128xbf16> to vector<1x128xbf16>
    %54 = arith.extf %53 : vector<1x128xbf16> to vector<1x128xf32>
    %c5_30 = arith.constant 5 : index
    %c1_31 = arith.constant 1 : index
    %c0_32 = arith.constant 0 : index
    %55 = vector.load %arg2[%c5_30, %c1_31, %c0_32] : memref<10x128x128xbf16, #tpu.memory_space<vmem>>, vector<1x1x128xbf16>
    %56 = vector.shape_cast %55 : vector<1x1x128xbf16> to vector<1x128xbf16>
    %57 = arith.extf %56 : vector<1x128xbf16> to vector<1x128xf32>
    %c5_33 = arith.constant 5 : index
    %c2_34 = arith.constant 2 : index
    %c0_35 = arith.constant 0 : index
    %58 = vector.load %arg2[%c5_33, %c2_34, %c0_35] : memref<10x128x128xbf16, #tpu.memory_space<vmem>>, vector<1x1x128xbf16>
    %59 = vector.shape_cast %58 : vector<1x1x128xbf16> to vector<1x128xbf16>
    %60 = arith.extf %59 : vector<1x128xbf16> to vector<1x128xf32>
    %c5_36 = arith.constant 5 : index
    %c3_37 = arith.constant 3 : index
    %c0_38 = arith.constant 0 : index
    %61 = vector.load %arg2[%c5_36, %c3_37, %c0_38] : memref<10x128x128xbf16, #tpu.memory_space<vmem>>, vector<1x1x128xbf16>
    %62 = vector.shape_cast %61 : vector<1x1x128xbf16> to vector<1x128xbf16>
    %63 = arith.extf %62 : vector<1x128xbf16> to vector<1x128xf32>
    %c6 = arith.constant 6 : index
    %c0_39 = arith.constant 0 : index
    %c0_40 = arith.constant 0 : index
    %64 = vector.load %arg2[%c6, %c0_39, %c0_40] : memref<10x128x128xbf16, #tpu.memory_space<vmem>>, vector<1x1x128xbf16>
    %65 = vector.shape_cast %64 : vector<1x1x128xbf16> to vector<1x128xbf16>
    %66 = arith.extf %65 : vector<1x128xbf16> to vector<1x128xf32>
    %c6_41 = arith.constant 6 : index
    %c1_42 = arith.constant 1 : index
    %c0_43 = arith.constant 0 : index
    %67 = vector.load %arg2[%c6_41, %c1_42, %c0_43] : memref<10x128x128xbf16, #tpu.memory_space<vmem>>, vector<1x1x128xbf16>
    %68 = vector.shape_cast %67 : vector<1x1x128xbf16> to vector<1x128xbf16>
    %69 = arith.extf %68 : vector<1x128xbf16> to vector<1x128xf32>
    %c6_44 = arith.constant 6 : index
    %c2_45 = arith.constant 2 : index
    %c0_46 = arith.constant 0 : index
    %70 = vector.load %arg2[%c6_44, %c2_45, %c0_46] : memref<10x128x128xbf16, #tpu.memory_space<vmem>>, vector<1x1x128xbf16>
    %71 = vector.shape_cast %70 : vector<1x1x128xbf16> to vector<1x128xbf16>
    %72 = arith.extf %71 : vector<1x128xbf16> to vector<1x128xf32>
    %c6_47 = arith.constant 6 : index
    %c3_48 = arith.constant 3 : index
    %c0_49 = arith.constant 0 : index
    %73 = vector.load %arg2[%c6_47, %c3_48, %c0_49] : memref<10x128x128xbf16, #tpu.memory_space<vmem>>, vector<1x1x128xbf16>
    %74 = vector.shape_cast %73 : vector<1x1x128xbf16> to vector<1x128xbf16>
    %75 = arith.extf %74 : vector<1x128xbf16> to vector<1x128xf32>
    %c5_50 = arith.constant 5 : index
    %c0_51 = arith.constant 0 : index
    %76 = vector.load %arg3[%c5_50, %c0_51] : memref<10x128xf32, #tpu.memory_space<vmem>>, vector<1x128xf32>
    %c6_52 = arith.constant 6 : index
    %c0_53 = arith.constant 0 : index
    %77 = vector.load %arg3[%c6_52, %c0_53] : memref<10x128xf32, #tpu.memory_space<vmem>>, vector<1x128xf32>
    %78 = vector.extract_strided_slice %50 {offsets = [0, 0], sizes = [64, 128], strides = [1, 1]} : vector<256x128xf32> to vector<64x128xf32>
    %79 = vector.extract_strided_slice %78 {offsets = [0, 0], sizes = [64, 1], strides = [1, 1]} : vector<64x128xf32> to vector<64x1xf32>
    %80 = vector.broadcast %79 : vector<64x1xf32> to vector<64x128xf32>
    %81 = vector.broadcast %54 : vector<1x128xf32> to vector<64x128xf32>
    %82 = arith.mulf %80, %81 : vector<64x128xf32>
    %83 = vector.extract_strided_slice %78 {offsets = [0, 1], sizes = [64, 1], strides = [1, 1]} : vector<64x128xf32> to vector<64x1xf32>
    %84 = vector.broadcast %83 : vector<64x1xf32> to vector<64x128xf32>
    %85 = vector.broadcast %57 : vector<1x128xf32> to vector<64x128xf32>
    %86 = arith.mulf %84, %85 : vector<64x128xf32>
    %87 = vector.extract_strided_slice %78 {offsets = [0, 2], sizes = [64, 1], strides = [1, 1]} : vector<64x128xf32> to vector<64x1xf32>
    %88 = vector.broadcast %87 : vector<64x1xf32> to vector<64x128xf32>
    %89 = vector.broadcast %60 : vector<1x128xf32> to vector<64x128xf32>
    %90 = arith.mulf %88, %89 : vector<64x128xf32>
    %91 = vector.extract_strided_slice %78 {offsets = [0, 3], sizes = [64, 1], strides = [1, 1]} : vector<64x128xf32> to vector<64x1xf32>
    %92 = vector.broadcast %91 : vector<64x1xf32> to vector<64x128xf32>
    %93 = vector.broadcast %63 : vector<1x128xf32> to vector<64x128xf32>
    %94 = arith.mulf %92, %93 : vector<64x128xf32>
    %95 = tpu.concatenate %82, %86, %90, %94 in 0 : vector<64x128xf32>, vector<64x128xf32>, vector<64x128xf32>, vector<64x128xf32> -> vector<256x128xf32>
    %96 = vector.extract_strided_slice %78 {offsets = [0, 0], sizes = [64, 1], strides = [1, 1]} : vector<64x128xf32> to vector<64x1xf32>
    %97 = vector.broadcast %96 : vector<64x1xf32> to vector<64x128xf32>
    %98 = vector.broadcast %66 : vector<1x128xf32> to vector<64x128xf32>
    %99 = arith.mulf %97, %98 : vector<64x128xf32>
    %100 = vector.extract_strided_slice %78 {offsets = [0, 1], sizes = [64, 1], strides = [1, 1]} : vector<64x128xf32> to vector<64x1xf32>
    %101 = vector.broadcast %100 : vector<64x1xf32> to vector<64x128xf32>
    %102 = vector.broadcast %69 : vector<1x128xf32> to vector<64x128xf32>
    %103 = arith.mulf %101, %102 : vector<64x128xf32>
    %104 = vector.extract_strided_slice %78 {offsets = [0, 2], sizes = [64, 1], strides = [1, 1]} : vector<64x128xf32> to vector<64x1xf32>
    %105 = vector.broadcast %104 : vector<64x1xf32> to vector<64x128xf32>
    %106 = vector.broadcast %72 : vector<1x128xf32> to vector<64x128xf32>
    %107 = arith.mulf %105, %106 : vector<64x128xf32>
    %108 = vector.extract_strided_slice %78 {offsets = [0, 3], sizes = [64, 1], strides = [1, 1]} : vector<64x128xf32> to vector<64x1xf32>
    %109 = vector.broadcast %108 : vector<64x1xf32> to vector<64x128xf32>
    %110 = vector.broadcast %75 : vector<1x128xf32> to vector<64x128xf32>
    %111 = arith.mulf %109, %110 : vector<64x128xf32>
    %112 = tpu.concatenate %99, %103, %107, %111 in 0 : vector<64x128xf32>, vector<64x128xf32>, vector<64x128xf32>, vector<64x128xf32> -> vector<256x128xf32>
    %113 = arith.truncf %95 : vector<256x128xf32> to vector<256x128xbf16>
    %cst_54 = arith.constant dense<0.000000e+00> : vector<64x128xf32>
    %114 = tpu.matmul %51, %113, %cst_54 {dimension_numbers = #tpu.dot_dimension_numbers<[1], [0], [0], [1], [0, 0, 1, 1], [], []>} : vector<64x256xbf16>, vector<256x128xbf16>, vector<64x128xf32> -> vector<64x128xf32>
    %115 = vector.broadcast %76 : vector<1x128xf32> to vector<64x128xf32>
    %116 = arith.addf %114, %115 : vector<64x128xf32>
    %117 = arith.truncf %112 : vector<256x128xf32> to vector<256x128xbf16>
    %cst_55 = arith.constant dense<0.000000e+00> : vector<64x128xf32>
    %118 = tpu.matmul %51, %117, %cst_55 {dimension_numbers = #tpu.dot_dimension_numbers<[1], [0], [0], [1], [0, 0, 1, 1], [], []>} : vector<64x256xbf16>, vector<256x128xbf16>, vector<64x128xf32> -> vector<64x128xf32>
    %119 = vector.broadcast %77 : vector<1x128xf32> to vector<64x128xf32>
    %120 = arith.addf %118, %119 : vector<64x128xf32>
    %121 = arith.negf %120 : vector<64x128xf32>
    %122 = math.exp %121 : vector<64x128xf32>
    %cst_56 = arith.constant 1.000000e+00 : f32
    %123 = vector.broadcast %cst_56 : f32 to vector<64x128xf32>
    %124 = arith.addf %123, %122 : vector<64x128xf32>
    %125 = arith.divf %123, %124 : vector<64x128xf32>
    %126 = arith.mulf %116, %125 : vector<64x128xf32>
    %127 = vector.extract_strided_slice %50 {offsets = [64, 0], sizes = [64, 128], strides = [1, 1]} : vector<256x128xf32> to vector<64x128xf32>
    %128 = vector.extract_strided_slice %127 {offsets = [0, 0], sizes = [64, 1], strides = [1, 1]} : vector<64x128xf32> to vector<64x1xf32>
    %129 = vector.broadcast %128 : vector<64x1xf32> to vector<64x128xf32>
    %130 = vector.broadcast %54 : vector<1x128xf32> to vector<64x128xf32>
    %131 = arith.mulf %129, %130 : vector<64x128xf32>
    %132 = vector.extract_strided_slice %127 {offsets = [0, 1], sizes = [64, 1], strides = [1, 1]} : vector<64x128xf32> to vector<64x1xf32>
    %133 = vector.broadcast %132 : vector<64x1xf32> to vector<64x128xf32>
    %134 = vector.broadcast %57 : vector<1x128xf32> to vector<64x128xf32>
    %135 = arith.mulf %133, %134 : vector<64x128xf32>
    %136 = vector.extract_strided_slice %127 {offsets = [0, 2], sizes = [64, 1], strides = [1, 1]} : vector<64x128xf32> to vector<64x1xf32>
    %137 = vector.broadcast %136 : vector<64x1xf32> to vector<64x128xf32>
    %138 = vector.broadcast %60 : vector<1x128xf32> to vector<64x128xf32>
    %139 = arith.mulf %137, %138 : vector<64x128xf32>
    %140 = vector.extract_strided_slice %127 {offsets = [0, 3], sizes = [64, 1], strides = [1, 1]} : vector<64x128xf32> to vector<64x1xf32>
    %141 = vector.broadcast %140 : vector<64x1xf32> to vector<64x128xf32>
    %142 = vector.broadcast %63 : vector<1x128xf32> to vector<64x128xf32>
    %143 = arith.mulf %141, %142 : vector<64x128xf32>
    %144 = tpu.concatenate %131, %135, %139, %143 in 0 : vector<64x128xf32>, vector<64x128xf32>, vector<64x128xf32>, vector<64x128xf32> -> vector<256x128xf32>
    %145 = vector.extract_strided_slice %127 {offsets = [0, 0], sizes = [64, 1], strides = [1, 1]} : vector<64x128xf32> to vector<64x1xf32>
    %146 = vector.broadcast %145 : vector<64x1xf32> to vector<64x128xf32>
    %147 = vector.broadcast %66 : vector<1x128xf32> to vector<64x128xf32>
    %148 = arith.mulf %146, %147 : vector<64x128xf32>
    %149 = vector.extract_strided_slice %127 {offsets = [0, 1], sizes = [64, 1], strides = [1, 1]} : vector<64x128xf32> to vector<64x1xf32>
    %150 = vector.broadcast %149 : vector<64x1xf32> to vector<64x128xf32>
    %151 = vector.broadcast %69 : vector<1x128xf32> to vector<64x128xf32>
    %152 = arith.mulf %150, %151 : vector<64x128xf32>
    %153 = vector.extract_strided_slice %127 {offsets = [0, 2], sizes = [64, 1], strides = [1, 1]} : vector<64x128xf32> to vector<64x1xf32>
    %154 = vector.broadcast %153 : vector<64x1xf32> to vector<64x128xf32>
    %155 = vector.broadcast %72 : vector<1x128xf32> to vector<64x128xf32>
    %156 = arith.mulf %154, %155 : vector<64x128xf32>
    %157 = vector.extract_strided_slice %127 {offsets = [0, 3], sizes = [64, 1], strides = [1, 1]} : vector<64x128xf32> to vector<64x1xf32>
    %158 = vector.broadcast %157 : vector<64x1xf32> to vector<64x128xf32>
    %159 = vector.broadcast %75 : vector<1x128xf32> to vector<64x128xf32>
    %160 = arith.mulf %158, %159 : vector<64x128xf32>
    %161 = tpu.concatenate %148, %152, %156, %160 in 0 : vector<64x128xf32>, vector<64x128xf32>, vector<64x128xf32>, vector<64x128xf32> -> vector<256x128xf32>
    %162 = arith.truncf %144 : vector<256x128xf32> to vector<256x128xbf16>
    %cst_57 = arith.constant dense<0.000000e+00> : vector<64x128xf32>
    %163 = tpu.matmul %51, %162, %cst_57 {dimension_numbers = #tpu.dot_dimension_numbers<[1], [0], [0], [1], [0, 0, 1, 1], [], []>} : vector<64x256xbf16>, vector<256x128xbf16>, vector<64x128xf32> -> vector<64x128xf32>
    %164 = vector.broadcast %76 : vector<1x128xf32> to vector<64x128xf32>
    %165 = arith.addf %163, %164 : vector<64x128xf32>
    %166 = arith.truncf %161 : vector<256x128xf32> to vector<256x128xbf16>
    %cst_58 = arith.constant dense<0.000000e+00> : vector<64x128xf32>
    %167 = tpu.matmul %51, %166, %cst_58 {dimension_numbers = #tpu.dot_dimension_numbers<[1], [0], [0], [1], [0, 0, 1, 1], [], []>} : vector<64x256xbf16>, vector<256x128xbf16>, vector<64x128xf32> -> vector<64x128xf32>
    %168 = vector.broadcast %77 : vector<1x128xf32> to vector<64x128xf32>
    %169 = arith.addf %167, %168 : vector<64x128xf32>
    %170 = arith.negf %169 : vector<64x128xf32>
    %171 = math.exp %170 : vector<64x128xf32>
    %cst_59 = arith.constant 1.000000e+00 : f32
    %172 = vector.broadcast %cst_59 : f32 to vector<64x128xf32>
    %173 = arith.addf %172, %171 : vector<64x128xf32>
    %174 = arith.divf %172, %173 : vector<64x128xf32>
    %175 = arith.mulf %165, %174 : vector<64x128xf32>
    %176 = vector.extract_strided_slice %50 {offsets = [128, 0], sizes = [64, 128], strides = [1, 1]} : vector<256x128xf32> to vector<64x128xf32>
    %177 = vector.extract_strided_slice %176 {offsets = [0, 0], sizes = [64, 1], strides = [1, 1]} : vector<64x128xf32> to vector<64x1xf32>
    %178 = vector.broadcast %177 : vector<64x1xf32> to vector<64x128xf32>
    %179 = vector.broadcast %54 : vector<1x128xf32> to vector<64x128xf32>
    %180 = arith.mulf %178, %179 : vector<64x128xf32>
    %181 = vector.extract_strided_slice %176 {offsets = [0, 1], sizes = [64, 1], strides = [1, 1]} : vector<64x128xf32> to vector<64x1xf32>
    %182 = vector.broadcast %181 : vector<64x1xf32> to vector<64x128xf32>
    %183 = vector.broadcast %57 : vector<1x128xf32> to vector<64x128xf32>
    %184 = arith.mulf %182, %183 : vector<64x128xf32>
    %185 = vector.extract_strided_slice %176 {offsets = [0, 2], sizes = [64, 1], strides = [1, 1]} : vector<64x128xf32> to vector<64x1xf32>
    %186 = vector.broadcast %185 : vector<64x1xf32> to vector<64x128xf32>
    %187 = vector.broadcast %60 : vector<1x128xf32> to vector<64x128xf32>
    %188 = arith.mulf %186, %187 : vector<64x128xf32>
    %189 = vector.extract_strided_slice %176 {offsets = [0, 3], sizes = [64, 1], strides = [1, 1]} : vector<64x128xf32> to vector<64x1xf32>
    %190 = vector.broadcast %189 : vector<64x1xf32> to vector<64x128xf32>
    %191 = vector.broadcast %63 : vector<1x128xf32> to vector<64x128xf32>
    %192 = arith.mulf %190, %191 : vector<64x128xf32>
    %193 = tpu.concatenate %180, %184, %188, %192 in 0 : vector<64x128xf32>, vector<64x128xf32>, vector<64x128xf32>, vector<64x128xf32> -> vector<256x128xf32>
    %194 = vector.extract_strided_slice %176 {offsets = [0, 0], sizes = [64, 1], strides = [1, 1]} : vector<64x128xf32> to vector<64x1xf32>
    %195 = vector.broadcast %194 : vector<64x1xf32> to vector<64x128xf32>
    %196 = vector.broadcast %66 : vector<1x128xf32> to vector<64x128xf32>
    %197 = arith.mulf %195, %196 : vector<64x128xf32>
    %198 = vector.extract_strided_slice %176 {offsets = [0, 1], sizes = [64, 1], strides = [1, 1]} : vector<64x128xf32> to vector<64x1xf32>
    %199 = vector.broadcast %198 : vector<64x1xf32> to vector<64x128xf32>
    %200 = vector.broadcast %69 : vector<1x128xf32> to vector<64x128xf32>
    %201 = arith.mulf %199, %200 : vector<64x128xf32>
    %202 = vector.extract_strided_slice %176 {offsets = [0, 2], sizes = [64, 1], strides = [1, 1]} : vector<64x128xf32> to vector<64x1xf32>
    %203 = vector.broadcast %202 : vector<64x1xf32> to vector<64x128xf32>
    %204 = vector.broadcast %72 : vector<1x128xf32> to vector<64x128xf32>
    %205 = arith.mulf %203, %204 : vector<64x128xf32>
    %206 = vector.extract_strided_slice %176 {offsets = [0, 3], sizes = [64, 1], strides = [1, 1]} : vector<64x128xf32> to vector<64x1xf32>
    %207 = vector.broadcast %206 : vector<64x1xf32> to vector<64x128xf32>
    %208 = vector.broadcast %75 : vector<1x128xf32> to vector<64x128xf32>
    %209 = arith.mulf %207, %208 : vector<64x128xf32>
    %210 = tpu.concatenate %197, %201, %205, %209 in 0 : vector<64x128xf32>, vector<64x128xf32>, vector<64x128xf32>, vector<64x128xf32> -> vector<256x128xf32>
    %211 = arith.truncf %193 : vector<256x128xf32> to vector<256x128xbf16>
    %cst_60 = arith.constant dense<0.000000e+00> : vector<64x128xf32>
    %212 = tpu.matmul %51, %211, %cst_60 {dimension_numbers = #tpu.dot_dimension_numbers<[1], [0], [0], [1], [0, 0, 1, 1], [], []>} : vector<64x256xbf16>, vector<256x128xbf16>, vector<64x128xf32> -> vector<64x128xf32>
    %213 = vector.broadcast %76 : vector<1x128xf32> to vector<64x128xf32>
    %214 = arith.addf %212, %213 : vector<64x128xf32>
    %215 = arith.truncf %210 : vector<256x128xf32> to vector<256x128xbf16>
    %cst_61 = arith.constant dense<0.000000e+00> : vector<64x128xf32>
    %216 = tpu.matmul %51, %215, %cst_61 {dimension_numbers = #tpu.dot_dimension_numbers<[1], [0], [0], [1], [0, 0, 1, 1], [], []>} : vector<64x256xbf16>, vector<256x128xbf16>, vector<64x128xf32> -> vector<64x128xf32>
    %217 = vector.broadcast %77 : vector<1x128xf32> to vector<64x128xf32>
    %218 = arith.addf %216, %217 : vector<64x128xf32>
    %219 = arith.negf %218 : vector<64x128xf32>
    %220 = math.exp %219 : vector<64x128xf32>
    %cst_62 = arith.constant 1.000000e+00 : f32
    %221 = vector.broadcast %cst_62 : f32 to vector<64x128xf32>
    %222 = arith.addf %221, %220 : vector<64x128xf32>
    %223 = arith.divf %221, %222 : vector<64x128xf32>
    %224 = arith.mulf %214, %223 : vector<64x128xf32>
    %225 = vector.extract_strided_slice %50 {offsets = [192, 0], sizes = [64, 128], strides = [1, 1]} : vector<256x128xf32> to vector<64x128xf32>
    %226 = vector.extract_strided_slice %225 {offsets = [0, 0], sizes = [64, 1], strides = [1, 1]} : vector<64x128xf32> to vector<64x1xf32>
    %227 = vector.broadcast %226 : vector<64x1xf32> to vector<64x128xf32>
    %228 = vector.broadcast %54 : vector<1x128xf32> to vector<64x128xf32>
    %229 = arith.mulf %227, %228 : vector<64x128xf32>
    %230 = vector.extract_strided_slice %225 {offsets = [0, 1], sizes = [64, 1], strides = [1, 1]} : vector<64x128xf32> to vector<64x1xf32>
    %231 = vector.broadcast %230 : vector<64x1xf32> to vector<64x128xf32>
    %232 = vector.broadcast %57 : vector<1x128xf32> to vector<64x128xf32>
    %233 = arith.mulf %231, %232 : vector<64x128xf32>
    %234 = vector.extract_strided_slice %225 {offsets = [0, 2], sizes = [64, 1], strides = [1, 1]} : vector<64x128xf32> to vector<64x1xf32>
    %235 = vector.broadcast %234 : vector<64x1xf32> to vector<64x128xf32>
    %236 = vector.broadcast %60 : vector<1x128xf32> to vector<64x128xf32>
    %237 = arith.mulf %235, %236 : vector<64x128xf32>
    %238 = vector.extract_strided_slice %225 {offsets = [0, 3], sizes = [64, 1], strides = [1, 1]} : vector<64x128xf32> to vector<64x1xf32>
    %239 = vector.broadcast %238 : vector<64x1xf32> to vector<64x128xf32>
    %240 = vector.broadcast %63 : vector<1x128xf32> to vector<64x128xf32>
    %241 = arith.mulf %239, %240 : vector<64x128xf32>
    %242 = tpu.concatenate %229, %233, %237, %241 in 0 : vector<64x128xf32>, vector<64x128xf32>, vector<64x128xf32>, vector<64x128xf32> -> vector<256x128xf32>
    %243 = vector.extract_strided_slice %225 {offsets = [0, 0], sizes = [64, 1], strides = [1, 1]} : vector<64x128xf32> to vector<64x1xf32>
    %244 = vector.broadcast %243 : vector<64x1xf32> to vector<64x128xf32>
    %245 = vector.broadcast %66 : vector<1x128xf32> to vector<64x128xf32>
    %246 = arith.mulf %244, %245 : vector<64x128xf32>
    %247 = vector.extract_strided_slice %225 {offsets = [0, 1], sizes = [64, 1], strides = [1, 1]} : vector<64x128xf32> to vector<64x1xf32>
    %248 = vector.broadcast %247 : vector<64x1xf32> to vector<64x128xf32>
    %249 = vector.broadcast %69 : vector<1x128xf32> to vector<64x128xf32>
    %250 = arith.mulf %248, %249 : vector<64x128xf32>
    %251 = vector.extract_strided_slice %225 {offsets = [0, 2], sizes = [64, 1], strides = [1, 1]} : vector<64x128xf32> to vector<64x1xf32>
    %252 = vector.broadcast %251 : vector<64x1xf32> to vector<64x128xf32>
    %253 = vector.broadcast %72 : vector<1x128xf32> to vector<64x128xf32>
    %254 = arith.mulf %252, %253 : vector<64x128xf32>
    %255 = vector.extract_strided_slice %225 {offsets = [0, 3], sizes = [64, 1], strides = [1, 1]} : vector<64x128xf32> to vector<64x1xf32>
    %256 = vector.broadcast %255 : vector<64x1xf32> to vector<64x128xf32>
    %257 = vector.broadcast %75 : vector<1x128xf32> to vector<64x128xf32>
    %258 = arith.mulf %256, %257 : vector<64x128xf32>
    %259 = tpu.concatenate %246, %250, %254, %258 in 0 : vector<64x128xf32>, vector<64x128xf32>, vector<64x128xf32>, vector<64x128xf32> -> vector<256x128xf32>
    %260 = arith.truncf %242 : vector<256x128xf32> to vector<256x128xbf16>
    %cst_63 = arith.constant dense<0.000000e+00> : vector<64x128xf32>
    %261 = tpu.matmul %51, %260, %cst_63 {dimension_numbers = #tpu.dot_dimension_numbers<[1], [0], [0], [1], [0, 0, 1, 1], [], []>} : vector<64x256xbf16>, vector<256x128xbf16>, vector<64x128xf32> -> vector<64x128xf32>
    %262 = vector.broadcast %76 : vector<1x128xf32> to vector<64x128xf32>
    %263 = arith.addf %261, %262 : vector<64x128xf32>
    %264 = arith.truncf %259 : vector<256x128xf32> to vector<256x128xbf16>
    %cst_64 = arith.constant dense<0.000000e+00> : vector<64x128xf32>
    %265 = tpu.matmul %51, %264, %cst_64 {dimension_numbers = #tpu.dot_dimension_numbers<[1], [0], [0], [1], [0, 0, 1, 1], [], []>} : vector<64x256xbf16>, vector<256x128xbf16>, vector<64x128xf32> -> vector<64x128xf32>
    %266 = vector.broadcast %77 : vector<1x128xf32> to vector<64x128xf32>
    %267 = arith.addf %265, %266 : vector<64x128xf32>
    %268 = arith.negf %267 : vector<64x128xf32>
    %269 = math.exp %268 : vector<64x128xf32>
    %cst_65 = arith.constant 1.000000e+00 : f32
    %270 = vector.broadcast %cst_65 : f32 to vector<64x128xf32>
    %271 = arith.addf %270, %269 : vector<64x128xf32>
    %272 = arith.divf %270, %271 : vector<64x128xf32>
    %273 = arith.mulf %263, %272 : vector<64x128xf32>
    %274 = tpu.concatenate %126, %175, %224, %273 in 0 : vector<64x128xf32>, vector<64x128xf32>, vector<64x128xf32>, vector<64x128xf32> -> vector<256x128xf32>
    %275 = arith.truncf %274 : vector<256x128xf32> to vector<256x128xbf16>
    %c7 = arith.constant 7 : index
    %c0_66 = arith.constant 0 : index
    %c0_67 = arith.constant 0 : index
    %276 = vector.load %arg2[%c7, %c0_66, %c0_67] : memref<10x128x128xbf16, #tpu.memory_space<vmem>>, vector<1x128x128xbf16>
    %277 = vector.shape_cast %276 : vector<1x128x128xbf16> to vector<128x128xbf16>
    %cst_68 = arith.constant dense<0.000000e+00> : vector<256x128xf32>
    %278 = tpu.matmul %275, %277, %cst_68 {dimension_numbers = #tpu.dot_dimension_numbers<[1], [0], [0], [1], [0, 0, 1, 1], [], []>} : vector<256x128xbf16>, vector<128x128xbf16>, vector<256x128xf32> -> vector<256x128xf32>
    %c7_69 = arith.constant 7 : index
    %c0_70 = arith.constant 0 : index
    %279 = vector.load %arg3[%c7_69, %c0_70] : memref<10x128xf32, #tpu.memory_space<vmem>>, vector<1x128xf32>
    %280 = vector.broadcast %279 : vector<1x128xf32> to vector<256x128xf32>
    %281 = arith.addf %278, %280 : vector<256x128xf32>
    %c8 = arith.constant 8 : index
    %c0_71 = arith.constant 0 : index
    %c0_72 = arith.constant 0 : index
    %282 = vector.load %arg2[%c8, %c0_71, %c0_72] : memref<10x128x128xbf16, #tpu.memory_space<vmem>>, vector<1x128x128xbf16>
    %283 = vector.shape_cast %282 : vector<1x128x128xbf16> to vector<128x128xbf16>
    %cst_73 = arith.constant dense<0.000000e+00> : vector<256x128xf32>
    %284 = tpu.matmul %275, %283, %cst_73 {dimension_numbers = #tpu.dot_dimension_numbers<[1], [0], [0], [1], [0, 0, 1, 1], [], []>} : vector<256x128xbf16>, vector<128x128xbf16>, vector<256x128xf32> -> vector<256x128xf32>
    %c8_74 = arith.constant 8 : index
    %c0_75 = arith.constant 0 : index
    %285 = vector.load %arg3[%c8_74, %c0_75] : memref<10x128xf32, #tpu.memory_space<vmem>>, vector<1x128xf32>
    %286 = vector.broadcast %285 : vector<1x128xf32> to vector<256x128xf32>
    %287 = arith.addf %284, %286 : vector<256x128xf32>
    %288 = arith.negf %287 : vector<256x128xf32>
    %289 = math.exp %288 : vector<256x128xf32>
    %cst_76 = arith.constant 1.000000e+00 : f32
    %290 = vector.broadcast %cst_76 : f32 to vector<256x128xf32>
    %291 = arith.addf %290, %289 : vector<256x128xf32>
    %292 = arith.divf %290, %291 : vector<256x128xf32>
    %293 = arith.mulf %281, %292 : vector<256x128xf32>
    %294 = arith.truncf %293 : vector<256x128xf32> to vector<256x128xbf16>
    %c9 = arith.constant 9 : index
    %c0_77 = arith.constant 0 : index
    %c0_78 = arith.constant 0 : index
    %295 = vector.load %arg2[%c9, %c0_77, %c0_78] : memref<10x128x128xbf16, #tpu.memory_space<vmem>>, vector<1x128x128xbf16>
    %296 = vector.shape_cast %295 : vector<1x128x128xbf16> to vector<128x128xbf16>
    %cst_79 = arith.constant dense<0.000000e+00> : vector<256x128xf32>
    %297 = tpu.matmul %294, %296, %cst_79 {dimension_numbers = #tpu.dot_dimension_numbers<[1], [0], [0], [1], [0, 0, 1, 1], [], []>} : vector<256x128xbf16>, vector<128x128xbf16>, vector<256x128xf32> -> vector<256x128xf32>
    %c9_80 = arith.constant 9 : index
    %c0_81 = arith.constant 0 : index
    %298 = vector.load %arg3[%c9_80, %c0_81] : memref<10x128xf32, #tpu.memory_space<vmem>>, vector<1x128xf32>
    %299 = vector.broadcast %298 : vector<1x128xf32> to vector<256x128xf32>
    %300 = arith.addf %297, %299 : vector<256x128xf32>
    %301 = vector.extract_strided_slice %300 {offsets = [0, 0], sizes = [64, 1], strides = [1, 1]} : vector<256x128xf32> to vector<64x1xf32>
    %302 = vector.extract_strided_slice %300 {offsets = [64, 0], sizes = [64, 1], strides = [1, 1]} : vector<256x128xf32> to vector<64x1xf32>
    %303 = vector.extract_strided_slice %300 {offsets = [128, 0], sizes = [64, 1], strides = [1, 1]} : vector<256x128xf32> to vector<64x1xf32>
    %304 = vector.extract_strided_slice %300 {offsets = [192, 0], sizes = [64, 1], strides = [1, 1]} : vector<256x128xf32> to vector<64x1xf32>
    %305 = tpu.concatenate %301, %302, %303, %304 in 1 : vector<64x1xf32>, vector<64x1xf32>, vector<64x1xf32>, vector<64x1xf32> -> vector<64x4xf32>
    %c0_82 = arith.constant 0 : index
    %c0_83 = arith.constant 0 : index
    %306 = vector.load %arg5[%c0_82, %c0_83] : memref<64x4xf32, #tpu.memory_space<vmem>>, vector<64x4xf32>
    tpu.vector_store %arg5[%c0_82, %c0_83], %305 {strides = array<i32>} : memref<64x4xf32, #tpu.memory_space<vmem>>, vector<64x4xf32>,
    return
  }
  func.func @transform_0(%arg0: i32) -> (i32, i32) {
    %c0_i32 = arith.constant 0 : i32
    %c0_i32_0 = arith.constant 0 : i32
    return %arg0, %c0_i32 : i32, i32
  }
  func.func @transform_1(%arg0: i32) -> (i32, i32, i32) {
    %c0_i32 = arith.constant 0 : i32
    %c0_i32_0 = arith.constant 0 : i32
    %c0_i32_1 = arith.constant 0 : i32
    %c0_i32_2 = arith.constant 0 : i32
    return %c0_i32, %c0_i32_0, %c0_i32_1 : i32, i32, i32
  }
  func.func @transform_2(%arg0: i32) -> (i32, i32) {
    %c0_i32 = arith.constant 0 : i32
    %c0_i32_0 = arith.constant 0 : i32
    %c0_i32_1 = arith.constant 0 : i32
    return %c0_i32, %c0_i32_0 : i32, i32
  }
  func.func @transform_3(%arg0: i32) -> (i32, i32) {
    %c0_i32 = arith.constant 0 : i32
    %c0_i32_0 = arith.constant 0 : i32
    %c0_i32_1 = arith.constant 0 : i32
    return %c0_i32, %c0_i32_0 : i32, i32
  }
  func.func @transform_4(%arg0: i32) -> (i32, i32) {
    %c0_i32 = arith.constant 0 : i32
    %c0_i32_0 = arith.constant 0 : i32
    return %arg0, %c0_i32 : i32, i32
  }
}

</mosaic_0001>

<bundles_post_ra>
// kernel: tpu_custom_call.1
= control target key start
LH: loop header
LB: loop body
LE: loop exit
PB: predicated region body
PF: predicated region fallthrough
CT: control target
= control target key end

     0   :  { %s6459_s15 = smov 0   ;;  %s8601_s0 = inlined_call_operand.vmem [shape: f32[1024,1], index: 0, kind: input, shape index: {}]   ;;  %s8602_s1 = inlined_call_operand.vmem [shape: bf16[10,128,128], index: 1, kind: input, shape index: {}]   ;;  %s8603_s2 = inlined_call_operand.vmem [shape: f32[10,128], index: 2, kind: input, shape index: {}]   ;;  %s8604_s3 = inlined_call_operand.vmem [shape: bf16[64,256], index: 3, kind: input, shape index: {}]   ;;  %s8605_s4 = inlined_call_operand.vmem [shape: f32[256,4], index: 4, kind: output, shape index: {}]  }
   0x1 LB: > { %s4627_s16 = sadd.s32 4294967295, %s6425_s15   ;;  %p4631_p0 = scmp.ge.s32.totalorder %s6425_s15, 1  ;;  %s6425_s15 = sphi %s6459_s15, %s14_s15  }
   0x2   : > { %p163_p1 = scmp.lt.s32.totalorder %s6425_s15, 5 }
   0x4   : > { %p164_p2 = pnand %p4631_p0, %p163_p1 }
   0x6   : > { %167 = sbr.rel (%p164_p2) target bundleno = 2078 (0x81e), region = 36 }
   0xd   : > { %s4632_s17 = sshll.u32 %s4627_s16, 5  ;;  %v8611_v0 = vmov 0   ;;  %v5837_v9 = vld [vmem:[%s8602_s1 + $0x80] sm:$0xff]   ;;  %v5838_v10 = vld [vmem:[%s8602_s1 + $0x88] sm:$0xff]   ;;  %v5839_v15 = vld [vmem:[%s8602_s1 + $0x90] sm:$0xff]   ;;  %v396_v42 = vlaneseq  ;;  %s6432_s19 = smov 2  }
   0xe   : > { %5717 = vset.pattern.permute.xlu1 %v8611_v0  ;;  %5716 = vset.pattern.permute.xlu0 %v8611_v0  ;;  %p190_p3 = scmp.lt.s32.totalorder %s4632_s17, 127  ;;  %v5840_v18 = vld [vmem:[%s8602_s1 + $0x98] sm:$0xff]   ;;  %v5841_v21 = vld [vmem:[%s8602_s1 + $0xa0] sm:$0xff]   ;;  %v5842_v24 = vld [vmem:[%s8602_s1 + $0xa8] sm:$0xff]   ;;  %s6433_s20 = smov 3   ;;  %vm4535_vm0 = vcmask 7168  }
   0xf   : > { %5685 = vmatprep.subr.bf16.mxu1 %v5837_v9  ;;  %5397 = vmatprep.subr.bf16.mxu0 %v5837_v9  ;;  %v5843_v27 = vld [vmem:[%s8602_s1 + $0xb0] sm:$0xff]   ;;  %v5844_v30 = vld [vmem:[%s8602_s1 + $0xb8] sm:$0xff]   ;;  %v6527_v33 = vld [vmem:[%s8602_s1 + $0xc0] sm:$0xff]   ;;  %v6538_v43 = vshrl.u32 %v396_v42, 7  ;;  %vm4544_vm1 = vcmask 15360   ;;  %vm4553_vm2 = vcmask 23552  }
  0x10   : > { %s8668_s17 = smov (!%p190_p3, %s4632_s17), 127  ;;  %5693 = vmatpush3.bf16.msra.mxu1 %v5837_v9  ;;  %5398 = vmatpush3.bf16.msra.mxu0 %v5837_v9  ;;  %v4637_v44 = vld [vmem:[%s8602_s1 + $0x40] sm:$0x1]  ;;  %v6552_v48 = vld [vmem:[%s8603_s2 + $0x1] ss:$0 sm:$0xff]  ;;  %vm4562_vm3 = vcmask 31744  }
  0x11   : > { %s4633_s18 = sshll.u32 %s8668_s17, 3  ;;  %5686 = vmatprep.subr.bf16.mxu1 %v5838_v10  ;;  %5399 = vmatprep.subr.bf16.mxu0 %v5838_v10  ;;  %v6544_v45 = vsub.s32 0, %v6538_v43  ;;  %v471_v46 = vunpack.c.l.bf16 %v4637_v44 }
  0x12   : > { %s6474_s21 = scalar_lea.vmem %s8601_s0, %s4633_s18  ;;  %s6431_s18 = smov 1  }
  0x13   : > { %v220_v1 = vld [vmem:[%s6474_s21 + $0x90] sm:$0xff]  ;;  %v218_v2 = vld [vmem:[%s6474_s21 + $0x80] sm:$0xff]  ;;  %v221_v3 = vld [vmem:[%s6474_s21 + $0x98] sm:$0xff]  ;;  %v6547_v47 = vrot.slane %v471_v46, %v6544_v45 }
  0x14   : > { %328 = vperm.xlu1 %5717, %v220_v1   ;;  %318 = vperm.xlu0 %5716, %v218_v2   ;;  %v219_v4 = vld [vmem:[%s6474_s21 + $0x88] sm:$0xff]  ;;  %v222_v6 = vld [vmem:[%s6474_s21 + $0xa0] sm:$0xff]  ;;  %v225_v7 = vld [vmem:[%s6474_s21 + $0xb8] sm:$0xff] }
  0x15   : > { %v223_v5 = vld [vmem:[%s6474_s21 + $0xa8] sm:$0xff]  ;;  %v224_v8 = vld [vmem:[%s6474_s21 + $0xb0] sm:$0xff]  ;;  %v226_v12 = vld [vmem:[%s6474_s21 + $0xc0] sm:$0xff]  ;;  %5694 = vmatpush3.bf16.msra.mxu1 %v5838_v10  ;;  %5400 = vmatpush3.bf16.msra.mxu0 %v5838_v10 }
  0x16   : > { %v227_v11 = vld [vmem:[%s6474_s21 + $0xc8] sm:$0xff]  ;;  %v229_v13 = vld [vmem:[%s6474_s21 + $0xd8] sm:$0xff]  ;;  %v228_v14 = vld [vmem:[%s6474_s21 + $0xd0] sm:$0xff]  ;;  %5687 = vmatprep.subr.bf16.mxu1 %v5839_v15  ;;  %5401 = vmatprep.subr.bf16.mxu0 %v5839_v15 }
  0x17   : > { %v231_v16 = vld [vmem:[%s6474_s21 + $0xe8] sm:$0xff]  ;;  %v230_v17 = vld [vmem:[%s6474_s21 + $0xe0] sm:$0xff]  ;;  %v233_v19 = vld [vmem:[%s6474_s21 + $0xf8] sm:$0xff] }
  0x18   : > { %333 = vperm.xlu1 %5717, %v221_v3   ;;  %323 = vperm.xlu0 %5716, %v219_v4   ;;  %v232_v20 = vld [vmem:[%s6474_s21 + $0xf0] sm:$0xff]  ;;  %v203_v22 = vld [vmem:[%s6474_s21 + $0x8] sm:$0xff]  ;;  %v202_v23 = vld [vmem:[%s6474_s21] sm:$0xff] }
  0x19   : > { %5695 = vmatpush3.bf16.msra.mxu1 %v5839_v15  ;;  %5402 = vmatpush3.bf16.msra.mxu0 %v5839_v15  ;;  %v205_v25 = vld [vmem:[%s6474_s21 + $0x18] sm:$0xff]  ;;  %v204_v26 = vld [vmem:[%s6474_s21 + $0x10] sm:$0xff]  ;;  %v207_v28 = vld [vmem:[%s6474_s21 + $0x28] sm:$0xff] }
  0x1a   : > { %5688 = vmatprep.subr.bf16.mxu1 %v5840_v18  ;;  %5403 = vmatprep.subr.bf16.mxu0 %v5840_v18  ;;  %v206_v29 = vld [vmem:[%s6474_s21 + $0x20] sm:$0xff]  ;;  %v209_v31 = vld [vmem:[%s6474_s21 + $0x38] sm:$0xff]  ;;  %v208_v32 = vld [vmem:[%s6474_s21 + $0x30] sm:$0xff] }
  0x1b   : > { %v211_v34 = vld [vmem:[%s6474_s21 + $0x48] sm:$0xff]  ;;  %v210_v35 = vld [vmem:[%s6474_s21 + $0x40] sm:$0xff]  ;;  %v213_v36 = vld [vmem:[%s6474_s21 + $0x58] sm:$0xff] }
  0x1c   : > { %343 = vperm.xlu1 %5717, %v223_v5   ;;  %338 = vperm.xlu0 %5716, %v222_v6   ;;  %v212_v37 = vld [vmem:[%s6474_s21 + $0x50] sm:$0xff]  ;;  %v215_v38 = vld [vmem:[%s6474_s21 + $0x68] sm:$0xff]  ;;  %v214_v39 = vld [vmem:[%s6474_s21 + $0x60] sm:$0xff] }
  0x1d   : > { %5696 = vmatpush3.bf16.msra.mxu1 %v5840_v18  ;;  %5404 = vmatpush3.bf16.msra.mxu0 %v5840_v18  ;;  %v217_v40 = vld [vmem:[%s6474_s21 + $0x78] sm:$0xff]  ;;  %v216_v41 = vld [vmem:[%s6474_s21 + $0x70] sm:$0xff]  ;;  %v234_v2 = vld [vmem:[%s8602_s1] sm:$0x1]  ;;  %s4634_s21 = sshll.u32 %s4627_s16, 3 }
  0x1e   : > { %5689 = vmatprep.subr.bf16.mxu1 %v5841_v21  ;;  %5405 = vmatprep.subr.bf16.mxu0 %v5841_v21  ;;  %p196_p4 = scmp.lt.s32.totalorder %s4634_s21, 31 }
  0x20   : > { %353 = vperm.xlu1 %5717, %v225_v7   ;;  %348 = vperm.xlu0 %5716, %v224_v8   ;;  %v235_v8 = vunpack.c.l.bf16 %v234_v2  ;;  %s8670_s21 = smov (!%p196_p4, %s4634_s21), 31 }
  0x21   : > { %5697 = vmatpush3.bf16.msra.mxu1 %v5841_v21  ;;  %5406 = vmatpush3.bf16.msra.mxu0 %v5841_v21  ;;  %s4635_s22 = sshll.u32 %s8670_s21, 3 }
  0x22   : > { %5690 = vmatprep.subr.bf16.mxu1 %v5842_v24  ;;  %5407 = vmatprep.subr.bf16.mxu0 %v5842_v24  ;;  %s8545_s24 = scalar_lea.vmem %s8605_s4, %s4635_s22 }
  0x24   : > { %363 = vperm.xlu1 %5717, %v227_v11   ;;  %358 = vperm.xlu0 %5716, %v226_v12  }
  0x25   : > { %5698 = vmatpush3.bf16.msra.mxu1 %v5842_v24  ;;  %5408 = vmatpush3.bf16.msra.mxu0 %v5842_v24 }
  0x26   : > { %5691 = vmatprep.subr.bf16.mxu1 %v5843_v27  ;;  %5409 = vmatprep.subr.bf16.mxu0 %v5843_v27 }
  0x28   : > { %373 = vperm.xlu1 %5717, %v229_v13   ;;  %368 = vperm.xlu0 %5716, %v228_v14  }
  0x29   : > { %5699 = vmatpush3.bf16.msra.mxu1 %v5843_v27  ;;  %5410 = vmatpush3.bf16.msra.mxu0 %v5843_v27 }
  0x2a   : > { %5692 = vmatprep.subr.bf16.mxu1 %v5844_v30  ;;  %5411 = vmatprep.subr.bf16.mxu0 %v5844_v30 }
  0x2c   : > { %383 = vperm.xlu1 %5717, %v231_v16   ;;  %378 = vperm.xlu0 %5716, %v230_v17   ;;  %v6582_v17 = vrot.slane %v235_v8, %v6544_v45 }
  0x2d   : > { %5700 = vmatpush3.bf16.msra.mxu1 %v5844_v30  ;;  %5412 = vmatpush3.bf16.msra.mxu0 %v5844_v30 }
  0x2e   : > { %5445 = vmatprep.subr.bf16.mxu1 %v6527_v33 }
  0x30   : > { %393 = vperm.xlu1 %5717, %v233_v19   ;;  %388 = vperm.xlu0 %5716, %v232_v20  }
  0x34   : > { %243 = vperm.xlu1 %5717, %v203_v22   ;;  %238 = vperm.xlu0 %5716, %v202_v23  }
  0x38   : > { %253 = vperm.xlu1 %5717, %v205_v25   ;;  %248 = vperm.xlu0 %5716, %v204_v26  }
  0x3c   : > { %263 = vperm.xlu1 %5717, %v207_v28   ;;  %258 = vperm.xlu0 %5716, %v206_v29  }
  0x40   : > { %273 = vperm.xlu1 %5717, %v209_v31   ;;  %268 = vperm.xlu0 %5716, %v208_v32  }
  0x44   : > { %283 = vperm.xlu1 %5717, %v211_v34   ;;  %278 = vperm.xlu0 %5716, %v210_v35  }
  0x48   : > { %293 = vperm.xlu1 %5717, %v213_v36   ;;  %288 = vperm.xlu0 %5716, %v212_v37   ;;  %v6603_v36 = vld [vmem:[%s8603_s2] ss:$0 sm:$0xff] }
  0x4c   : > { %303 = vperm.xlu1 %5717, %v215_v38   ;;  %298 = vperm.xlu0 %5716, %v214_v39  }
  0x50   : > { %313 = vperm.xlu1 %5717, %v217_v40   ;;  %308 = vperm.xlu0 %5716, %v216_v41  }
  0x93   : > { %v329_v49 = vpop.permute.xlu1 %328  ;;  %v319_v50 = vpop.permute.xlu0 %318 }
  0x94   : > { %v494_v51 = vmul.f32 %v6547_v47, %v329_v49  ;;  %v492_v52 = vmul.f32 %v6547_v47, %v319_v50  ;;  %v418_v30 = vmul.f32 %v6582_v17, %v329_v49  ;;  %v416_v37 = vmul.f32 %v6582_v17, %v319_v50 }
  0x96   : > { %v531_v53 = vadd.f32 %v6552_v48, %v494_v51  ;;  %v529_v54 = vadd.f32 %v6552_v48, %v492_v52  ;;  %v6612_v52 = vadd.f32 %v6603_v36, %v418_v30 }
  0x97   : > { %v334_v55 = vpop.permute.xlu1 %333  ;;  %v324_v56 = vpop.permute.xlu0 %323 }
  0x98   : > { %v4657_v57 = vmul.f32 -1.442695, %v531_v53  ;;  %v4655_v58 = vmul.f32 -1.442695, %v529_v54  ;;  %v495_v59 = vmul.f32 %v6547_v47, %v334_v55  ;;  %v493_v60 = vmul.f32 %v6547_v47, %v324_v56 }
  0x99   : > { %v419_v41 = vmul.f32 %v6582_v17, %v334_v55  ;;  %v417_v46 = vmul.f32 %v6582_v17, %v324_v56 }
  0x9a   : > { %5897 = vpow2.f32 %v4657_v57  ;;  %v532_v61 = vadd.f32 %v6552_v48, %v495_v59  ;;  %v530_v62 = vadd.f32 %v6552_v48, %v493_v60 }
  0x9b   : > { %5899 = vpow2.f32 %v4655_v58  ;;  %v6562_v63 = vpop.permute.xlu1 %343  ;;  %v6564_v1 = vpop.permute.xlu0 %338  ;;  %v6623_v58 = vadd.f32 %v6603_v36, %v416_v37  ;;  %v456_v60 = vadd.f32 %v6603_v36, %v419_v41 }
  0x9c   : > { %v4658_v3 = vmul.f32 -1.442695, %v532_v61  ;;  %v497_v4 = vmul.f32 %v6547_v47, %v6562_v63  ;;  %v4656_v5 = vmul.f32 -1.442695, %v530_v62  ;;  %v496_v6 = vmul.f32 %v6547_v47, %v6564_v1 }
  0x9d   : > { %v421_v61 = vmul.f32 %v6582_v17, %v6562_v63  ;;  %v420_v2 = vmul.f32 %v6582_v17, %v6564_v1 }
  0x9e   : > { %5901 = vpow2.f32 %v4658_v3  ;;  %v534_v7 = vadd.f32 %v6552_v48, %v497_v4  ;;  %v533_v9 = vadd.f32 %v6552_v48, %v496_v6 }
  0x9f   : > { %5903 = vpow2.f32 %v4656_v5  ;;  %v354_v10 = vpop.permute.xlu1 %353  ;;  %v6575_v11 = vpop.permute.xlu0 %348  ;;  %v454_v5 = vadd.f32 %v6603_v36, %v417_v46 }
  0xa0   : > { %v4660_v12 = vmul.f32 -1.442695, %v534_v7  ;;  %v499_v13 = vmul.f32 %v6547_v47, %v354_v10  ;;  %v4659_v14 = vmul.f32 -1.442695, %v533_v9  ;;  %v498_v15 = vmul.f32 %v6547_v47, %v6575_v11 }
  0xa1   : > { %v423_v6 = vmul.f32 %v6582_v17, %v354_v10  ;;  %v422_v10 = vmul.f32 %v6582_v17, %v6575_v11 }
  0xa2   : > { %5905 = vpow2.f32 %v4660_v12  ;;  %v536_v16 = vadd.f32 %v6552_v48, %v499_v13  ;;  %v535_v18 = vadd.f32 %v6552_v48, %v498_v15 }
  0xa3   : > { %5907 = vpow2.f32 %v4659_v14  ;;  %v6585_v19 = vpop.permute.xlu1 %363  ;;  %v6587_v20 = vpop.permute.xlu0 %358 }
  0xa4   : > { %v5898_v21 = vpop.eup %5897  ;;  %v4662_v22 = vmul.f32 -1.442695, %v536_v16  ;;  %v501_v23 = vmul.f32 %v6547_v47, %v6585_v19  ;;  %v4661_v26 = vmul.f32 -1.442695, %v535_v18  ;;  %v500_v27 = vmul.f32 %v6547_v47, %v6587_v20 }
  0xa5   : > { %v5900_v24 = vpop.eup %5899  ;;  %v659_v25 = vadd.f32 1.0, %v5898_v21  ;;  %v6643_v16 = vadd.f32 %v6603_v36, %v421_v61  ;;  %v425_v11 = vmul.f32 %v6582_v17, %v6585_v19  ;;  %v424_v41 = vmul.f32 %v6582_v17, %v6587_v20 }
  0xa6   : > { %v657_v28 = vadd.f32 1.0, %v5900_v24  ;;  %5909 = vpow2.f32 %v4662_v22  ;;  %v538_v29 = vadd.f32 %v6552_v48, %v501_v23  ;;  %v537_v31 = vadd.f32 %v6552_v48, %v500_v27 }
  0xa7   : > { %5911 = vrcp.f32 %v659_v25  ;;  %v6596_v32 = vpop.permute.xlu1 %373  ;;  %v6598_v34 = vpop.permute.xlu0 %368  ;;  %v6655_v27 = vadd.f32 %v6603_v36, %v423_v6 }
  0xa8   : > { %v5902_v35 = vpop.eup %5901  ;;  %5913 = vrcp.f32 %v657_v28  ;;  %v4664_v38 = vmul.f32 -1.442695, %v538_v29  ;;  %v503_v39 = vmul.f32 %v6547_v47, %v6596_v32  ;;  %v4663_v44 = vmul.f32 -1.442695, %v537_v31 }
  0xa9   : > { %v5904_v40 = vpop.eup %5903  ;;  %v660_v42 = vadd.f32 1.0, %v5902_v35  ;;  %5915 = vpow2.f32 %v4661_v26  ;;  %v502_v50 = vmul.f32 %v6547_v47, %v6598_v34  ;;  %v6652_v26 = vadd.f32 %v6603_v36, %v420_v2 }
  0xaa   : > { %v658_v49 = vadd.f32 1.0, %v5904_v40  ;;  %5917 = vpow2.f32 %v4664_v38  ;;  %v540_v51 = vadd.f32 %v6552_v48, %v503_v39  ;;  %v6665_v40 = vadd.f32 %v6603_v36, %v422_v10 }
  0xab   : > { %5919 = vrcp.f32 %v660_v42  ;;  %v6616_v53 = vpop.permute.xlu1 %383  ;;  %v6618_v54 = vpop.permute.xlu0 %378  ;;  %v539_v62 = vadd.f32 %v6552_v48, %v502_v50  ;;  %v6674_v50 = vadd.f32 %v6603_v36, %v425_v11 }
  0xac   : > { %v5906_v55 = vpop.eup %5905  ;;  %5921 = vrcp.f32 %v658_v49  ;;  %v4666_v57 = vmul.f32 -1.442695, %v540_v51  ;;  %v505_v56 = vmul.f32 %v6547_v47, %v6616_v53  ;;  %v504_v8 = vmul.f32 %v6547_v47, %v6618_v54 }
  0xad   : > { %v5908_v59 = vpop.eup %5907  ;;  %5923 = vpow2.f32 %v4663_v44  ;;  %v4665_v7 = vmul.f32 -1.442695, %v539_v62  ;;  %v662_v13 = vadd.f32 1.0, %v5906_v55 }
  0xae   : > { %v661_v3 = vadd.f32 1.0, %v5908_v59  ;;  %v542_v4 = vadd.f32 %v6552_v48, %v505_v56  ;;  %5925 = vpow2.f32 %v4666_v57  ;;  %v541_v18 = vadd.f32 %v6552_v48, %v504_v8 }
  0xaf   : > { %v6636_v9 = vpop.permute.xlu1 %393  ;;  %v6638_v63 = vpop.permute.xlu0 %388  ;;  %v427_v8 = vmul.f32 %v6582_v17, %v6596_v32  ;;  %v426_v32 = vmul.f32 %v6582_v17, %v6598_v34 }
  0xb0   : > { %v5910_v12 = vpop.eup %5909  ;;  %5927 = vrcp.f32 %v661_v3  ;;  %v4668_v1 = vmul.f32 -1.442695, %v542_v4  ;;  %v507_v14 = vmul.f32 %v6547_v47, %v6636_v9  ;;  %v506_v24 = vmul.f32 %v6547_v47, %v6638_v63 }
  0xb1   : > { %v5912_v15 = vpop.eup %5911  ;;  %5929 = vpow2.f32 %v4665_v7  ;;  %v664_v22 = vadd.f32 1.0, %v5910_v12  ;;  %v4667_v28 = vmul.f32 -1.442695, %v541_v18  ;;  %v6710_v34 = vadd.f32 %v6603_v36, %v427_v8 }
  0xb2   : > { %v5914_v21 = vpop.eup %5913  ;;  %5931 = vpow2.f32 %v4668_v1  ;;  %v544_v23 = vadd.f32 %v6552_v48, %v507_v14  ;;  %v543_v38 = vadd.f32 %v6552_v48, %v506_v24 }
  0xb3   : > { %v5916_v25 = vpop.eup %5915  ;;  %v6659_v29 = vpop.permute.xlu1 %243  ;;  %5933 = vrcp.f32 %v662_v13  ;;  %v753_v6 = vmul.f32 %v5914_v21, %v6623_v58 }
  0xb4   : > { %v6661_v30 = vpop.permute.xlu0 %238  ;;  %v5918_v31 = vpop.eup %5917  ;;  %v663_v35 = vadd.f32 1.0, %v5916_v25  ;;  %v4670_v37 = vmul.f32 -1.442695, %v544_v23  ;;  %5935 = vpow2.f32 %v4667_v28  ;;  %v477_v19 = vmul.f32 %v6547_v47, %v6659_v29 }
  0xb5   : > { %v5920_v39 = vpop.eup %5919  ;;  %5937 = vrcp.f32 %v664_v22  ;;  %v666_v44 = vadd.f32 1.0, %v5918_v31  ;;  %v4669_v46 = vmul.f32 -1.442695, %v543_v38  ;;  %v476_v49 = vmul.f32 %v6547_v47, %v6661_v30 }
  0xb6   : > { %v5922_v42 = vpop.eup %5921  ;;  %5939 = vrcp.f32 %v663_v35  ;;  %v514_v55 = vadd.f32 %v6552_v48, %v477_v19  ;;  %v756_v62 = vmul.f32 %v5920_v39, %v456_v60  ;;  %v6705_v22 = vadd.f32 %v6603_v36, %v424_v41 }
  0xb7   : > { %v5924_v51 = vpop.eup %5923  ;;  %v6677_v57 = vpop.permute.xlu1 %253  ;;  %v754_v56 = vmul.f32 %v5922_v42, %v454_v5  ;;  %5941 = vpow2.f32 %v4670_v37  ;;  %v513_v61 = vadd.f32 %v6552_v48, %v476_v49  ;;  %v755_v5 = vmul.f32 %v5912_v15, %v6612_v52  ;;  %v5846_v15 = vld [vmem:[%s8602_s1 + $0xc8] sm:$0xff]  }
  0xb8   : > { %v6679_v20 = vpop.permute.xlu0 %248  ;;  %v665_v59 = vadd.f32 1.0, %v5924_v51  ;;  %v5926_v2 = vpop.eup %5925  ;;  %5943 = vpow2.f32 %v4669_v46  ;;  %v4640_v3 = vmul.f32 -1.442695, %v514_v55  ;;  %v479_v4 = vmul.f32 %v6547_v47, %v6677_v57 }
  0xb9   : > { %5945 = vrcp.f32 %v666_v44  ;;  %v4639_v12 = vmul.f32 -1.442695, %v513_v61  ;;  %v478_v1 = vmul.f32 %v6547_v47, %v6679_v20  ;;  %v6691_v14 = vpack.c.bf16 %v754_v56, %v753_v6 }
  0xba   : > { %v5928_v7 = vpop.eup %5927  ;;  %5947 = vrcp.f32 %v665_v59  ;;  %v516_v60 = vadd.f32 %v6552_v48, %v479_v4  ;;  %v6699_v52 = vpack.c.bf16 %v756_v62, %v755_v5  ;;  %v668_v11 = vadd.f32 1.0, %v5926_v2 }
  0xbb   : > { %v5930_v13 = vpop.eup %5929  ;;  %v6693_v10 = vpop.permute.xlu1 %263  ;;  %5949 = vpow2.f32 %v4640_v3  ;;  %v515_v24 = vadd.f32 %v6552_v48, %v478_v1  ;;  %5429 = vmatprep.mubr.bf16.mxu1 %v6691_v14  ;;  %v757_v39 = vmul.f32 %v5928_v7, %v6652_v26  ;;  %v6724_v44 = vadd.f32 %v6603_v36, %v426_v32 }
  0xbc   : > { %v6695_v58 = vpop.permute.xlu0 %258  ;;  %v5932_v18 = vpop.eup %5931  ;;  %v667_v21 = vadd.f32 1.0, %v5930_v13  ;;  %5951 = vpow2.f32 %v4639_v12  ;;  %v4642_v23 = vmul.f32 -1.442695, %v516_v60  ;;  %5430 = vmatmul.mubr.bf16.vlgmr.msra.gmra.mrb[0].mxu1 %v6699_v52  ;;  %v481_v31 = vmul.f32 %v6547_v47, %v6693_v10  ;;  %v5848_v13 = vld [vmem:[%s8602_s1 + $0xd8] sm:$0xff]  }
  0xbd   : > { %v5934_v25 = vpop.eup %5933  ;;  %v670_v28 = vadd.f32 1.0, %v5932_v18  ;;  %v4641_v37 = vmul.f32 -1.442695, %v515_v24  ;;  %v480_v38 = vmul.f32 %v6547_v47, %v6695_v58  ;;  %5446 = vmatpush3.bf16.msra.mxu1 %v6527_v33  ;;  %v429_v46 = vmul.f32 %v6582_v17, %v6616_v53  ;;  %v5847_v33 = vld [vmem:[%s8602_s1 + $0xd0] sm:$0xff]  }
  0xbe   : > { %v5936_v35 = vpop.eup %5935  ;;  %5953 = vrcp.f32 %v667_v21  ;;  %v518_v49 = vadd.f32 %v6552_v48, %v481_v31  ;;  %5447 = vmatprep.subr.bf16.mxu1 %v5846_v15  ;;  %v758_v56 = vmul.f32 %v5934_v25, %v6643_v16  ;;  %v428_v53 = vmul.f32 %v6582_v17, %v6618_v54 }
  0xbf   : > { %v6719_v41 = vpop.permute.xlu1 %273  ;;  %v5938_v42 = vpop.eup %5937  ;;  %5955 = vpow2.f32 %v4642_v23  ;;  %v669_v51 = vadd.f32 1.0, %v5936_v35  ;;  %v517_v55 = vadd.f32 %v6552_v48, %v480_v38  ;;  %v6745_v12 = vadd.f32 %v6603_v36, %v429_v46 }
  0xc0   : > { %v6721_v19 = vpop.permute.xlu0 %268  ;;  %v5940_v26 = vpop.eup %5939  ;;  %5957 = vpow2.f32 %v4641_v37  ;;  %v4644_v61 = vmul.f32 -1.442695, %v518_v49  ;;  %v483_v62 = vmul.f32 %v6547_v47, %v6719_v41  ;;  %v6738_v6 = vpack.c.bf16 %v758_v56, %v757_v39 }
  0xc1   : > { %v5942_v59 = vpop.eup %5941  ;;  %5959 = vrcp.f32 %v668_v11  ;;  %v4643_v4 = vmul.f32 -1.442695, %v517_v55  ;;  %5448 = vmatpush3.bf16.msra.mxu1 %v5846_v15  ;;  %v431_v54 = vmul.f32 %v6582_v17, %v6636_v9  ;;  %v482_v18 = vmul.f32 %v6547_v47, %v6721_v19 }
  0xc2   : > { %v5944_v2 = vpop.eup %5943  ;;  %5961 = vrcp.f32 %v670_v28  ;;  %v672_v3 = vadd.f32 1.0, %v5942_v59  ;;  %v520_v5 = vadd.f32 %v6552_v48, %v483_v62  ;;  %5449 = vmatprep.subr.bf16.mxu1 %v5847_v33  ;;  %5433 = vmatprep.mubr.bf16.mxu1 %v6738_v6  ;;  %v759_v32 = vmul.f32 %v5940_v26, %v6665_v40 }
  0xc3   : > { %v6740_v7 = vpop.permute.xlu1 %283  ;;  %v5946_v16 = vpop.eup %5945  ;;  %5963 = vpow2.f32 %v4644_v61  ;;  %v671_v1 = vadd.f32 1.0, %v5944_v2  ;;  %v430_v9 = vmul.f32 %v6582_v17, %v6638_v63  ;;  %v760_v23 = vmul.f32 %v5938_v42, %v6655_v27  ;;  %v5849_v27 = vld [vmem:[%s8602_s1 + $0xe0] sm:$0xff]  }
  0xc4   : > { %v6742_v8 = vpop.permute.xlu0 %278  ;;  %v5948_v60 = vpop.eup %5947  ;;  %5965 = vrcp.f32 %v669_v51  ;;  %v4646_v15 = vmul.f32 -1.442695, %v520_v5  ;;  %v519_v11 = vadd.f32 %v6552_v48, %v482_v18  ;;  %v485_v28 = vmul.f32 %v6547_v47, %v6740_v7 }
  0xc5   : > { %v5950_v21 = vpop.eup %5949  ;;  %5967 = vrcp.f32 %v672_v3  ;;  %5450 = vmatpush3.bf16.msra.mxu1 %v5847_v33  ;;  %v6766_v40 = vadd.f32 %v6603_v36, %v428_v53  ;;  %v6768_v63 = vpack.c.bf16 %v760_v23, %v759_v32  ;;  %v6774_v38 = vadd.f32 %v6603_v36, %v431_v54 }
  0xc6   : > { %v5952_v24 = vpop.eup %5951  ;;  %v642_v25 = vadd.f32 1.0, %v5950_v21  ;;  %5969 = vpow2.f32 %v4643_v4  ;;  %5451 = vmatprep.subr.bf16.mxu1 %v5848_v13  ;;  %v4645_v39 = vmul.f32 -1.442695, %v519_v11  ;;  %v522_v42 = vadd.f32 %v6552_v48, %v485_v28 }
  0xc7   : > { %v6763_v31 = vpop.permute.xlu1 %293  ;;  %v641_v35 = vadd.f32 1.0, %v5952_v24  ;;  %5971 = vpow2.f32 %v4646_v15  ;;  %5434 = vmatmul.mubr.bf16.gmra.mrb[4].mxu1 %v6768_v63  ;;  %v484_v33 = vmul.f32 %v6547_v47, %v6742_v8  ;;  %v761_v26 = vmul.f32 %v5948_v60, %v6705_v22 }
  0xc8   : > { %v5954_v37 = vpop.eup %5953  ;;  %5973 = vrcp.f32 %v671_v1  ;;  %v6777_v46 = vpop.permute.xlu0 %288  ;;  %v762_v51 = vmul.f32 %v5946_v16, %v6674_v50  ;;  %v6785_v56 = vadd.f32 %v6603_v36, %v430_v9  ;;  %v4648_v53 = vmul.f32 -1.442695, %v522_v42  ;;  %v5850_v50 = vld [vmem:[%s8602_s1 + $0xe8] sm:$0xff]  }
  0xc9   : > { %v5956_v49 = vpop.eup %5955  ;;  %5975 = vrcp.f32 %v642_v25  ;;  %5452 = vmatpush3.bf16.msra.mxu1 %v5848_v13  ;;  %v521_v2 = vadd.f32 %v6552_v48, %v484_v33  ;;  %v403_v16 = vmul.f32 %v6582_v17, %v6677_v57  ;;  %v487_v54 = vmul.f32 %v6547_v47, %v6763_v31 }
  0xca   : > { %v5958_v55 = vpop.eup %5957  ;;  %v644_v59 = vadd.f32 1.0, %v5956_v49  ;;  %5977 = vpow2.f32 %v4645_v39  ;;  %v6788_v3 = vpack.c.bf16 %v762_v51, %v761_v26  ;;  %5453 = vmatprep.subr.bf16.mxu1 %v5849_v27  ;;  %v486_v5 = vmul.f32 %v6547_v47, %v6777_v46 }
  0xcb   : > { %v5960_v61 = vpop.eup %5959  ;;  %5979 = vrcp.f32 %v641_v35  ;;  %v643_v62 = vadd.f32 1.0, %v5958_v55  ;;  %v6790_v4 = vpop.permute.xlu1 %303  ;;  %v402_v60 = vmul.f32 %v6582_v17, %v6679_v20  ;;  %v4647_v1 = vmul.f32 -1.442695, %v521_v2 }
  0xcc   : > { %v5962_v22 = vpop.eup %5961  ;;  %5981 = vrcp.f32 %v644_v59  ;;  %5437 = vmatprep.mubr.bf16.mxu1 %v6788_v3  ;;  %v763_v18 = vmul.f32 %v5954_v37, %v6724_v44  ;;  %v6807_v57 = vmul.f32 %v6582_v17, %v6659_v29  ;;  %v524_v9 = vadd.f32 %v6552_v48, %v487_v54  ;;  %v6810_v15 = vpop.permute.xlu0 %298  ;;  %v5851_v29 = vld [vmem:[%s8602_s1 + $0xf0] sm:$0xff]  }
  0xcd   : > { %v5964_v13 = vpop.eup %5963  ;;  %5983 = vrcp.f32 %v643_v62  ;;  %5454 = vmatpush3.bf16.msra.mxu1 %v5849_v27  ;;  %v400_v20 = vmul.f32 %v6582_v17, %v6661_v30  ;;  %v523_v24 = vadd.f32 %v6552_v48, %v486_v5  ;;  %v764_v44 = vmul.f32 %v5960_v61, %v6710_v34 }
  0xce   : > { %v5966_v32 = vpop.eup %5965  ;;  %v646_v21 = vadd.f32 1.0, %v5964_v13  ;;  %5985 = vpow2.f32 %v4648_v53  ;;  %5455 = vmatprep.subr.bf16.mxu1 %v5850_v50  ;;  %v6820_v11 = vadd.f32 %v6603_v36, %v403_v16  ;;  %v4650_v28 = vmul.f32 -1.442695, %v524_v9 }
  0xcf   : > { %v5968_v23 = vpop.eup %5967  ;;  %5987 = vpow2.f32 %v4647_v1  ;;  %v489_v35 = vmul.f32 %v6547_v47, %v6790_v4  ;;  %v439_v27 = vadd.f32 %v6603_v36, %v402_v60  ;;  %v4649_v39 = vmul.f32 -1.442695, %v523_v24  ;;  %v6827_v42 = vpop.permute.xlu1 %313 }
  0xd0   : > { %v5970_v25 = vpop.eup %5969  ;;  %5989 = vrcp.f32 %v646_v21  ;;  %v6825_v34 = vpack.c.bf16 %v764_v44, %v763_v18  ;;  %v405_v33 = vmul.f32 %v6582_v17, %v6693_v10  ;;  %v488_v59 = vmul.f32 %v6547_v47, %v6810_v15  ;;  %v5852_v10 = vld [vmem:[%s8602_s1 + $0xf8] sm:$0xff]   ;;  %v6844_v54 = vpop.permute.xlu0 %308 }
  0xd1   : > { %v5972_v30 = vpop.eup %5971  ;;  %v645_v37 = vadd.f32 1.0, %v5970_v25  ;;  %5991 = vpow2.f32 %v4650_v28  ;;  %v526_v51 = vadd.f32 %v6552_v48, %v489_v35  ;;  %5456 = vmatpush3.bf16.msra.mxu1 %v5850_v50  ;;  %v765_v53 = vmul.f32 %v5966_v32, %v6766_v40 }
  0xd2   : > { %v5974_v49 = vpop.eup %5973  ;;  %v648_v26 = vadd.f32 1.0, %v5972_v30  ;;  %5438 = vmatmul.mubr.bf16.gmra.mrb[8].mxu1 %v6825_v34  ;;  %v766_v61 = vmul.f32 %v5962_v22, %v6745_v12  ;;  %5457 = vmatprep.subr.bf16.mxu1 %v5851_v29  ;;  %v404_v2 = vmul.f32 %v6582_v17, %v6695_v58  ;;  %v491_v16 = vmul.f32 %v6547_v47, %v6827_v42 }
  0xd3   : > { %v5976_v55 = vpop.eup %5975  ;;  %5993 = vrcp.f32 %v645_v37  ;;  %v4652_v50 = vmul.f32 -1.442695, %v526_v51  ;;  %v525_v12 = vadd.f32 %v6552_v48, %v488_v59  ;;  %v442_v60 = vadd.f32 %v6603_v36, %v405_v33 }
  0xd4   : > { %v5978_v62 = vpop.eup %5977  ;;  %5995 = vrcp.f32 %v648_v26  ;;  %v6847_v22 = vpack.c.bf16 %v766_v61, %v765_v53  ;;  %v407_v58 = vmul.f32 %v6582_v17, %v6719_v41  ;;  %v528_v1 = vadd.f32 %v6552_v48, %v491_v16 }
  0xd5   : > { %v5980_v5 = vpop.eup %5979  ;;  %v647_v40 = vadd.f32 1.0, %v5978_v62  ;;  %5997 = vpow2.f32 %v4649_v39  ;;  %5458 = vmatpush3.bf16.msra.mxu1 %v5851_v29  ;;  %v4651_v32 = vmul.f32 -1.442695, %v525_v12  ;;  %v490_v21 = vmul.f32 %v6547_v47, %v6844_v54 }
  0xd6   : > { %v5982_v13 = vpop.eup %5981  ;;  %5999 = vpow2.f32 %v4652_v50  ;;  %5441 = vmatprep.mubr.bf16.mxu1 %v6847_v22  ;;  %v767_v9 = vmul.f32 %v5974_v49, %v6785_v56  ;;  %5459 = vmatprep.subr.bf16.mxu1 %v5852_v10  ;;  %v406_v44 = vmul.f32 %v6582_v17, %v6721_v19  ;;  %v4654_v41 = vmul.f32 -1.442695, %v528_v1 }
  0xd7   : > { %v5984_v18 = vpop.eup %5983  ;;  %6001 = vrcp.f32 %v647_v40  ;;  %v768_v25 = vmul.f32 %v5968_v23, %v6774_v38  ;;  %v437_v29 = vadd.f32 %v6603_v36, %v400_v20  ;;  %v527_v30 = vadd.f32 %v6552_v48, %v490_v21 }
  0xd8   : > { %v5986_v24 = vpop.eup %5985  ;;  %6003 = vpow2.f32 %v4651_v32  ;;  %v438_v47 = vadd.f32 %v6603_v36, %v6807_v57  ;;  %v739_v23 = vmul.f32 %v5984_v18, %v439_v27  ;;  %v441_v33 = vadd.f32 %v6603_v36, %v404_v2 }
  0xd9   : > { %v5988_v28 = vpop.eup %5987  ;;  %v650_v35 = vadd.f32 1.0, %v5986_v24  ;;  %6005 = vpow2.f32 %v4654_v41  ;;  %v6864_v39 = vpack.c.bf16 %v768_v25, %v767_v9  ;;  %v737_v49 = vmul.f32 %v5980_v5, %v437_v29  ;;  %5460 = vmatpush3.bf16.msra.mxu1 %v5852_v10 }
  0xda   : > { %v5990_v37 = vpop.eup %5989  ;;  %v649_v56 = vadd.f32 1.0, %v5988_v28  ;;  %v4653_v19 = vmul.f32 -1.442695, %v527_v30  ;;  %v738_v38 = vmul.f32 %v5976_v55, %v438_v47  ;;  %v740_v48 = vmul.f32 %v5982_v13, %v6820_v11 }
  0xdb   : > { %6007 = vrcp.f32 %v650_v35  ;;  %v5992_v20 = vpop.eup %5991  ;;  %5442 = vmatmul.mubr.bf16.gmra.mrb[12].mxu1 %v6864_v39  ;;  %v742_v57 = vmul.f32 %v5990_v37, %v442_v60  ;;  %v444_v61 = vadd.f32 %v6603_v36, %v407_v58  ;;  %v443_v27 = vadd.f32 %v6603_v36, %v406_v44 }
  0xdc   : > { %6009 = vrcp.f32 %v649_v56  ;;  %v652_v51 = vadd.f32 1.0, %v5992_v20  ;;  %v769_v59 = vpack.c.bf16 %v738_v38, %v737_v49  ;;  %v770_v10 = vpack.c.bf16 %v740_v48, %v739_v23 }
  0xdd   : > { %v5994_v26 = vpop.eup %5993  ;;  %6011 = vpow2.f32 %v4653_v19  ;;  %v409_v11 = vmul.f32 %v6582_v17, %v6740_v7  ;;  %v408_v12 = vmul.f32 %v6582_v17, %v6742_v8  ;;  %v411_v24 = vmul.f32 %v6582_v17, %v6763_v31 }
  0xde   : > { %v5996_v53 = vpop.eup %5995  ;;  %v741_v62 = vmul.f32 %v5994_v26, %v441_v33  ;;  %6013 = vrcp.f32 %v652_v51  ;;  %5413 = vmatprep.mubr.bf16.mxu0 %v769_v59  ;;  %5461 = vmatprep.mubr.bf16.mxu1 %v769_v59  ;;  %v410_v29 = vmul.f32 %v6582_v17, %v6777_v46  ;;  %v413_v37 = vmul.f32 %v6582_v17, %v6790_v4 }
  0xdf   : > { %v5998_v55 = vpop.eup %5997  ;;  %5414 = vmatmul.mubr.bf16.vlgmr.msra.gmra.mrb[0].mxu0 %v770_v10  ;;  %v744_v5 = vmul.f32 %v5996_v53, %v444_v61  ;;  %v446_v18 = vadd.f32 %v6603_v36, %v409_v11  ;;  %v445_v9 = vadd.f32 %v6603_v36, %v408_v12  ;;  %v448_v47 = vadd.f32 %v6603_v36, %v411_v24 }
  0xe0   : > { %v6000_v2 = vpop.eup %5999  ;;  %v651_v50 = vadd.f32 1.0, %v5998_v55  ;;  %v771_v16 = vpack.c.bf16 %v742_v57, %v741_v62  ;;  %v447_v56 = vadd.f32 %v6603_v36, %v410_v29  ;;  %v412_v49 = vmul.f32 %v6582_v17, %v6810_v15 }
  0xe1   : > { %v6002_v40 = vpop.eup %6001  ;;  %v654_v13 = vadd.f32 1.0, %v6000_v2  ;;  %v450_v23 = vadd.f32 %v6603_v36, %v413_v37  ;;  %v415_v20 = vmul.f32 %v6582_v17, %v6827_v42  ;;  %v414_v48 = vmul.f32 %v6582_v17, %v6844_v54  ;;  %v5853_v17 = vld [vmem:[%s8602_s1 + $0x100] sm:$0xff]  }
  0xe2   : > { %6015 = vrcp.f32 %v651_v50  ;;  %5417 = vmatprep.mubr.bf16.mxu0 %v771_v16  ;;  %v743_v60 = vmul.f32 %v6002_v40, %v443_v27  ;;  %v6004_v58 = vpop.eup %6003  ;;  %v449_v4 = vadd.f32 %v6603_v36, %v412_v49  ;;  %5493 = vmatprep.subr.bf16.mxu0 %v5853_v17 }
  0xe3   : > { %6017 = vrcp.f32 %v654_v13  ;;  %v6006_v1 = vpop.eup %6005  ;;  %v653_v32 = vadd.f32 1.0, %v6004_v58  ;;  %5462 = vmatmul.mubr.bf16.vlgmr.msra.gmra.mrb[16].mxu1 %v770_v10  ;;  %v452_v59 = vadd.f32 %v6603_v36, %v415_v20  ;;  %v451_v61 = vadd.f32 %v6603_v36, %v414_v48  ;;  %5494 = vmatpush3.bf16.msra.mxu0 %v5853_v17  ;;  %v5854_v36 = vld [vmem:[%s8602_s1 + $0x108] sm:$0xff]  }
  0xe4   : > { %v772_v7 = vpack.c.bf16 %v744_v5, %v743_v60  ;;  %v656_v44 = vadd.f32 1.0, %v6006_v1  ;;  %5465 = vmatprep.mubr.bf16.mxu1 %v771_v16  ;;  %5495 = vmatprep.subr.bf16.mxu0 %v5854_v36 }
  0xe5   : > { %v6008_v21 = vpop.eup %6007  ;;  %6019 = vrcp.f32 %v653_v32 }
  0xe6   : > { %v6010_v8 = vpop.eup %6009  ;;  %v746_v41 = vmul.f32 %v6008_v21, %v446_v18  ;;  %6021 = vrcp.f32 %v656_v44 }
  0xe7   : > { %v6012_v25 = vpop.eup %6011  ;;  %v745_v28 = vmul.f32 %v6010_v8, %v445_v9  ;;  %5418 = vmatmul.mubr.bf16.gmra.mrb[4].mxu0 %v772_v7  ;;  %v6966_v9 = vld [vmem:[%s8603_s2 + $0x3] ss:$0 sm:$0xff] }
  0xe8   : > { %v655_v35 = vadd.f32 1.0, %v6012_v25  ;;  %v6014_v30 = vpop.eup %6013  ;;  %5496 = vmatpush3.bf16.msra.mxu0 %v5854_v36 }
  0xe9   : > { %v773_v31 = vpack.c.bf16 %v746_v41, %v745_v28  ;;  %v748_v19 = vmul.f32 %v6014_v30, %v448_v47 }
  0xea   : > { %6023 = vrcp.f32 %v655_v35 }
  0xeb   : > { %5421 = vmatprep.mubr.bf16.mxu0 %v773_v31  ;;  %5466 = vmatmul.mubr.bf16.gmra.mrb[20].mxu1 %v772_v7 }
  0xec   : > { %v6016_v46 = vpop.eup %6015  ;;  %5469 = vmatprep.mubr.bf16.mxu1 %v773_v31 }
  0xed   : > { %v6018_v38 = vpop.eup %6017  ;;  %v747_v33 = vmul.f32 %v6016_v46, %v447_v56 }
  0xee   : > { %v750_v26 = vmul.f32 %v6018_v38, %v450_v23 }
  0xef   : > { %v774_v57 = vpack.c.bf16 %v748_v19, %v747_v33  ;;  %v6020_v15 = vpop.eup %6019 }
  0xf0   : > { %v6022_v51 = vpop.eup %6021  ;;  %v749_v53 = vmul.f32 %v6020_v15, %v449_v4 }
  0xf1   : > { %5422 = vmatmul.mubr.bf16.gmra.mrb[8].mxu0 %v774_v57  ;;  %v752_v62 = vmul.f32 %v6022_v51, %v452_v59 }
  0xf2   : > { %v775_v10 = vpack.c.bf16 %v750_v26, %v749_v53 }
  0xf3   : > { %5470 = vmatmul.mubr.bf16.gmra.mrb[24].mxu1 %v774_v57 }
  0xf4   : > { %v6024_v42 = vpop.eup %6023  ;;  %5425 = vmatprep.mubr.bf16.mxu0 %v775_v10  ;;  %5473 = vmatprep.mubr.bf16.mxu1 %v775_v10 }
  0xf5   : > { %v751_v55 = vmul.f32 %v6024_v42, %v451_v61 }
  0xf7   : > { %v776_v27 = vpack.c.bf16 %v752_v62, %v751_v55 }
  0xf9   : > { %5426 = vmatmul.mubr.bf16.gmra.mrb[12].mxu0 %v776_v27 }
  0xfb   : > { %5474 = vmatmul.mubr.bf16.gmra.mrb[28].mxu1 %v776_v27 }
  0xfc   : > { %5477 = vmatprep.mubr.bf16.mxu1 %v6691_v14  ;;  %v5855_v14 = vld [vmem:[%s8602_s1 + $0x110] sm:$0xff]  }
  0xfd   : > { %5497 = vmatprep.subr.bf16.mxu0 %v5855_v14 }
  0xfe   : > { %5498 = vmatpush3.bf16.msra.mxu0 %v5855_v14 }
 0x103   : > { %5478 = vmatmul.mubr.bf16.gmra.mrb[32].mxu1 %v6699_v52  ;;  %v5856_v52 = vld [vmem:[%s8602_s1 + $0x118] sm:$0xff]  }
 0x104   : > { %5481 = vmatprep.mubr.bf16.mxu1 %v6738_v6  ;;  %5499 = vmatprep.subr.bf16.mxu0 %v5856_v52  ;;  %v5857_v6 = vld [vmem:[%s8602_s1 + $0x120] sm:$0xff]  }
 0x105   : > { %5500 = vmatpush3.bf16.msra.mxu0 %v5856_v52 }
 0x106   : > { %5501 = vmatprep.subr.bf16.mxu0 %v5857_v6 }
 0x109   : > { %5502 = vmatpush3.bf16.msra.mxu0 %v5857_v6 }
 0x10b   : > { %5482 = vmatmul.mubr.bf16.gmra.mrb[36].mxu1 %v6768_v63  ;;  %v5858_v63 = vld [vmem:[%s8602_s1 + $0x128] sm:$0xff]  }
 0x10c   : > { %5485 = vmatprep.mubr.bf16.mxu1 %v6788_v3  ;;  %5503 = vmatprep.subr.bf16.mxu0 %v5858_v63  ;;  %v5859_v3 = vld [vmem:[%s8602_s1 + $0x130] sm:$0xff]  }
 0x10d   : > { %5504 = vmatpush3.bf16.msra.mxu0 %v5858_v63 }
 0x10e   : > { %5505 = vmatprep.subr.bf16.mxu0 %v5859_v3 }
 0x111   : > { %5506 = vmatpush3.bf16.msra.mxu0 %v5859_v3 }
 0x113   : > { %5486 = vmatmul.mubr.bf16.gmra.mrb[40].mxu1 %v6825_v34  ;;  %v5860_v34 = vld [vmem:[%s8602_s1 + $0x138] sm:$0xff]  }
 0x114   : > { %5489 = vmatprep.mubr.bf16.mxu1 %v6847_v22  ;;  %5507 = vmatprep.subr.bf16.mxu0 %v5860_v34 }
 0x115   : > { %5508 = vmatpush3.bf16.msra.mxu0 %v5860_v34 }
 0x11b   : > { %5490 = vmatmul.mubr.bf16.gmra.mrb[44].mxu1 %v6864_v39 }
 0x18f   : > { %v6927_v54 = vpop.f32.mrb[0].mxu1 }
 0x190   : > { %v6929_v22 = vpop.f32.mrb[1].mxu1 }
 0x191   : > { %v6931_v39 = vpop.f32.mrb[2].mxu1 }
 0x192   : > { %v6933_v2 = vpop.f32.mrb[3].mxu1 }
 0x19a   : > { %v6935_v11 = vpop.f32.mrb[4].mxu1 }
 0x19b   : > { %v6937_v50 = vpop.f32.mrb[5].mxu1 }
 0x19c   : > { %v6939_v16 = vpop.f32.mrb[6].mxu1 }
 0x19d   : > { %v6941_v5 = vpop.f32.mrb[7].mxu1 }
 0x1a5   : > { %v6943_v40 = vpop.f32.mrb[8].mxu1 }
 0x1a6   : > { %v6945_v12 = vpop.f32.mrb[9].mxu1 }
 0x1a7   : > { %v6947_v13 = vpop.f32.mrb[10].mxu1 }
 0x1a8   : > { %v6949_v60 = vpop.f32.mrb[11].mxu1 }
 0x1ae   : > { %v6951_v58 = vpop.f32.mrb[12].mxu1 }
 0x1af   : > { %v6953_v1 = vpop.f32.mrb[13].mxu1 }
 0x1b0   : > { %v6955_v18 = vpop.f32.mrb[14].mxu1 }
 0x1b1   : > { %v6957_v32 = vpop.f32.mrb[15].mxu1 }
 0x1b2   : > { %v6959_v7 = vpop.f32.mrb[0].mxu0 }
 0x1b3   : > { %v6961_v21 = vpop.f32.mrb[1].mxu0 }
 0x1b4   : > { %v6968_v24 = vpop.f32.mrb[2].mxu0 }
 0x1b5   : > { %v6970_v44 = vpop.f32.mrb[3].mxu0 }
 0x1b6   : > { %v5463_v8 = vpop.f32.mrb[16].mxu1 }
 0x1b7   : > { %v1129_v41 = vadd.f32 %v5463_v8, %v6966_v9  ;;  %v1120_v25 = vpop.f32.mrb[17].mxu1 }
 0x1b8   : > { %v1121_v29 = vadd.f32 %v6966_v9, %v1120_v25  ;;  %v5464_v28 = vpop.f32.mrb[18].mxu1 }
 0x1b9   : > { %v4723_v35 = vmul.f32 -1.442695, %v1129_v41  ;;  %v1132_v30 = vadd.f32 %v5464_v28, %v6966_v9  ;;  %v1123_v47 = vpop.f32.mrb[19].mxu1 }
 0x1ba   : > { %v4721_v37 = vmul.f32 -1.442695, %v1121_v29  ;;  %v1124_v31 = vadd.f32 %v6966_v9, %v1123_v47  ;;  %v6976_v56 = vpop.f32.mrb[4].mxu0 }
 0x1bb   : > { %6025 = vpow2.f32 %v4723_v35  ;;  %v4724_v49 = vmul.f32 -1.442695, %v1132_v30  ;;  %v6978_v19 = vpop.f32.mrb[5].mxu0 }
 0x1bc   : > { %6027 = vpow2.f32 %v4721_v37  ;;  %v4722_v46 = vmul.f32 -1.442695, %v1124_v31  ;;  %v6980_v38 = vpop.f32.mrb[6].mxu0 }
 0x1bd   : > { %6029 = vpow2.f32 %v4724_v49  ;;  %v6982_v23 = vpop.f32.mrb[7].mxu0 }
 0x1be   : > { %6031 = vpow2.f32 %v4722_v46  ;;  %v5467_v20 = vpop.f32.mrb[20].mxu1 }
 0x1bf   : > { %v1145_v33 = vadd.f32 %v5467_v20, %v6966_v9  ;;  %v1136_v4 = vpop.f32.mrb[21].mxu1 }
 0x1c0   : > { %v1137_v48 = vadd.f32 %v6966_v9, %v1136_v4  ;;  %v5468_v57 = vpop.f32.mrb[22].mxu1 }
 0x1c1   : > { %v4727_v26 = vmul.f32 -1.442695, %v1145_v33  ;;  %v1148_v15 = vadd.f32 %v5468_v57, %v6966_v9  ;;  %v1139_v51 = vpop.f32.mrb[23].mxu1 }
 0x1c2   : > { %v4725_v59 = vmul.f32 -1.442695, %v1137_v48  ;;  %v1140_v53 = vadd.f32 %v6966_v9, %v1139_v51 }
 0x1c3   : > { %6033 = vpow2.f32 %v4727_v26  ;;  %v4728_v61 = vmul.f32 -1.442695, %v1148_v15 }
 0x1c4   : > { %v6988_v10 = vpop.f32.mrb[8].mxu0  ;;  %6035 = vpow2.f32 %v4725_v59  ;;  %v4726_v62 = vmul.f32 -1.442695, %v1140_v53  ;;  %v7011_v53 = vld [vmem:[%s8603_s2 + $0x2] ss:$0 sm:$0xff] }
 0x1c5   : > { %v6990_v42 = vpop.f32.mrb[9].mxu0  ;;  %v6026_v55 = vpop.eup %6025  ;;  %6037 = vpow2.f32 %v4728_v61 }
 0x1c6   : > { %v6992_v27 = vpop.f32.mrb[10].mxu0  ;;  %v6028_v17 = vpop.eup %6027  ;;  %v1345_v36 = vadd.f32 1.0, %v6026_v55  ;;  %6039 = vpow2.f32 %v4726_v62 }
 0x1c7   : > { %v5471_v14 = vpop.f32.mrb[24].mxu1  ;;  %v6994_v52 = vpop.f32.mrb[11].mxu0  ;;  %v1343_v63 = vadd.f32 1.0, %v6028_v17 }
 0x1c8   : > { %v6030_v6 = vpop.eup %6029  ;;  %v1161_v3 = vadd.f32 %v5471_v14, %v6966_v9  ;;  %v1152_v34 = vpop.f32.mrb[25].mxu1  ;;  %6041 = vrcp.f32 %v1345_v36  ;;  %v898_v36 = vadd.f32 %v6959_v7, %v7011_v53 }
 0x1c9   : > { %v6032_v8 = vpop.eup %6031  ;;  %v1346_v41 = vadd.f32 1.0, %v6030_v6  ;;  %v1153_v25 = vadd.f32 %v6966_v9, %v1152_v34  ;;  %v5472_v29 = vpop.f32.mrb[26].mxu1  ;;  %6043 = vrcp.f32 %v1343_v63 }
 0x1ca   : > { %v1344_v28 = vadd.f32 1.0, %v6032_v8  ;;  %v4731_v35 = vmul.f32 -1.442695, %v1161_v3  ;;  %v1164_v30 = vadd.f32 %v5472_v29, %v6966_v9  ;;  %v1155_v47 = vpop.f32.mrb[27].mxu1  ;;  %v890_v29 = vadd.f32 %v7011_v53, %v6961_v21 }
 0x1cb   : > { %6045 = vrcp.f32 %v1346_v41  ;;  %v4729_v37 = vmul.f32 -1.442695, %v1153_v25  ;;  %v1156_v31 = vadd.f32 %v6966_v9, %v1155_v47 }
 0x1cc   : > { %6047 = vrcp.f32 %v1344_v28  ;;  %v4732_v49 = vmul.f32 -1.442695, %v1164_v30  ;;  %v7000_v46 = vpop.f32.mrb[12].mxu0  ;;  %v901_v30 = vadd.f32 %v6968_v24, %v7011_v53 }
 0x1cd   : > { %6049 = vpow2.f32 %v4731_v35  ;;  %v4730_v20 = vmul.f32 -1.442695, %v1156_v31  ;;  %v7002_v33 = vpop.f32.mrb[13].mxu0  ;;  %v6034_v4 = vpop.eup %6033 }
 0x1ce   : > { %6051 = vpow2.f32 %v4729_v37  ;;  %v7004_v48 = vpop.f32.mrb[14].mxu0  ;;  %v6036_v57 = vpop.eup %6035  ;;  %v1349_v26 = vadd.f32 1.0, %v6034_v4 }
 0x1cf   : > { %6053 = vpow2.f32 %v4732_v49  ;;  %v5475_v15 = vpop.f32.mrb[28].mxu1  ;;  %v7006_v51 = vpop.f32.mrb[15].mxu0  ;;  %v1347_v61 = vadd.f32 1.0, %v6036_v57  ;;  %v893_v49 = vadd.f32 %v7011_v53, %v6970_v44 }
 0x1d0   : > { %v6038_v59 = vpop.eup %6037  ;;  %6055 = vpow2.f32 %v4730_v20  ;;  %v1177_v62 = vadd.f32 %v5475_v15, %v6966_v9  ;;  %v1168_v55 = vpop.f32.mrb[29].mxu1  ;;  %v914_v15 = vadd.f32 %v6976_v56, %v7011_v53 }
 0x1d1   : > { %v6040_v17 = vpop.eup %6039  ;;  %6057 = vrcp.f32 %v1349_v26  ;;  %v1350_v14 = vadd.f32 1.0, %v6038_v59  ;;  %v1169_v6 = vadd.f32 %v6966_v9, %v1168_v55  ;;  %v5476_v63 = vpop.f32.mrb[30].mxu1 }
 0x1d2   : > { %6059 = vrcp.f32 %v1347_v61  ;;  %v1348_v3 = vadd.f32 1.0, %v6040_v17  ;;  %v4735_v34 = vmul.f32 -1.442695, %v1177_v62  ;;  %v1180_v8 = vadd.f32 %v5476_v63, %v6966_v9  ;;  %v1171_v41 = vpop.f32.mrb[31].mxu1  ;;  %v6042_v25 = vpop.eup %6041 }
 0x1d3   : > { %6061 = vrcp.f32 %v1350_v14  ;;  %v4733_v28 = vmul.f32 -1.442695, %v1169_v6  ;;  %v1172_v35 = vadd.f32 %v6966_v9, %v1171_v41  ;;  %v6044_v7 = vpop.eup %6043  ;;  %v1441_v37 = vmul.f32 %v6042_v25, %v898_v36 }
 0x1d4   : > { %6063 = vrcp.f32 %v1348_v3  ;;  %v4736_v47 = vmul.f32 -1.442695, %v1180_v8  ;;  %v1439_v4 = vmul.f32 %v6044_v7, %v890_v29  ;;  %v906_v14 = vadd.f32 %v7011_v53, %v6978_v19 }
 0x1d5   : > { %v6046_v31 = vpop.eup %6045  ;;  %6065 = vpow2.f32 %v4735_v34  ;;  %v4734_v20 = vmul.f32 -1.442695, %v1172_v35 }
 0x1d6   : > { %v6048_v57 = vpop.eup %6047  ;;  %6067 = vpow2.f32 %v4733_v28  ;;  %v1442_v21 = vmul.f32 %v6046_v31, %v901_v30  ;;  %v5479_v59 = vpop.f32.mrb[32].mxu1 }
 0x1d7   : > { %v6050_v26 = vpop.eup %6049  ;;  %6069 = vpow2.f32 %v4736_v47  ;;  %v1440_v24 = vmul.f32 %v6048_v57, %v893_v49  ;;  %v1193_v55 = vadd.f32 %v5479_v59, %v6966_v9  ;;  %v1184_v17 = vpop.f32.mrb[33].mxu1  ;;  %v917_v47 = vadd.f32 %v6980_v38, %v7011_v53 }
 0x1d8   : > { %v6052_v61 = vpop.eup %6051  ;;  %v1353_v62 = vadd.f32 1.0, %v6050_v26  ;;  %6071 = vpow2.f32 %v4734_v20  ;;  %v1472_v44 = vpack.c.bf16 %v1442_v21, %v1441_v37  ;;  %v1185_v63 = vadd.f32 %v6966_v9, %v1184_v17  ;;  %v5480_v3 = vpop.f32.mrb[34].mxu1 }
 0x1d9   : > { %v6054_v36 = vpop.eup %6053  ;;  %v1351_v6 = vadd.f32 1.0, %v6052_v61  ;;  %v1471_v34 = vpack.c.bf16 %v1440_v24, %v1439_v4  ;;  %v4739_v41 = vmul.f32 -1.442695, %v1193_v55  ;;  %v1196_v25 = vadd.f32 %v5480_v3, %v6966_v9  ;;  %v1187_v29 = vpop.f32.mrb[35].mxu1 }
 0x1da   : > { %v6056_v56 = vpop.eup %6055  ;;  %6073 = vrcp.f32 %v1353_v62  ;;  %v1354_v8 = vadd.f32 1.0, %v6054_v36  ;;  %v4737_v7 = vmul.f32 -1.442695, %v1185_v63  ;;  %v1188_v30 = vadd.f32 %v6966_v9, %v1187_v29 }
 0x1db   : > { %v6058_v28 = vpop.eup %6057  ;;  %6075 = vrcp.f32 %v1351_v6  ;;  %v1352_v35 = vadd.f32 1.0, %v6056_v56  ;;  %5509 = vmatprep.mubr.bf16.mxu0 %v1471_v34  ;;  %v4740_v37 = vmul.f32 -1.442695, %v1196_v25  ;;  %v909_v20 = vadd.f32 %v7011_v53, %v6982_v23 }
 0x1dc   : > { %v6060_v19 = vpop.eup %6059  ;;  %6077 = vrcp.f32 %v1354_v8  ;;  %5510 = vmatmul.mubr.bf16.vlgmr.msra.gmra.mrb[16].mxu0 %v1472_v44  ;;  %v1445_v31 = vmul.f32 %v6058_v28, %v914_v15  ;;  %v4738_v4 = vmul.f32 -1.442695, %v1188_v30  ;;  %v930_v24 = vadd.f32 %v6988_v10, %v7011_v53 }
 0x1dd   : > { %v6062_v49 = vpop.eup %6061  ;;  %6079 = vrcp.f32 %v1352_v35  ;;  %v1443_v57 = vmul.f32 %v6060_v19, %v906_v14  ;;  %v922_v35 = vadd.f32 %v7011_v53, %v6990_v42  ;;  %v933_v19 = vadd.f32 %v6992_v27, %v7011_v53 }
 0x1de   : > { %v6064_v21 = vpop.eup %6063  ;;  %6081 = vpow2.f32 %v4739_v41  ;;  %v1446_v26 = vmul.f32 %v6062_v49, %v917_v47  ;;  %v5483_v38 = vpop.f32.mrb[36].mxu1  ;;  %v925_v49 = vadd.f32 %v7011_v53, %v6994_v52 }
 0x1df   : > { %v6066_v59 = vpop.eup %6065  ;;  %6083 = vpow2.f32 %v4737_v7  ;;  %v1444_v61 = vmul.f32 %v6064_v21, %v909_v20  ;;  %v1209_v15 = vadd.f32 %v5483_v38, %v6966_v9  ;;  %v1200_v17 = vpop.f32.mrb[37].mxu1 }
 0x1e0   : > { %v6068_v62 = vpop.eup %6067  ;;  %v1357_v55 = vadd.f32 1.0, %v6066_v59  ;;  %6085 = vpow2.f32 %v4740_v37  ;;  %v1474_v23 = vpack.c.bf16 %v1446_v26, %v1445_v31  ;;  %v1201_v14 = vadd.f32 %v6966_v9, %v1200_v17  ;;  %v5484_v6 = vpop.f32.mrb[38].mxu1 }
 0x1e1   : > { %v6070_v44 = vpop.eup %6069  ;;  %v1355_v36 = vadd.f32 1.0, %v6068_v62  ;;  %6087 = vpow2.f32 %v4738_v4  ;;  %v1473_v63 = vpack.c.bf16 %v1444_v61, %v1443_v57  ;;  %v4743_v34 = vmul.f32 -1.442695, %v1209_v15  ;;  %v1203_v8 = vpop.f32.mrb[39].mxu1 }
 0x1e2   : > { %v6072_v3 = vpop.eup %6071  ;;  %6089 = vrcp.f32 %v1357_v55  ;;  %v1358_v10 = vadd.f32 1.0, %v6070_v44  ;;  %v1212_v56 = vadd.f32 %v5484_v6, %v6966_v9  ;;  %v4741_v25 = vmul.f32 -1.442695, %v1201_v14 }
 0x1e3   : > { %6091 = vrcp.f32 %v1355_v36  ;;  %v1356_v41 = vadd.f32 1.0, %v6072_v3  ;;  %v1204_v29 = vadd.f32 %v6966_v9, %v1203_v8  ;;  %5513 = vmatprep.mubr.bf16.mxu0 %v1473_v63  ;;  %v946_v15 = vadd.f32 %v7000_v46, %v7011_v53 }
 0x1e4   : > { %v6074_v28 = vpop.eup %6073  ;;  %6093 = vrcp.f32 %v1358_v10  ;;  %v4744_v7 = vmul.f32 -1.442695, %v1212_v56  ;;  %5514 = vmatmul.mubr.bf16.gmra.mrb[20].mxu0 %v1474_v23 }
 0x1e5   : > { %v6076_v30 = vpop.eup %6075  ;;  %6095 = vrcp.f32 %v1356_v41  ;;  %v4742_v47 = vmul.f32 -1.442695, %v1204_v29  ;;  %v1449_v37 = vmul.f32 %v6074_v28, %v930_v24  ;;  %v949_v41 = vadd.f32 %v7004_v48, %v7011_v53 }
 0x1e6   : > { %v6078_v31 = vpop.eup %6077  ;;  %6097 = vpow2.f32 %v4743_v34  ;;  %v1447_v20 = vmul.f32 %v6076_v30, %v922_v35  ;;  %v5487_v57 = vpop.f32.mrb[40].mxu1  ;;  %v938_v34 = vadd.f32 %v7011_v53, %v7002_v33  ;;  %v941_v35 = vadd.f32 %v7011_v53, %v7006_v51 }
 0x1e7   : > { %v6080_v4 = vpop.eup %6079  ;;  %6099 = vpow2.f32 %v4741_v25  ;;  %v1450_v42 = vmul.f32 %v6078_v31, %v933_v19  ;;  %v1225_v26 = vadd.f32 %v5487_v57, %v6966_v9  ;;  %v1216_v59 = vpop.f32.mrb[41].mxu1 }
 0x1e8   : > { %v6082_v21 = vpop.eup %6081  ;;  %6101 = vpow2.f32 %v4744_v7  ;;  %v1448_v38 = vmul.f32 %v6080_v4, %v925_v49  ;;  %v1217_v24 = vadd.f32 %v6966_v9, %v1216_v59  ;;  %v5488_v62 = vpop.f32.mrb[42].mxu1 }
 0x1e9   : > { %v6084_v27 = vpop.eup %6083  ;;  %v1361_v61 = vadd.f32 1.0, %v6082_v21  ;;  %6103 = vpow2.f32 %v4742_v47  ;;  %v1476_v55 = vpack.c.bf16 %v1450_v42, %v1449_v37  ;;  %v1228_v23 = vadd.f32 %v5488_v62, %v6966_v9  ;;  %v1219_v44 = vpop.f32.mrb[43].mxu1 }
 0x1ea   : > { %v6086_v52 = vpop.eup %6085  ;;  %v1359_v17 = vadd.f32 1.0, %v6084_v27  ;;  %v1475_v36 = vpack.c.bf16 %v1448_v38, %v1447_v20  ;;  %v4747_v63 = vmul.f32 -1.442695, %v1225_v26  ;;  %v1220_v3 = vadd.f32 %v6966_v9, %v1219_v44 }
 0x1eb   : > { %v6088_v14 = vpop.eup %6087  ;;  %6105 = vrcp.f32 %v1361_v61  ;;  %v1362_v6 = vadd.f32 1.0, %v6086_v52  ;;  %v4745_v8 = vmul.f32 -1.442695, %v1217_v24  ;;  %v4748_v25 = vmul.f32 -1.442695, %v1228_v23 }
 0x1ec   : > { %v6090_v10 = vpop.eup %6089  ;;  %6107 = vrcp.f32 %v1359_v17  ;;  %v1360_v56 = vadd.f32 1.0, %v6088_v14  ;;  %5517 = vmatprep.mubr.bf16.mxu0 %v1475_v36  ;;  %v4746_v7 = vmul.f32 -1.442695, %v1220_v3  ;;  %v962_v26 = vadd.f32 %v6927_v54, %v7011_v53 }
 0x1ed   : > { %v6092_v46 = vpop.eup %6091  ;;  %6109 = vrcp.f32 %v1362_v6  ;;  %5518 = vmatmul.mubr.bf16.gmra.mrb[24].mxu0 %v1476_v55  ;;  %v1453_v29 = vmul.f32 %v6090_v10, %v946_v15  ;;  %v954_v44 = vadd.f32 %v7011_v53, %v6929_v22  ;;  %v965_v14 = vadd.f32 %v6931_v39, %v7011_v53 }
 0x1ee   : > { %v6094_v28 = vpop.eup %6093  ;;  %6111 = vrcp.f32 %v1360_v56  ;;  %v1451_v30 = vmul.f32 %v6092_v46, %v938_v34  ;;  %v5491_v19 = vpop.f32.mrb[44].mxu1 }
 0x1ef   : > { %v6096_v33 = vpop.eup %6095  ;;  %6113 = vpow2.f32 %v4747_v63  ;;  %v1454_v47 = vmul.f32 %v6094_v28, %v949_v41  ;;  %v1241_v31 = vadd.f32 %v5491_v19, %v6966_v9  ;;  %v1232_v48 = vpop.f32.mrb[45].mxu1 }
 0x1f0   : > { %v6098_v37 = vpop.eup %6097  ;;  %6115 = vpow2.f32 %v4745_v8  ;;  %v1452_v49 = vmul.f32 %v6096_v33, %v941_v35  ;;  %v1233_v57 = vadd.f32 %v6966_v9, %v1232_v48  ;;  %v5492_v42 = vpop.f32.mrb[46].mxu1  ;;  %v970_v33 = vadd.f32 %v7011_v53, %v6937_v50 }
 0x1f1   : > { %v6100_v20 = vpop.eup %6099  ;;  %v1365_v4 = vadd.f32 1.0, %v6098_v37  ;;  %6117 = vpow2.f32 %v4748_v25  ;;  %v1478_v51 = vpack.c.bf16 %v1454_v47, %v1453_v29  ;;  %v1244_v38 = vadd.f32 %v5492_v42, %v6966_v9  ;;  %v1235_v27 = vpop.f32.mrb[47].mxu1 }
 0x1f2   : > { %v6102_v21 = vpop.eup %6101  ;;  %v1363_v59 = vadd.f32 1.0, %v6100_v20  ;;  %6119 = vpow2.f32 %v4746_v7  ;;  %v4751_v62 = vmul.f32 -1.442695, %v1241_v31  ;;  %v1236_v55 = vadd.f32 %v6966_v9, %v1235_v27 }
 0x1f3   : > { %v6104_v61 = vpop.eup %6103  ;;  %6121 = vrcp.f32 %v1365_v4  ;;  %v1366_v24 = vadd.f32 1.0, %v6102_v21  ;;  %v4749_v15 = vmul.f32 -1.442695, %v1233_v57  ;;  %v1477_v17 = vpack.c.bf16 %v1452_v49, %v1451_v30 }
 0x1f4   : > { %6123 = vrcp.f32 %v1363_v59  ;;  %v1364_v52 = vadd.f32 1.0, %v6104_v61  ;;  %v4752_v54 = vmul.f32 -1.442695, %v1244_v38  ;;  %v4750_v6 = vmul.f32 -1.442695, %v1236_v55 }
 0x1f5   : > { %v6106_v23 = vpop.eup %6105  ;;  %6125 = vrcp.f32 %v1366_v24  ;;  %5521 = vmatprep.mubr.bf16.mxu0 %v1477_v17  ;;  %v957_v9 = vadd.f32 %v7011_v53, %v6933_v2  ;;  %v978_v2 = vadd.f32 %v6935_v11, %v7011_v53  ;;  %v981_v37 = vadd.f32 %v6939_v16, %v7011_v53 }
 0x1f6   : > { %v6108_v36 = vpop.eup %6107  ;;  %6127 = vrcp.f32 %v1364_v52  ;;  %v1457_v63 = vmul.f32 %v6106_v23, %v962_v26  ;;  %5522 = vmatmul.mubr.bf16.gmra.mrb[28].mxu0 %v1478_v51  ;;  %v973_v49 = vadd.f32 %v7011_v53, %v6941_v5  ;;  %v994_v61 = vadd.f32 %v6943_v40, %v7011_v53 }
 0x1f7   : > { %v6110_v3 = vpop.eup %6109  ;;  %6129 = vpow2.f32 %v4751_v62  ;;  %v1455_v10 = vmul.f32 %v6108_v36, %v954_v44  ;;  %v986_v62 = vadd.f32 %v7011_v53, %v6945_v12  ;;  %v997_v52 = vadd.f32 %v6947_v13, %v7011_v53 }
 0x1f8   : > { %v6112_v34 = vpop.eup %6111  ;;  %6131 = vpow2.f32 %v4749_v15  ;;  %v1458_v22 = vmul.f32 %v6110_v3, %v965_v14  ;;  %v989_v23 = vadd.f32 %v7011_v53, %v6949_v60  ;;  %v1010_v12 = vadd.f32 %v6951_v58, %v7011_v53 }
 0x1f9   : > { %v6114_v56 = vpop.eup %6113  ;;  %6133 = vpow2.f32 %v4752_v54  ;;  %v1456_v8 = vmul.f32 %v6112_v34, %v957_v9  ;;  %v1002_v13 = vadd.f32 %v7011_v53, %v6953_v1  ;;  %v1013_v9 = vadd.f32 %v6955_v18, %v7011_v53  ;;  %v7101_v18 = vld [vmem:[%s8603_s2 + $0x4] ss:$0 sm:$0xff] }
 0x1fa   : > { %v6116_v46 = vpop.eup %6115  ;;  %v1369_v41 = vadd.f32 1.0, %v6114_v56  ;;  %6135 = vpow2.f32 %v4750_v6  ;;  %v1480_v39 = vpack.c.bf16 %v1458_v22, %v1457_v63  ;;  %v1005_v34 = vadd.f32 %v7011_v53, %v6957_v32 }
 0x1fb   : > { %v6118_v25 = vpop.eup %6117  ;;  %v1367_v29 = vadd.f32 1.0, %v6116_v46  ;;  %v1479_v28 = vpack.c.bf16 %v1456_v8, %v1455_v10  ;;  %v8615_v1 = vmov 2  }
 0x1fc   : > { %v6120_v35 = vpop.eup %6119  ;;  %6137 = vrcp.f32 %v1369_v41  ;;  %v1370_v7 = vadd.f32 1.0, %v6118_v25  ;;  %5718 = vset.pattern.permute.xlu1 %v8615_v1 }
 0x1fd   : > { %v6122_v30 = vpop.eup %6121  ;;  %6139 = vrcp.f32 %v1367_v29  ;;  %v1368_v19 = vadd.f32 1.0, %v6120_v35  ;;  %5525 = vmatprep.mubr.bf16.mxu0 %v1479_v28  ;;  %v8607_v28 = vmov 1   ;;  %v8609_v35 = vmov 3  }
 0x1fe   : > { %v6124_v47 = vpop.eup %6123  ;;  %6141 = vrcp.f32 %v1370_v7  ;;  %v1461_v31 = vmul.f32 %v6122_v30, %v978_v2  ;;  %5526 = vmatmul.mubr.bf16.gmra.mrb[32].mxu0 %v1480_v39 }
 0x1ff   : > { %v6126_v48 = vpop.eup %6125  ;;  %6143 = vrcp.f32 %v1368_v19  ;;  %v1459_v11 = vmul.f32 %v6124_v47, %v970_v33 }
 0x200   : > { %v6128_v20 = vpop.eup %6127  ;;  %v1462_v4 = vmul.f32 %v6126_v48, %v981_v37 }
 0x201   : > { %v6130_v57 = vpop.eup %6129  ;;  %v1460_v50 = vmul.f32 %v6128_v20, %v973_v49 }
 0x202   : > { %v6132_v42 = vpop.eup %6131  ;;  %v1373_v51 = vadd.f32 1.0, %v6130_v57  ;;  %v1482_v21 = vpack.c.bf16 %v1462_v4, %v1461_v31 }
 0x203   : > { %v6134_v26 = vpop.eup %6133  ;;  %v1371_v59 = vadd.f32 1.0, %v6132_v42  ;;  %v1481_v38 = vpack.c.bf16 %v1460_v50, %v1459_v11 }
 0x204   : > { %v6136_v16 = vpop.eup %6135  ;;  %6145 = vrcp.f32 %v1373_v51  ;;  %v1374_v27 = vadd.f32 1.0, %v6134_v26 }
 0x205   : > { %6147 = vrcp.f32 %v1371_v59  ;;  %v1372_v5 = vadd.f32 1.0, %v6136_v16  ;;  %5529 = vmatprep.mubr.bf16.mxu0 %v1481_v38 }
 0x206   : > { %v6138_v24 = vpop.eup %6137  ;;  %6149 = vrcp.f32 %v1374_v27  ;;  %5530 = vmatmul.mubr.bf16.gmra.mrb[36].mxu0 %v1482_v21 }
 0x207   : > { %v6140_v55 = vpop.eup %6139  ;;  %6151 = vrcp.f32 %v1372_v5  ;;  %v1465_v15 = vmul.f32 %v6138_v24, %v994_v61 }
 0x208   : > { %v6142_v17 = vpop.eup %6141  ;;  %v1463_v40 = vmul.f32 %v6140_v55, %v986_v62 }
 0x209   : > { %v6144_v44 = vpop.eup %6143  ;;  %v1466_v54 = vmul.f32 %v6142_v17, %v997_v52 }
 0x20a   : > { %v1464_v36 = vmul.f32 %v6144_v44, %v989_v23 }
 0x20b   : > { %v1484_v14 = vpack.c.bf16 %v1466_v54, %v1465_v15 }
 0x20c   : > { %v1483_v6 = vpack.c.bf16 %v1464_v36, %v1463_v40 }
 0x20e   : > { %v6146_v63 = vpop.eup %6145  ;;  %5533 = vmatprep.mubr.bf16.mxu0 %v1483_v6 }
 0x20f   : > { %v6148_v3 = vpop.eup %6147  ;;  %5534 = vmatmul.mubr.bf16.gmra.mrb[40].mxu0 %v1484_v14  ;;  %v1469_v60 = vmul.f32 %v6146_v63, %v1010_v12 }
 0x210   : > { %v6150_v10 = vpop.eup %6149  ;;  %v1467_v22 = vmul.f32 %v6148_v3, %v1002_v13 }
 0x211   : > { %v6152_v56 = vpop.eup %6151  ;;  %v1470_v8 = vmul.f32 %v6150_v10, %v1013_v9 }
 0x212   : > { %v1468_v46 = vmul.f32 %v6152_v56, %v1005_v34 }
 0x213   : > { %v1486_v58 = vpack.c.bf16 %v1470_v8, %v1469_v60 }
 0x214   : > { %v1485_v41 = vpack.c.bf16 %v1468_v46, %v1467_v22 }
 0x216   : > { %5537 = vmatprep.mubr.bf16.mxu0 %v1485_v41 }
 0x217   : > { %5538 = vmatmul.mubr.bf16.gmra.mrb[44].mxu0 %v1486_v58 }
 0x2af   : > { %v5511_v39 = vpop.f32.mrb[16].mxu0 }
 0x2b0   : > { %v1600_v25 = vadd.f32 %v5511_v39, %v7101_v18  ;;  %v1591_v32 = vpop.f32.mrb[17].mxu0 }
 0x2b1   : > { %v5512_v53 = vpop.f32.mrb[18].mxu0  ;;  %v1592_v33 = vadd.f32 %v7101_v18, %v1591_v32 }
 0x2b2   : > { %1750 = vperm.xlu0 %5716, %v1600_v25   ;;  %1843 = vperm.xlu1 %5718, %v1600_v25   ;;  %v1594_v29 = vpop.f32.mrb[19].mxu0  ;;  %v1603_v4 = vadd.f32 %v5512_v53, %v7101_v18 }
 0x2b3   : > { %v1595_v57 = vadd.f32 %v7101_v18, %v1594_v29 }
 0x2b6   : > { %5720 = vset.pattern.permute.xlu0 %v8607_v28  ;;  %5719 = vset.pattern.permute.xlu1 %v8609_v35 }
 0x2b7   : > { %1799 = vperm.xlu0 %5720, %v1600_v25   ;;  %1887 = vperm.xlu1 %5719, %v1600_v25   ;;  %v5515_v2 = vpop.f32.mrb[20].mxu0 }
 0x2b8   : > { %v1607_v7 = vpop.f32.mrb[21].mxu0  ;;  %v1616_v27 = vadd.f32 %v5515_v2, %v7101_v18 }
 0x2b9   : > { %v5516_v30 = vpop.f32.mrb[22].mxu0  ;;  %v1608_v40 = vadd.f32 %v7101_v18, %v1607_v7 }
 0x2ba   : > { %v7108_v19 = vadd.f32 %v5516_v30, %v7101_v18  ;;  %v7110_v47 = vpop.f32.mrb[23].mxu0 }
 0x2bb   : > { %5721 = vset.pattern.permute.xlu0 %v8615_v1  ;;  %5722 = vset.pattern.permute.xlu1 %v8611_v0  ;;  %v1611_v3 = vadd.f32 %v7101_v18, %v7110_v47 }
 0x2bc   : > { %1740 = vperm.xlu1 %5722, %v1592_v33   ;;  %1835 = vperm.xlu0 %5721, %v1592_v33  }
 0x2c0   : > { %v7114_v37 = vpop.f32.mrb[24].mxu0  ;;  %5724 = vset.pattern.permute.xlu1 %v8607_v28  ;;  %5723 = vset.pattern.permute.xlu0 %v8609_v35 }
 0x2c1   : > { %v1623_v31 = vpop.f32.mrb[25].mxu0  ;;  %1791 = vperm.xlu1 %5724, %v1592_v33   ;;  %1879 = vperm.xlu0 %5723, %v1592_v33   ;;  %v1632_v25 = vadd.f32 %v7114_v37, %v7101_v18 }
 0x2c2   : > { %v7119_v48 = vadd.f32 %v7101_v18, %v1623_v31  ;;  %v5520_v49 = vpop.f32.mrb[26].mxu0 }
 0x2c3   : > { %v7122_v11 = vadd.f32 %v5520_v49, %v7101_v18  ;;  %v1626_v20 = vpop.f32.mrb[27].mxu0 }
 0x2c4   : > { %v7127_v50 = vadd.f32 %v7101_v18, %v1626_v20 }
 0x2c5   : > { %5725 = vset.pattern.permute.xlu1 %v8615_v1  ;;  %5730 = vset.pattern.permute.xlu0 %v8611_v0 }
 0x2c6   : > { %1847 = vperm.xlu1 %5725, %v1603_v4   ;;  %1745 = vperm.xlu0 %5730, %v1595_v57  }
 0x2c9   : > { %v5523_v42 = vpop.f32.mrb[28].mxu0 }
 0x2ca   : > { %5726 = vset.pattern.permute.xlu1 %v8611_v0  ;;  %5732 = vset.pattern.permute.xlu0 %v8607_v28  ;;  %v7134_v51 = vadd.f32 %v5523_v42, %v7101_v18  ;;  %v1639_v21 = vpop.f32.mrb[29].mxu0 }
 0x2cb   : > { %1755 = vperm.xlu1 %5726, %v1603_v4   ;;  %1795 = vperm.xlu0 %5732, %v1595_v57   ;;  %v7137_v26 = vadd.f32 %v7101_v18, %v1639_v21  ;;  %v5524_v59 = vpop.f32.mrb[30].mxu0  ;;  %v8606_v21 = vsub.s32 2, %v6538_v43 }
 0x2cc   : > { %v7140_v38 = vadd.f32 %v5524_v59, %v7101_v18  ;;  %v1642_v16 = vpop.f32.mrb[31].mxu0 }
 0x2cd   : > { %v7144_v61 = vadd.f32 %v7101_v18, %v1642_v16 }
 0x2cf   : > { %5727 = vset.pattern.permute.xlu1 %v8609_v35  ;;  %5734 = vset.pattern.permute.xlu0 %v8611_v0 }
 0x2d0   : > { %1891 = vperm.xlu1 %5727, %v1603_v4   ;;  %1770 = vperm.xlu0 %5734, %v1616_v27  }
 0x2d1   : > { %v5527_v5 = vpop.f32.mrb[32].mxu0 }
 0x2d2   : > { %v7149_v24 = vadd.f32 %v5527_v5, %v7101_v18  ;;  %v1655_v62 = vpop.f32.mrb[33].mxu0 }
 0x2d3   : > { %v7152_v55 = vadd.f32 %v7101_v18, %v1655_v62  ;;  %v5528_v52 = vpop.f32.mrb[34].mxu0 }
 0x2d4   : > { %5728 = vset.pattern.permute.xlu1 %v8607_v28  ;;  %5736 = vset.pattern.permute.xlu0 %v8607_v28  ;;  %v7157_v15 = vadd.f32 %v5528_v52, %v7101_v18  ;;  %v1658_v17 = vpop.f32.mrb[35].mxu0 }
 0x2d5   : > { %1803 = vperm.xlu1 %5728, %v1603_v4   ;;  %1815 = vperm.xlu0 %5736, %v1616_v27   ;;  %v7160_v23 = vadd.f32 %v7101_v18, %v1658_v17  ;;  %v7313_v4 = vld [vmem:[%s8602_s1 + $0x140] sm:$0x1] }
 0x2d6   : > { %v8613_v42 = vunpack.c.l.bf16 %v7313_v4 }
 0x2d9   : > { %5729 = vset.pattern.permute.xlu1 %v8615_v1  ;;  %5737 = vset.pattern.permute.xlu0 %v8615_v1  ;;  %v5531_v44 = vpop.f32.mrb[36].mxu0 }
 0x2da   : > { %1839 = vperm.xlu1 %5729, %v1595_v57   ;;  %1851 = vperm.xlu0 %5737, %v1608_v40   ;;  %v7166_v54 = vadd.f32 %v5531_v44, %v7101_v18  ;;  %v1671_v36 = vpop.f32.mrb[37].mxu0 }
 0x2db   : > { %v7169_v14 = vadd.f32 %v7101_v18, %v1671_v36  ;;  %v5532_v6 = vpop.f32.mrb[38].mxu0 }
 0x2dc   : > { %v7172_v12 = vadd.f32 %v5532_v6, %v7101_v18  ;;  %v1674_v63 = vpop.f32.mrb[39].mxu0 }
 0x2dd   : > { %v7175_v13 = vadd.f32 %v7101_v18, %v1674_v63 }
 0x2de   : > { %5731 = vset.pattern.permute.xlu1 %v8609_v35  ;;  %5739 = vset.pattern.permute.xlu0 %v8609_v35 }
 0x2df   : > { %8634 = vst [vmem:[#allocation2_spill] sm:$0xff] %v7175_v13  ;;  %1883 = vperm.xlu1 %5731, %v1595_v57   ;;  %1895 = vperm.xlu0 %5739, %v1608_v40  }
 0x2e2   : > { %v5535_v9 = vpop.f32.mrb[40].mxu0 }
 0x2e3   : > { %v7182_v60 = vadd.f32 %v5535_v9, %v7101_v18  ;;  %v1687_v10 = vpop.f32.mrb[41].mxu0  ;;  %5733 = vset.pattern.permute.xlu1 %v8615_v1  ;;  %5746 = vset.pattern.permute.xlu0 %v8611_v0 }
 0x2e4   : > { %v7187_v34 = vadd.f32 %v7101_v18, %v1687_v10  ;;  %v5536_v22 = vpop.f32.mrb[42].mxu0  ;;  %1859 = vperm.xlu1 %5733, %v1616_v27   ;;  %1765 = vperm.xlu0 %5746, %v1611_v3  }
 0x2e5   : > { %8635 = vst [vmem:[#allocation3_spill] sm:$0xff] %v7182_v60  ;;  %v7190_v56 = vadd.f32 %v5536_v22, %v7101_v18  ;;  %v1690_v8 = vpop.f32.mrb[43].mxu0 }
 0x2e6   : > { %8636 = vst [vmem:[#allocation4_spill] sm:$0xff] %v7187_v34  ;;  %v7193_v46 = vadd.f32 %v7101_v18, %v1690_v8 }
 0x2e7   : > { %8637 = vst [vmem:[#allocation5_spill] sm:$0xff] %v7190_v56 }
 0x2e8   : > { %8638 = vst [vmem:[#allocation6_spill] sm:$0xff] %v7193_v46  ;;  %5735 = vset.pattern.permute.xlu1 %v8609_v35  ;;  %5748 = vset.pattern.permute.xlu0 %v8607_v28 }
 0x2e9   : > { %1903 = vperm.xlu1 %5735, %v1616_v27   ;;  %1811 = vperm.xlu0 %5748, %v1611_v3   ;;  %v7337_v27 = vrot.slane %v8613_v42, %v6544_v45 }
 0x2ea   : > { %v5539_v58 = vpop.f32.mrb[44].mxu0 }
 0x2eb   : > { %v7198_v41 = vadd.f32 %v5539_v58, %v7101_v18  ;;  %v1703_v39 = vpop.f32.mrb[45].mxu0 }
 0x2ec   : > { %v7203_v32 = vadd.f32 %v7101_v18, %v1703_v39  ;;  %v5540_v53 = vpop.f32.mrb[46].mxu0 }
 0x2ed   : > { %8639 = vst [vmem:[#allocation7_spill] sm:$0xff] %v7198_v41  ;;  %v7206_v29 = vadd.f32 %v5540_v53, %v7101_v18  ;;  %v1706_v2 = vpop.f32.mrb[47].mxu0  ;;  %5738 = vset.pattern.permute.xlu1 %v8611_v0  ;;  %5750 = vset.pattern.permute.xlu0 %v8611_v0 }
 0x2ee   : > { %8640 = vst [vmem:[#allocation8_spill] sm:$0xff] %v7203_v32  ;;  %v7211_v7 = vadd.f32 %v7101_v18, %v1706_v2  ;;  %1760 = vperm.xlu1 %5738, %v1608_v40   ;;  %2248 = vperm.xlu0 %5750, %v1632_v25   ;;  %v7254_v18 = vld [vmem:[%s8604_s3 + $0x4] ss:$8 sps:$4 sm:$0xff]  }
 0x2ef   : > { %8641 = vst [vmem:[#allocation9_spill] sm:$0xff] %v7206_v29  ;;  %2062 = vmatprep.mubr.bf16.mxu1 %v7254_v18  ;;  %2484 = vmatprep.mubr.bf16.mxu0 %v7254_v18 }
 0x2f0   : > { %8642 = vst [vmem:[#allocation10_spill] sm:$0xff] %v7211_v7 }
 0x2f2   : > { %5740 = vset.pattern.permute.xlu1 %v8607_v28  ;;  %5752 = vset.pattern.permute.xlu0 %v8607_v28 }
 0x2f3   : > { %1807 = vperm.xlu1 %5740, %v1608_v40   ;;  %2293 = vperm.xlu0 %5752, %v1632_v25  }
 0x2f7   : > { %5741 = vset.pattern.permute.xlu1 %v8615_v1  ;;  %5753 = vset.pattern.permute.xlu0 %v8615_v1 }
 0x2f8   : > { %1863 = vperm.xlu1 %5741, %v7108_v19   ;;  %2325 = vperm.xlu0 %5753, %v7119_v48  }
 0x2fc   : > { %5742 = vset.pattern.permute.xlu1 %v8611_v0  ;;  %5755 = vset.pattern.permute.xlu0 %v8609_v35 }
 0x2fd   : > { %1775 = vperm.xlu1 %5742, %v7108_v19   ;;  %2365 = vperm.xlu0 %5755, %v7119_v48  }
 0x301   : > { %5743 = vset.pattern.permute.xlu1 %v8609_v35  ;;  %5762 = vset.pattern.permute.xlu0 %v8611_v0 }
 0x302   : > { %1907 = vperm.xlu1 %5743, %v7108_v19   ;;  %2243 = vperm.xlu0 %5762, %v7127_v50  }
 0x306   : > { %5744 = vset.pattern.permute.xlu1 %v8607_v28  ;;  %5764 = vset.pattern.permute.xlu0 %v8607_v28 }
 0x307   : > { %1819 = vperm.xlu1 %5744, %v7108_v19   ;;  %2289 = vperm.xlu0 %5764, %v7127_v50  }
 0x30b   : > { %5745 = vset.pattern.permute.xlu1 %v8615_v1  ;;  %5766 = vset.pattern.permute.xlu0 %v8611_v0 }
 0x30c   : > { %1855 = vperm.xlu1 %5745, %v1611_v3   ;;  %2268 = vperm.xlu0 %5766, %v7134_v51  }
 0x310   : > { %5747 = vset.pattern.permute.xlu1 %v8609_v35  ;;  %5768 = vset.pattern.permute.xlu0 %v8607_v28 }
 0x311   : > { %1899 = vperm.xlu1 %5747, %v1611_v3   ;;  %2309 = vperm.xlu0 %5768, %v7134_v51  }
 0x315   : > { %5749 = vset.pattern.permute.xlu1 %v8615_v1  ;;  %5769 = vset.pattern.permute.xlu0 %v8615_v1 }
 0x316   : > { %2333 = vperm.xlu1 %5749, %v1632_v25   ;;  %2341 = vperm.xlu0 %5769, %v7137_v26  }
 0x31a   : > { %5751 = vset.pattern.permute.xlu1 %v8609_v35  ;;  %5771 = vset.pattern.permute.xlu0 %v8609_v35 }
 0x31b   : > { %2373 = vperm.xlu1 %5751, %v1632_v25   ;;  %2381 = vperm.xlu0 %5771, %v7137_v26  }
 0x31f   : > { %5754 = vset.pattern.permute.xlu1 %v8611_v0  ;;  %5778 = vset.pattern.permute.xlu0 %v8611_v0 }
 0x320   : > { %2238 = vperm.xlu1 %5754, %v7119_v48   ;;  %2263 = vperm.xlu0 %5778, %v7144_v61  }
 0x324   : > { %5756 = vset.pattern.permute.xlu1 %v8607_v28  ;;  %5780 = vset.pattern.permute.xlu0 %v8607_v28 }
 0x325   : > { %2285 = vperm.xlu1 %5756, %v7119_v48   ;;  %2305 = vperm.xlu0 %5780, %v7144_v61  }
 0x329   : > { %5757 = vset.pattern.permute.xlu1 %v8615_v1  ;;  %5782 = vset.pattern.permute.xlu0 %v8611_v0 }
 0x32a   : > { %2337 = vperm.xlu1 %5757, %v7122_v11   ;;  %2666 = vperm.xlu0 %5782, %v7149_v24  }
 0x32e   : > { %5758 = vset.pattern.permute.xlu1 %v8611_v0  ;;  %5784 = vset.pattern.permute.xlu0 %v8607_v28 }
 0x32f   : > { %2253 = vperm.xlu1 %5758, %v7122_v11   ;;  %2711 = vperm.xlu0 %5784, %v7149_v24  }
 0x331   : > { %v7266_v30 = vpop.permute.xlu1 %1843  ;;  %v7282_v47 = vpop.permute.xlu0 %1750 }
 0x332   : > { %v1784_v22 = vmul.f32 %v7337_v27, %v7282_v47 }
 0x333   : > { %5759 = vset.pattern.permute.xlu1 %v8609_v35  ;;  %5785 = vset.pattern.permute.xlu0 %v8615_v1 }
 0x334   : > { %2377 = vperm.xlu1 %5759, %v7122_v11   ;;  %2743 = vperm.xlu0 %5785, %v7152_v55  }
 0x336   : > { %v7272_v33 = vpop.permute.xlu1 %1887  ;;  %v7292_v31 = vpop.permute.xlu0 %1799 }
 0x338   : > { %5760 = vset.pattern.permute.xlu1 %v8607_v28  ;;  %5787 = vset.pattern.permute.xlu0 %v8609_v35 }
 0x339   : > { %2297 = vperm.xlu1 %5760, %v7122_v11   ;;  %2783 = vperm.xlu0 %5787, %v7152_v55  }
 0x33b   : > { %v7278_v19 = vpop.permute.xlu1 %1740  ;;  %v7300_v49 = vpop.permute.xlu0 %1835 }
 0x33c   : > { %v1782_v44 = vmul.f32 %v7337_v27, %v7278_v19 }
 0x33d   : > { %5761 = vset.pattern.permute.xlu1 %v8615_v1  ;;  %5794 = vset.pattern.permute.xlu0 %v8611_v0 }
 0x33e   : > { %2329 = vperm.xlu1 %5761, %v7127_v50   ;;  %2661 = vperm.xlu0 %5794, %v7160_v23  }
 0x340   : > { %v7286_v37 = vpop.permute.xlu1 %1791  ;;  %v7315_v57 = vpop.permute.xlu0 %1879 }
 0x342   : > { %5763 = vset.pattern.permute.xlu1 %v8609_v35  ;;  %5796 = vset.pattern.permute.xlu0 %v8607_v28 }
 0x343   : > { %2369 = vperm.xlu1 %5763, %v7127_v50   ;;  %2707 = vperm.xlu0 %5796, %v7160_v23   ;;  %v7320_v50 = vld [vmem:[%s8602_s1 + $0x140] sm:$0x2] }
 0x345   : > { %v7294_v48 = vpop.permute.xlu1 %1847  ;;  %v7331_v16 = vpop.permute.xlu0 %1745 }
 0x346   : > { %v1783_v62 = vmul.f32 %v7337_v27, %v7331_v16 }
 0x347   : > { %5765 = vset.pattern.permute.xlu1 %v8615_v1  ;;  %5798 = vset.pattern.permute.xlu0 %v8611_v0 }
 0x348   : > { %2349 = vperm.xlu1 %5765, %v7134_v51   ;;  %2686 = vperm.xlu0 %5798, %v7166_v54   ;;  %v1970_v63 = vpack.c.bf16 %v1783_v62, %v1782_v44 }
 0x34a   : > { %v7302_v11 = vpop.permute.xlu1 %1755  ;;  %v7387_v25 = vpop.permute.xlu0 %1795 }
 0x34b   : > { %v1785_v3 = vmul.f32 %v7337_v27, %v7302_v11 }
 0x34c   : > { %5767 = vset.pattern.permute.xlu1 %v8609_v35  ;;  %5800 = vset.pattern.permute.xlu0 %v8607_v28 }
 0x34d   : > { %2389 = vperm.xlu1 %5767, %v7134_v51   ;;  %2727 = vperm.xlu0 %5800, %v7166_v54   ;;  %v1730_v51 = vunpack.c.l.bf16 %v7320_v50  ;;  %v1971_v8 = vpack.c.bf16 %v1785_v3, %v1784_v22 }
 0x34f   : > { %v7308_v20 = vpop.permute.xlu1 %1891  ;;  %v7345_v5 = vrot.slane %v1730_v51, %v8606_v21  ;;  %v7396_v2 = vpop.permute.xlu0 %1770 }
 0x351   : > { %5770 = vset.pattern.permute.xlu1 %v8611_v0  ;;  %5801 = vset.pattern.permute.xlu0 %v8615_v1  ;;  %v1870_v17 = vmul.f32 %v7345_v5, %v7300_v49  ;;  %v1873_v40 = vmul.f32 %v7345_v5, %v7294_v48  ;;  %v1872_v36 = vmul.f32 %v7345_v5, %v7266_v30 }
 0x352   : > { %2258 = vperm.xlu1 %5770, %v7137_v26   ;;  %2759 = vperm.xlu0 %5801, %v7169_v14  }
 0x353   : > { %v1979_v10 = vpack.c.bf16 %v1873_v40, %v1872_v36 }
 0x354   : > { %v7329_v59 = vpop.permute.xlu1 %1803 }
 0x356   : > { %5772 = vset.pattern.permute.xlu1 %v8607_v28  ;;  %5803 = vset.pattern.permute.xlu0 %v8609_v35 }
 0x357   : > { %2301 = vperm.xlu1 %5772, %v7137_v26   ;;  %2799 = vperm.xlu0 %5803, %v7169_v14  }
 0x359   : > { %v7350_v52 = vpop.permute.xlu1 %1839 }
 0x35a   : > { %v1871_v26 = vmul.f32 %v7345_v5, %v7350_v52 }
 0x35b   : > { %5773 = vset.pattern.permute.xlu1 %v8615_v1  ;;  %5810 = vset.pattern.permute.xlu0 %v8611_v0 }
 0x35c   : > { %2353 = vperm.xlu1 %5773, %v7140_v38   ;;  %v1978_v6 = vpack.c.bf16 %v1871_v26, %v1870_v17  ;;  %2681 = vperm.xlu0 %5810, %v7175_v13   ;;  %v7406_v17 = vpop.permute.xlu0 %1815 }
 0x35e   : > { %v7368_v9 = vpop.permute.xlu1 %1883  ;;  %5005 = vmatprep.subr.bf16.mxu1 %v1978_v6 }
 0x35f   : > { %5006 = vmatpush3.bf16.msra.mxu1 %v1970_v63 }
 0x360   : > { %5007 = vmatprep.subr.bf16.mxu1 %v1979_v10  ;;  %5774 = vset.pattern.permute.xlu1 %v8611_v0  ;;  %v7414_v26 = vpop.permute.xlu0 %1851 }
 0x361   : > { %5812 = vset.pattern.permute.xlu0 %v8607_v28  ;;  %2273 = vperm.xlu1 %5774, %v7140_v38   ;;  %v1874_v10 = vmul.f32 %v7345_v5, %v7414_v26 }
 0x362   : > { %2723 = vperm.xlu0 %5812, %v7175_v13  }
 0x363   : > { %v7376_v58 = vpop.permute.xlu1 %1859  ;;  %5008 = vmatpush3.bf16.msra.mxu1 %v1971_v8 }
 0x364   : > { %v7423_v44 = vpop.permute.xlu0 %1895 }
 0x365   : > { %5775 = vset.pattern.permute.xlu1 %v8609_v35 }
 0x366   : > { %5815 = vset.pattern.permute.xlu0 %v8615_v1  ;;  %2393 = vperm.xlu1 %5775, %v7140_v38  }
 0x367   : > { %3161 = vperm.xlu0 %5815, %v7187_v34  }
 0x368   : > { %v7382_v39 = vpop.permute.xlu1 %1903  ;;  %v7432_v6 = vpop.permute.xlu0 %1765 }
 0x369   : > { %v1787_v21 = vmul.f32 %v7337_v27, %v7432_v6 }
 0x36a   : > { %5776 = vset.pattern.permute.xlu1 %v8607_v28 }
 0x36b   : > { %5817 = vset.pattern.permute.xlu0 %v8609_v35  ;;  %2313 = vperm.xlu1 %5776, %v7140_v38  }
 0x36c   : > { %3201 = vperm.xlu0 %5817, %v7187_v34  }
 0x36d   : > { %v7390_v53 = vpop.permute.xlu1 %1760 }
 0x36e   : > { %v1786_v63 = vmul.f32 %v7337_v27, %v7390_v53 }
 0x36f   : > { %5777 = vset.pattern.permute.xlu1 %v8615_v1 }
 0x370   : > { %5825 = vset.pattern.permute.xlu0 %v8615_v1  ;;  %2345 = vperm.xlu1 %5777, %v7144_v61   ;;  %v1972_v42 = vpack.c.bf16 %v1787_v21, %v1786_v63  ;;  %v1788_v21 = vmul.f32 %v7337_v27, %v7396_v2 }
 0x371   : > { %3177 = vperm.xlu0 %5825, %v7203_v32  }
 0x372   : > { %v7398_v62 = vpop.permute.xlu1 %1807 }
 0x374   : > { %5779 = vset.pattern.permute.xlu1 %v8609_v35 }
 0x375   : > { %5831 = vset.pattern.permute.xlu0 %v8609_v35  ;;  %2385 = vperm.xlu1 %5779, %v7144_v61  }
 0x376   : > { %3217 = vperm.xlu0 %5831, %v7203_v32  }
 0x377   : > { %v7404_v38 = vpop.permute.xlu1 %1863 }
 0x378   : > { %v1877_v22 = vmul.f32 %v7345_v5, %v7404_v38 }
 0x379   : > { %5781 = vset.pattern.permute.xlu1 %v8615_v1 }
 0x37a   : > { %5832 = vset.pattern.permute.xlu0 %v8611_v0  ;;  %2751 = vperm.xlu1 %5781, %v7149_v24  }
 0x37b   : > { %3079 = vperm.xlu0 %5832, %v7193_v46  }
 0x37c   : > { %v7412_v40 = vpop.permute.xlu1 %1775 }
 0x37d   : > { %v1789_v8 = vmul.f32 %v7337_v27, %v7412_v40 }
 0x37e   : > { %5783 = vset.pattern.permute.xlu1 %v8609_v35  ;;  %v1876_v35 = vmul.f32 %v7345_v5, %v7376_v58 }
 0x37f   : > { %3084 = vperm.xlu0 %5832, %v7182_v60   ;;  %2791 = vperm.xlu1 %5783, %v7149_v24   ;;  %v8617_v24 = vsub.s32 3, %v6538_v43 }
 0x380   : > { %v1981_v50 = vpack.c.bf16 %v1877_v22, %v1876_v35  ;;  %v1973_v35 = vpack.c.bf16 %v1789_v8, %v1788_v21  ;;  %v7492_v8 = vld [vmem:[%s8602_s1 + $0x180] sm:$0x2] }
 0x381   : > { %v7419_v61 = vpop.permute.xlu1 %1907 }
 0x383   : > { %3104 = vperm.xlu0 %5832, %v7198_v41   ;;  %5786 = vset.pattern.permute.xlu1 %v8611_v0 }
 0x384   : > { %2656 = vperm.xlu1 %5786, %v7152_v55  }
 0x386   : > { %v7426_v36 = vpop.permute.xlu1 %1819 }
 0x387   : > { %3099 = vperm.xlu0 %5832, %v7211_v7  }
 0x388   : > { %5788 = vset.pattern.permute.xlu1 %v8607_v28 }
 0x389   : > { %2703 = vperm.xlu1 %5788, %v7152_v55  }
 0x38b   : > { %5833 = vset.pattern.permute.xlu0 %v8607_v28  ;;  %v7437_v3 = vpop.permute.xlu1 %1855  ;;  %v7454_v28 = vrot.slane %v1730_v51, %v8617_v24  ;;  %v8643_v51 = vsub.s32 1, %v6538_v43  ;;  %v8644_v24 = vunpack.c.l.bf16 %v7313_v4 }
 0x38c   : > { %v1875_v55 = vmul.f32 %v7345_v5, %v7437_v3  ;;  %3125 = vperm.xlu0 %5833, %v7193_v46   ;;  %v8648_v46 = vmov 1  }
 0x38d   : > { %5789 = vset.pattern.permute.xlu1 %v8615_v1  ;;  %v1915_v29 = vmul.f32 %v7454_v28, %v7368_v9  ;;  %v7470_v32 = vrot.slane %v8644_v24, %v8643_v51  ;;  %v1914_v63 = vmul.f32 %v7454_v28, %v7315_v57  ;;  %v1917_v4 = vmul.f32 %v7454_v28, %v7308_v20 }
 0x38e   : > { %2755 = vperm.xlu1 %5789, %v7157_v15   ;;  %v1980_v0 = vpack.c.bf16 %v1875_v55, %v1874_v10  ;;  %v8645_v10 = vmov 0   ;;  %v1916_v55 = vmul.f32 %v7454_v28, %v7272_v33 }
 0x38f   : > { %v1982_v24 = vpack.c.bf16 %v1915_v29, %v1914_v63  ;;  %v1829_v51 = vmul.f32 %v7470_v32, %v7329_v59  ;;  %v8646_v29 = vmov 3  }
 0x390   : > { %3129 = vperm.xlu0 %5833, %v7182_v60   ;;  %v7464_v1 = vpop.permute.xlu1 %1899  ;;  %5009 = vmatprep.subr.bf16.mxu1 %v1980_v0  ;;  %v1827_v0 = vmul.f32 %v7470_v32, %v7387_v25  ;;  %v1983_v63 = vpack.c.bf16 %v1917_v4, %v1916_v55  ;;  %v1830_v55 = vmul.f32 %v7470_v32, %v7398_v62 }
 0x391   : > { %5010 = vmatpush3.bf16.msra.mxu1 %v1972_v42  ;;  %v1826_v42 = vmul.f32 %v7470_v32, %v7286_v37  ;;  %v1919_v21 = vmul.f32 %v7454_v28, %v7464_v1 }
 0x392   : > { %5011 = vmatprep.subr.bf16.mxu1 %v1981_v50  ;;  %5790 = vset.pattern.permute.xlu1 %v8645_v10 }
 0x393   : > { %2671 = vperm.xlu1 %5790, %v7157_v15   ;;  %v1974_v50 = vpack.c.bf16 %v1827_v0, %v1826_v42  ;;  %v7506_v0 = vld [vmem:[%s8602_s1 + $0x180] sm:$0x1]  ;;  %v1918_v42 = vmul.f32 %v7454_v28, %v7423_v44 }
 0x394   : > { %3141 = vperm.xlu0 %5833, %v7211_v7   ;;  %v7511_v7 = vpop.permute.xlu0 %1811  ;;  %v8651_v60 = vunpack.c.l.bf16 %v7506_v0 }
 0x395   : > { %v7485_v22 = vpop.permute.xlu1 %2333  ;;  %5012 = vmatpush3.bf16.msra.mxu1 %v1973_v35  ;;  %v1828_v35 = vmul.f32 %v7470_v32, %v7292_v31  ;;  %v1984_v56 = vpack.c.bf16 %v1919_v21, %v1918_v42  ;;  %v1831_v34 = vmul.f32 %v7470_v32, %v7511_v7  ;;  %v1833_v42 = vmul.f32 %v7470_v32, %v7426_v36 }
 0x396   : > { %5013 = vmatprep.subr.bf16.mxu1 %v1982_v24  ;;  %v7542_v13 = vrot.slane %v8651_v60, %v6544_v45 }
 0x397   : > { %5791 = vset.pattern.permute.xlu1 %v8646_v29  ;;  %v1975_v4 = vpack.c.bf16 %v1829_v51, %v1828_v35  ;;  %v8649_v51 = vsub.s32 2, %v6538_v43  ;;  %v1976_v21 = vpack.c.bf16 %v1831_v34, %v1830_v55 }
 0x398   : > { %3145 = vperm.xlu0 %5833, %v7198_v41   ;;  %2795 = vperm.xlu1 %5791, %v7157_v15   ;;  %v7554_v60 = vpop.permute.xlu0 %2248 }
 0x399   : > { %5014 = vmatpush3.bf16.msra.mxu1 %v1974_v50  ;;  %v1921_v50 = vmul.f32 %v7454_v28, %v7419_v61 }
 0x39a   : > { %v7513_v41 = vpop.permute.xlu1 %2373  ;;  %5015 = vmatprep.subr.bf16.mxu1 %v1983_v63  ;;  %v8650_v63 = vunpack.c.l.bf16 %v7492_v8 }
 0x39b   : > { %8647 = vst [vmem:[#allocation11_spill] sm:$0xff] %v7513_v41  ;;  %v1920_v41 = vmul.f32 %v7454_v28, %v7382_v39 }
 0x39c   : > { %5792 = vset.pattern.permute.xlu1 %v8648_v46  ;;  %5836 = vset.pattern.permute.xlu0 %v8646_v29  ;;  %v7529_v35 = vrot.slane %v8650_v63, %v8649_v51  ;;  %v1832_v51 = vmul.f32 %v7470_v32, %v7406_v17  ;;  %v7561_v63 = vld [vmem:[%s8604_s3] ss:$8 sps:$4 sm:$0xff]  }
 0x39d   : > { %5016 = vmatpush3.bf16.msra.mxu1 %v1975_v4  ;;  %2715 = vperm.xlu1 %5792, %v7157_v15   ;;  %v1985_v15 = vpack.c.bf16 %v1921_v50, %v1920_v41  ;;  %v1927_v41 = vmul.f32 %v7542_v13, %v7331_v16  ;;  %v7568_v16 = vld [vmem:[%s8604_s3 + $0x14] ss:$8 sps:$4 sm:$0xff]  }
 0x39e   : > { %5017 = vmatprep.subr.bf16.mxu1 %v1984_v56  ;;  %v1951_v4 = vmul.f32 %v7529_v35, %v7350_v52  ;;  %v8652_v56 = vmov 2   ;;  %v1950_v34 = vmul.f32 %v7529_v35, %v7300_v49  ;;  %v1977_v52 = vpack.c.bf16 %v1833_v42, %v1832_v51 }
 0x39f   : > { %v7535_v24 = vpop.permute.xlu1 %2238  ;;  %v1953_v45 = vmul.f32 %v7529_v35, %v7294_v48  ;;  %v1926_v49 = vmul.f32 %v7542_v13, %v7278_v19  ;;  %v1952_v48 = vmul.f32 %v7529_v35, %v7266_v30  ;;  %v1929_v42 = vmul.f32 %v7542_v13, %v7302_v11  ;;  %v7586_v11 = vpop.permute.xlu0 %2293 }
 0x3a0   : > { %v2103_v50 = vpack.c.bf16 %v1951_v4, %v1950_v34  ;;  %v1955_v19 = vmul.f32 %v7529_v35, %v7437_v3  ;;  %v1954_v30 = vmul.f32 %v7529_v35, %v7414_v26  ;;  %v1930_v3 = vmul.f32 %v7542_v13, %v7390_v53 }
 0x3a1   : > { %5018 = vmatpush3.bf16.msra.mxu1 %v1976_v21  ;;  %5793 = vset.pattern.permute.xlu1 %v8652_v56  ;;  %v2095_v21 = vpack.c.bf16 %v1927_v41, %v1926_v49  ;;  %v2104_v4 = vpack.c.bf16 %v1953_v45, %v1952_v48  ;;  %v7597_v41 = vld [vmem:[%s8604_s3 + $0x10] ss:$8 sps:$4 sm:$0xff]   ;;  %v1931_v26 = vmul.f32 %v7542_v13, %v7432_v6  ;;  %v8654_v53 = vunpack.c.l.bf16 %v7492_v8  ;;  %v7614_v49 = vld [vmem:[%s8604_s3 + $0x24] ss:$8 sps:$4 sm:$0xff]  }
 0x3a2   : > { %5019 = vmatprep.subr.bf16.mxu1 %v1985_v15  ;;  %2747 = vperm.xlu1 %5793, %v7160_v23   ;;  %v1928_v15 = vmul.f32 %v7542_v13, %v7282_v47  ;;  %v1957_v47 = vmul.f32 %v7529_v35, %v7404_v38  ;;  %v2105_v34 = vpack.c.bf16 %v1955_v19, %v1954_v30  ;;  %v8656_v19 = vunpack.c.l.bf16 %v7506_v0 }
 0x3a3   : > { %v1956_v38 = vmul.f32 %v7529_v35, %v7376_v58  ;;  %v2097_v48 = vpack.c.bf16 %v1931_v26, %v1930_v3  ;;  %v1933_v6 = vmul.f32 %v7542_v13, %v7412_v40 }
 0x3a4   : > { %v7556_v55 = vpop.permute.xlu1 %2285 }
 0x3a5   : > { %5020 = vmatpush3.bf16.msra.mxu1 %v1977_v52  ;;  %v8653_v52 = vsub.s32 3, %v6538_v43  ;;  %v2106_v58 = vpack.c.bf16 %v1957_v47, %v1956_v38  ;;  %v7660_v47 = vld [vmem:[%s8604_s3 + $0x34] ss:$8 sps:$4 sm:$0xff]  }
 0x3a6   : > { %5045 = vmatprep.subr.bf16.mxu1 %v2103_v50  ;;  %5795 = vset.pattern.permute.xlu1 %v8646_v29 }
 0x3a7   : > { %2787 = vperm.xlu1 %5795, %v7160_v23   ;;  %v2096_v23 = vpack.c.bf16 %v1929_v42, %v1928_v15  ;;  %v7605_v45 = vrot.slane %v8654_v53, %v8653_v52  ;;  %v8655_v42 = vsub.s32 1, %v6538_v43  ;;  %v1932_v15 = vmul.f32 %v7542_v13, %v7396_v2 }
 0x3a8   : > { %2063 = vmatmul.mubr.bf16.vlgmr.msra.gmra.mrb[48].mxu1 %v7561_v63 }
 0x3a9   : > { %v7581_v51 = vpop.permute.xlu1 %2337  ;;  %5046 = vmatpush3.bf16.msra.mxu1 %v2095_v21  ;;  %2070 = vmatprep.mubr.bf16.mxu1 %v7568_v16  ;;  %v1963_v8 = vmul.f32 %v7605_v45, %v7368_v9  ;;  %v7620_v21 = vpop.permute.xlu0 %2325  ;;  %v1962_v9 = vmul.f32 %v7605_v45, %v7315_v57  ;;  %v2098_v43 = vpack.c.bf16 %v1933_v6, %v1932_v15 }
 0x3aa   : > { %5047 = vmatprep.subr.bf16.mxu1 %v2104_v4  ;;  %v7628_v4 = vrot.slane %v8656_v19, %v8655_v42  ;;  %v1965_v0 = vmul.f32 %v7605_v45, %v7308_v20  ;;  %v2358_v15 = vmul.f32 %v7485_v22, %v7345_v5 }
 0x3ab   : > { %5797 = vset.pattern.permute.xlu1 %v8652_v56 }
 0x3ac   : > { %2767 = vperm.xlu1 %5797, %v7166_v54   ;;  %v1939_v40 = vmul.f32 %v7628_v4, %v7387_v25  ;;  %v1938_v57 = vmul.f32 %v7628_v4, %v7286_v37  ;;  %v1964_v25 = vmul.f32 %v7605_v45, %v7272_v33  ;;  %v1941_v3 = vmul.f32 %v7628_v4, %v7329_v59 }
 0x3ad   : > { %5048 = vmatpush3.bf16.msra.mxu1 %v2096_v23  ;;  %v2107_v23 = vpack.c.bf16 %v1963_v8, %v1962_v9  ;;  %v7652_v2 = vpop.permute.xlu0 %2365  ;;  %v1967_v37 = vmul.f32 %v7605_v45, %v7464_v1  ;;  %v1940_v26 = vmul.f32 %v7628_v4, %v7292_v31  ;;  %v1966_v59 = vmul.f32 %v7605_v45, %v7423_v44  ;;  %v7681_v44 = vld [vmem:[%s8604_s3 + $0x30] ss:$8 sps:$4 sm:$0xff]  }
 0x3ae   : > { %v7609_v50 = vpop.permute.xlu1 %2253  ;;  %5049 = vmatprep.subr.bf16.mxu1 %v2105_v34  ;;  %v2099_v20 = vpack.c.bf16 %v1939_v40, %v1938_v57  ;;  %v2108_v33 = vpack.c.bf16 %v1965_v0, %v1964_v25  ;;  %v1942_v53 = vmul.f32 %v7628_v4, %v7398_v62  ;;  %v1969_v1 = vmul.f32 %v7605_v45, %v7419_v61 }
 0x3af   : > { %v2100_v52 = vpack.c.bf16 %v1941_v3, %v1940_v26  ;;  %v2109_v31 = vpack.c.bf16 %v1967_v37, %v1966_v59  ;;  %v1943_v62 = vmul.f32 %v7628_v4, %v7511_v7  ;;  %v2276_v61 = vmul.f32 %v7535_v24, %v7337_v27 }
 0x3b0   : > { %5799 = vset.pattern.permute.xlu1 %v8646_v29  ;;  %2071 = vmatmul.mubr.bf16.gmra.mrb[52].mxu1 %v7597_v41  ;;  %v2359_v8 = vmul.f32 %v7581_v51, %v7345_v5  ;;  %v1945_v7 = vmul.f32 %v7628_v4, %v7426_v36  ;;  %v2279_v36 = vmul.f32 %v7609_v50, %v7337_v27 }
 0x3b1   : > { %5050 = vmatpush3.bf16.msra.mxu1 %v2097_v48  ;;  %2807 = vperm.xlu1 %5799, %v7166_v54   ;;  %v7645_v54 = vld [vmem:[%s8604_s3 + $0x20] ss:$8 sps:$4 sm:$0xff]   ;;  %v2244_v38 = vpop.permute.xlu0 %2243  ;;  %v1968_v48 = vmul.f32 %v7605_v45, %v7382_v39  ;;  %v2101_v42 = vpack.c.bf16 %v1943_v62, %v1942_v53  ;;  %v2423_v37 = vmul.f32 %v7581_v51, %v7529_v35 }
 0x3b2   : > { %5051 = vmatprep.subr.bf16.mxu1 %v2106_v58  ;;  %2078 = vmatprep.mubr.bf16.mxu1 %v7614_v49  ;;  %v2277_v39 = vmul.f32 %v2244_v38, %v7337_v27  ;;  %v2445_v25 = vpack.c.bf16 %v2359_v8, %v2358_v15  ;;  %v2422_v59 = vmul.f32 %v7485_v22, %v7529_v35 }
 0x3b3   : > { %v7638_v30 = vpop.permute.xlu1 %2377  ;;  %v2110_v19 = vpack.c.bf16 %v1969_v1, %v1968_v48  ;;  %v2406_v1 = vmul.f32 %v7554_v60, %v7542_v13 }
 0x3b4   : > { %v2436_v0 = vpack.c.bf16 %v2277_v39, %v2276_v61  ;;  %v2526_v53 = vpack.c.bf16 %v2423_v37, %v2422_v59  ;;  %v8659_v39 = vld [vmem:[#allocation4_spill] sm:$0xff] }
 0x3b5   : > { %5052 = vmatpush3.bf16.msra.mxu1 %v2098_v43  ;;  %5802 = vset.pattern.permute.xlu1 %v8645_v10  ;;  %v1944_v43 = vmul.f32 %v7628_v4, %v7406_v17  ;;  %v2404_v17 = vmul.f32 %v7535_v24, %v7542_v13  ;;  %v2407_v24 = vmul.f32 %v7609_v50, %v7542_v13  ;;  %v7735_v50 = vpop.permute.xlu0 %2289 }
 0x3b6   : > { %5053 = vmatprep.subr.bf16.mxu1 %v2107_v23  ;;  %2676 = vperm.xlu1 %5802, %v7169_v14   ;;  %v2420_v23 = vmul.f32 %v7620_v21, %v7529_v35 }
 0x3b7   : > { %v2102_v3 = vpack.c.bf16 %v1945_v7, %v1944_v43  ;;  %v2518_v22 = vpack.c.bf16 %v2407_v24, %v2406_v1 }
 0x3b8   : > { %v7664_v34 = vpop.permute.xlu1 %2297  ;;  %2079 = vmatmul.mubr.bf16.gmra.mrb[56].mxu1 %v7645_v54 }
 0x3b9   : > { %5054 = vmatpush3.bf16.msra.mxu1 %v2099_v20  ;;  %2086 = vmatprep.mubr.bf16.mxu1 %v7660_v47  ;;  %v2278_v20 = vmul.f32 %v7554_v60, %v7337_v27  ;;  %v2269_v48 = vpop.permute.xlu0 %2268 }
 0x3ba   : > { %5055 = vmatprep.subr.bf16.mxu1 %v2108_v33  ;;  %5804 = vset.pattern.permute.xlu1 %v8648_v46  ;;  %v2405_v33 = vmul.f32 %v2244_v38, %v7542_v13 }
 0x3bb   : > { %2719 = vperm.xlu1 %5804, %v7169_v14   ;;  %v2356_v14 = vmul.f32 %v7620_v21, %v7345_v5  ;;  %v2437_v26 = vpack.c.bf16 %v2279_v36, %v2278_v20 }
 0x3bd   : > { %v2330_v6 = vpop.permute.xlu1 %2329  ;;  %5056 = vmatpush3.bf16.msra.mxu1 %v2100_v52  ;;  %v2517_v52 = vpack.c.bf16 %v2405_v33, %v2404_v17  ;;  %v7747_v61 = vpop.permute.xlu0 %2309 }
 0x3be   : > { %v2357_v58 = vmul.f32 %v2330_v6, %v7345_v5  ;;  %5057 = vmatprep.subr.bf16.mxu1 %v2109_v31  ;;  %v2421_v9 = vmul.f32 %v2330_v6, %v7529_v35  ;;  %v8657_v31 = vld [vmem:[#allocation2_spill] sm:$0xff]  ;;  %v8658_v6 = vld [vmem:[#allocation3_spill] sm:$0xff] }
 0x3bf   : > { %5805 = vset.pattern.permute.xlu1 %v8652_v56 }
 0x3c0   : > { %2771 = vperm.xlu1 %5805, %v7172_v12   ;;  %2087 = vmatmul.mubr.bf16.gmra.mrb[60].mxu1 %v7681_v44  ;;  %v2444_v40 = vpack.c.bf16 %v2357_v58, %v2356_v14  ;;  %v2525_v21 = vpack.c.bf16 %v2421_v9, %v2420_v23 }
 0x3c1   : > { %5058 = vmatpush3.bf16.msra.mxu1 %v2101_v42  ;;  %2147 = vmatprep.mubr.bf16.mxu1 %v7254_v18  ;;  %v2342_v8 = vpop.permute.xlu0 %2341 }
 0x3c2   : > { %v7710_v57 = vpop.permute.xlu1 %2369  ;;  %5059 = vmatprep.subr.bf16.mxu1 %v2110_v19  ;;  %5085 = vmatprep.subr.bf16.mxu0 %v2444_v40  ;;  %v2360_v19 = vmul.f32 %v2342_v8, %v7345_v5  ;;  %v2424_v43 = vmul.f32 %v2342_v8, %v7529_v35  ;;  %v2428_v8 = vmul.f32 %v7652_v2, %v7605_v45 }
 0x3c3   : > { %5086 = vmatpush3.bf16.msra.mxu0 %v2436_v0  ;;  %v2397_v1 = vmul.f32 %v7710_v57, %v7454_v28 }
 0x3c4   : > { %5087 = vmatprep.subr.bf16.mxu0 %v2445_v25  ;;  %5806 = vset.pattern.permute.xlu1 %v8645_v10 }
 0x3c5   : > { %5060 = vmatpush3.bf16.msra.mxu1 %v2102_v3  ;;  %2691 = vperm.xlu1 %5806, %v7172_v12   ;;  %v7758_v42 = vpop.permute.xlu0 %2381 }
 0x3c6   : > { %5125 = vmatprep.subr.bf16.mxu1 %v2525_v21  ;;  %v8660_v21 = vld [vmem:[#allocation5_spill] sm:$0xff] }
 0x3c7   : > { %5088 = vmatpush3.bf16.msra.mxu0 %v2437_v26  ;;  %v2350_v51 = vpop.permute.xlu1 %2349 }
 0x3c8   : > { %2148 = vmatmul.mubr.bf16.vlgmr.msra.gmra.mrb[64].mxu1 %v7561_v63  ;;  %v2362_v17 = vmul.f32 %v2350_v51, %v7345_v5  ;;  %v2426_v37 = vmul.f32 %v2350_v51, %v7529_v35 }
 0x3c9   : > { %5126 = vmatpush3.bf16.msra.mxu1 %v2517_v52  ;;  %5807 = vset.pattern.permute.xlu1 %v8646_v29 }
 0x3ca   : > { %5127 = vmatprep.subr.bf16.mxu1 %v2526_v53  ;;  %2811 = vperm.xlu1 %5807, %v7172_v12  }
 0x3cb   : > { %2155 = vmatprep.mubr.bf16.mxu1 %v7568_v16 }
 0x3cc   : > { %v7731_v38 = vpop.permute.xlu1 %2389 }
 0x3cd   : > { %5128 = vmatpush3.bf16.msra.mxu1 %v2518_v22  ;;  %v2429_v22 = vmul.f32 %v7710_v57, %v7605_v45  ;;  %v2316_v57 = vmul.f32 %v7556_v55, %v7470_v32 }
 0x3ce   : > { %5808 = vset.pattern.permute.xlu1 %v8648_v46 }
 0x3cf   : > { %2731 = vperm.xlu1 %5808, %v7172_v12  }
 0x3d0   : > { %2156 = vmatmul.mubr.bf16.gmra.mrb[68].mxu1 %v7597_v41 }
 0x3d1   : > { %v2259_v60 = vpop.permute.xlu1 %2258  ;;  %2163 = vmatprep.mubr.bf16.mxu1 %v7614_v49 }
 0x3d2   : > { %v2280_v15 = vmul.f32 %v2259_v60, %v7337_v27  ;;  %v2408_v9 = vmul.f32 %v2259_v60, %v7542_v13 }
 0x3d3   : > { %5809 = vset.pattern.permute.xlu1 %v8652_v56 }
 0x3d4   : > { %2763 = vperm.xlu1 %5809, %v8657_v31  }
 0x3d6   : > { %v7741_v62 = vpop.permute.xlu1 %2301 }
 0x3d8   : > { %5811 = vset.pattern.permute.xlu1 %v8646_v29  ;;  %2164 = vmatmul.mubr.bf16.gmra.mrb[72].mxu1 %v7645_v54 }
 0x3d9   : > { %2803 = vperm.xlu1 %5811, %v8657_v31   ;;  %2171 = vmatprep.mubr.bf16.mxu1 %v7660_v47  ;;  %v2282_v31 = vmul.f32 %v2269_v48, %v7337_v27 }
 0x3db   : > { %v2354_v12 = vpop.permute.xlu1 %2353 }
 0x3dc   : > { %v2363_v0 = vmul.f32 %v2354_v12, %v7345_v5  ;;  %v2427_v3 = vmul.f32 %v2354_v12, %v7529_v35  ;;  %v2410_v12 = vmul.f32 %v2269_v48, %v7542_v13 }
 0x3dd   : > { %5813 = vset.pattern.permute.xlu1 %v8652_v56 }
 0x3de   : > { %3169 = vperm.xlu1 %5813, %v8658_v6   ;;  %v2447_v51 = vpack.c.bf16 %v2363_v0, %v2362_v17  ;;  %v8661_v0 = vld [vmem:[#allocation11_spill] sm:$0xff] }
 0x3e0   : > { %v2274_v14 = vpop.permute.xlu1 %2273  ;;  %2172 = vmatmul.mubr.bf16.gmra.mrb[76].mxu1 %v7681_v44 }
 0x3e1   : > { %2565 = vmatprep.mubr.bf16.mxu1 %v7254_v18  ;;  %v2264_v18 = vpop.permute.xlu0 %2263  ;;  %v2283_v24 = vmul.f32 %v2274_v14, %v7337_v27  ;;  %v2411_v53 = vmul.f32 %v2274_v14, %v7542_v13  ;;  %v2396_v14 = vmul.f32 %v7652_v2, %v7454_v28  ;;  %v2431_v2 = vmul.f32 %v7638_v30, %v7605_v45 }
 0x3e2   : > { %5814 = vset.pattern.permute.xlu1 %v8646_v29  ;;  %v2281_v25 = vmul.f32 %v2264_v18, %v7337_v27  ;;  %v2409_v20 = vmul.f32 %v2264_v18, %v7542_v13 }
 0x3e3   : > { %3209 = vperm.xlu1 %5814, %v8658_v6   ;;  %v2528_v6 = vpack.c.bf16 %v2427_v3, %v2426_v37  ;;  %v2439_v18 = vpack.c.bf16 %v2283_v24, %v2282_v31  ;;  %v2520_v48 = vpack.c.bf16 %v2411_v53, %v2410_v12  ;;  %v2432_v53 = vmul.f32 %v7758_v42, %v7605_v45 }
 0x3e4   : > { %v2438_v59 = vpack.c.bf16 %v2281_v25, %v2280_v15  ;;  %v2519_v52 = vpack.c.bf16 %v2409_v20, %v2408_v9  ;;  %v2448_v15 = vpack.c.bf16 %v2397_v1, %v2396_v14  ;;  %v2529_v9 = vpack.c.bf16 %v2429_v22, %v2428_v8 }
 0x3e5   : > { %v7755_v58 = vpop.permute.xlu1 %2393  ;;  %v2319_v20 = vmul.f32 %v7664_v34, %v7470_v32  ;;  %v2320_v22 = vmul.f32 %v7741_v62, %v7470_v32 }
 0x3e6   : > { %v2403_v12 = vmul.f32 %v7755_v58, %v7454_v28 }
 0x3e7   : > { %5816 = vset.pattern.permute.xlu1 %v8645_v10 }
 0x3e8   : > { %3074 = vperm.xlu1 %5816, %v8659_v39  }
 0x3ea   : > { %v7761_v7 = vpop.permute.xlu1 %2313 }
 0x3ec   : > { %5818 = vset.pattern.permute.xlu1 %v8648_v46 }
 0x3ed   : > { %3121 = vperm.xlu1 %5818, %v8659_v39   ;;  %v2412_v39 = vmul.f32 %v7556_v55, %v7628_v4 }
 0x3ef   : > { %v2346_v40 = vpop.permute.xlu1 %2345 }
 0x3f0   : > { %v2361_v36 = vmul.f32 %v2346_v40, %v7345_v5  ;;  %v2425_v23 = vmul.f32 %v2346_v40, %v7529_v35  ;;  %v2317_v40 = vmul.f32 %v7735_v50, %v7470_v32 }
 0x3f1   : > { %5819 = vset.pattern.permute.xlu1 %v8652_v56 }
 0x3f2   : > { %3173 = vperm.xlu1 %5819, %v8660_v21   ;;  %v2446_v33 = vpack.c.bf16 %v2361_v36, %v2360_v19  ;;  %v2527_v26 = vpack.c.bf16 %v2425_v23, %v2424_v43  ;;  %v2399_v19 = vmul.f32 %v7638_v30, %v7454_v28  ;;  %v2413_v43 = vmul.f32 %v7735_v50, %v7628_v4 }
 0x3f3   : > { %v2398_v36 = vmul.f32 %v8661_v0, %v7454_v28  ;;  %v2430_v23 = vmul.f32 %v8661_v0, %v7605_v45  ;;  %v2440_v30 = vpack.c.bf16 %v2317_v40, %v2316_v57  ;;  %v2415_v50 = vmul.f32 %v7664_v34, %v7628_v4 }
 0x3f4   : > { %v2386_v60 = vpop.permute.xlu1 %2385  ;;  %5089 = vmatprep.subr.bf16.mxu0 %v2446_v33  ;;  %5129 = vmatprep.subr.bf16.mxu1 %v2527_v26  ;;  %v2521_v25 = vpack.c.bf16 %v2413_v43, %v2412_v39  ;;  %v2318_v33 = vmul.f32 %v7586_v11, %v7470_v32  ;;  %v2306_v26 = vpop.permute.xlu0 %2305  ;;  %v2400_v34 = vmul.f32 %v7758_v42, %v7454_v28  ;;  %v8662_v42 = vld [vmem:[#allocation6_spill] sm:$0xff] }
 0x3f5   : > { %5090 = vmatpush3.bf16.msra.mxu0 %v2438_v59  ;;  %5130 = vmatpush3.bf16.msra.mxu1 %v2519_v52  ;;  %v2401_v3 = vmul.f32 %v2386_v60, %v7454_v28  ;;  %v2449_v17 = vpack.c.bf16 %v2399_v19, %v2398_v36  ;;  %v2530_v37 = vpack.c.bf16 %v2431_v2, %v2430_v23  ;;  %v8663_v36 = vld [vmem:[#allocation7_spill] sm:$0xff] }
 0x3f6   : > { %5820 = vset.pattern.permute.xlu1 %v8645_v10  ;;  %5091 = vmatprep.subr.bf16.mxu0 %v2447_v51  ;;  %v2433_v59 = vmul.f32 %v2386_v60, %v7605_v45  ;;  %v2414_v52 = vmul.f32 %v7586_v11, %v7628_v4  ;;  %v2441_v1 = vpack.c.bf16 %v2319_v20, %v2318_v33 }
 0x3f7   : > { %5131 = vmatprep.subr.bf16.mxu1 %v2528_v6  ;;  %3089 = vperm.xlu1 %5820, %v8660_v21   ;;  %v2321_v60 = vmul.f32 %v2306_v26, %v7470_v32  ;;  %v2416_v11 = vmul.f32 %v7741_v62, %v7628_v4  ;;  %v2450_v31 = vpack.c.bf16 %v2401_v3, %v2400_v34 }
 0x3f8   : > { %v2522_v51 = vpack.c.bf16 %v2415_v50, %v2414_v52  ;;  %v2435_v6 = vmul.f32 %v7755_v58, %v7605_v45  ;;  %v2531_v14 = vpack.c.bf16 %v2433_v59, %v2432_v53  ;;  %v2417_v8 = vmul.f32 %v2306_v26, %v7628_v4  ;;  %v7855_v40 = vpop.permute.xlu0 %2666  ;;  %v8665_v50 = vld [vmem:[#allocation9_spill] sm:$0xff] }
 0x3f9   : > { %v7805_v55 = vpop.permute.xlu1 %2751  ;;  %5092 = vmatpush3.bf16.msra.mxu0 %v2439_v18  ;;  %5132 = vmatpush3.bf16.msra.mxu1 %v2520_v48  ;;  %v2402_v62 = vmul.f32 %v7731_v38, %v7454_v28  ;;  %v2434_v57 = vmul.f32 %v7731_v38, %v7605_v45  ;;  %v2442_v39 = vpack.c.bf16 %v2321_v60, %v2320_v22 }
 0x3fa   : > { %5093 = vmatprep.subr.bf16.mxu0 %v2448_v15  ;;  %5133 = vmatprep.subr.bf16.mxu1 %v2529_v9  ;;  %v2323_v18 = vmul.f32 %v7761_v7, %v7470_v32  ;;  %v2523_v48 = vpack.c.bf16 %v2417_v8, %v2416_v11  ;;  %v2419_v19 = vmul.f32 %v7761_v7, %v7628_v4 }
 0x3fb   : > { %5821 = vset.pattern.permute.xlu1 %v8646_v29  ;;  %v2322_v2 = vmul.f32 %v7747_v61, %v7470_v32  ;;  %v2451_v15 = vpack.c.bf16 %v2403_v12, %v2402_v62  ;;  %v2532_v9 = vpack.c.bf16 %v2435_v6, %v2434_v57  ;;  %v2418_v38 = vmul.f32 %v7747_v61, %v7628_v4 }
 0x3fc   : > { %3213 = vperm.xlu1 %5821, %v8660_v21   ;;  %v2712_v61 = vpop.permute.xlu0 %2711  ;;  %v2776_v8 = vmul.f32 %v7805_v55, %v7345_v5  ;;  %v2840_v62 = vmul.f32 %v7805_v55, %v7529_v35  ;;  %v7924_v55 = vld [vmem:[%s8604_s3 + $0x4] ss:$8 sps:$4 sm:$0xff]  }
 0x3fd   : > { %5094 = vmatpush3.bf16.msra.mxu0 %v2440_v30  ;;  %5134 = vmatpush3.bf16.msra.mxu1 %v2521_v25  ;;  %v2443_v43 = vpack.c.bf16 %v2323_v18, %v2322_v2  ;;  %v2524_v7 = vpack.c.bf16 %v2419_v19, %v2418_v38  ;;  %v8664_v30 = vld [vmem:[#allocation8_spill] sm:$0xff]  ;;  %v7884_v26 = vmul.f32 %v2712_v61, %v7628_v4 }
 0x3fe   : > { %v7825_v24 = vpop.permute.xlu1 %2791  ;;  %5095 = vmatprep.subr.bf16.mxu0 %v2449_v17  ;;  %5135 = vmatprep.subr.bf16.mxu1 %v2530_v37  ;;  %v7880_v37 = vmul.f32 %v2712_v61, %v7470_v32  ;;  %v2824_v38 = vmul.f32 %v7855_v40, %v7542_v13 }
 0x400   : > { %5822 = vset.pattern.permute.xlu1 %v8652_v56  ;;  %v2744_v20 = vpop.permute.xlu0 %2743 }
 0x401   : > { %3165 = vperm.xlu1 %5822, %v8662_v42   ;;  %5096 = vmatpush3.bf16.msra.mxu0 %v2441_v1  ;;  %v8666_v1 = vld [vmem:[#allocation10_spill] sm:$0xff]  ;;  %v2774_v60 = vmul.f32 %v2744_v20, %v7345_v5 }
 0x402   : > { %5136 = vmatpush3.bf16.msra.mxu1 %v2522_v51  ;;  %5097 = vmatprep.subr.bf16.mxu0 %v2450_v31  ;;  %v2838_v51 = vmul.f32 %v2744_v20, %v7529_v35 }
 0x403   : > { %5137 = vmatprep.subr.bf16.mxu1 %v2531_v14  ;;  %v2657_v58 = vpop.permute.xlu1 %2656 }
 0x404   : > { %v7875_v17 = vpop.permute.xlu0 %2783  ;;  %v2694_v22 = vmul.f32 %v2657_v58, %v7337_v27  ;;  %v2822_v11 = vmul.f32 %v2657_v58, %v7542_v13 }
 0x405   : > { %5823 = vset.pattern.permute.xlu1 %v8646_v29  ;;  %5098 = vmatpush3.bf16.msra.mxu0 %v2442_v39 }
 0x406   : > { %5138 = vmatpush3.bf16.msra.mxu1 %v2523_v48  ;;  %3205 = vperm.xlu1 %5823, %v8662_v42  }
 0x407   : > { %5099 = vmatprep.subr.bf16.mxu0 %v2451_v15  ;;  %5139 = vmatprep.subr.bf16.mxu1 %v2532_v9 }
 0x408   : > { %v7857_v0 = vpop.permute.xlu1 %2703 }
 0x409   : > { %5100 = vmatpush3.bf16.msra.mxu0 %v2443_v43 }
 0x40a   : > { %5140 = vmatpush3.bf16.msra.mxu1 %v2524_v7  ;;  %5824 = vset.pattern.permute.xlu1 %v8652_v56 }
 0x40b   : > { %3185 = vperm.xlu1 %5824, %v8663_v36  }
 0x40c   : > { %2485 = vmatmul.mubr.bf16.vlgmr.msra.gmra.mrb[48].mxu0 %v7561_v63 }
 0x40d   : > { %2566 = vmatmul.mubr.bf16.vlgmr.msra.gmra.mrb[80].mxu1 %v7561_v63  ;;  %v2756_v23 = vpop.permute.xlu1 %2755  ;;  %2492 = vmatprep.mubr.bf16.mxu0 %v7568_v16 }
 0x40e   : > { %2573 = vmatprep.mubr.bf16.mxu1 %v7568_v16  ;;  %v2777_v12 = vmul.f32 %v2756_v23, %v7345_v5  ;;  %v2841_v57 = vmul.f32 %v2756_v23, %v7529_v35 }
 0x40f   : > { %5826 = vset.pattern.permute.xlu1 %v8645_v10 }
 0x410   : > { %3094 = vperm.xlu1 %5826, %v8664_v30   ;;  %v2863_v15 = vpack.c.bf16 %v2777_v12, %v2776_v8  ;;  %v2944_v43 = vpack.c.bf16 %v2841_v57, %v2840_v62 }
 0x412   : > { %v2672_v25 = vpop.permute.xlu1 %2671 }
 0x413   : > { %v2697_v19 = vmul.f32 %v2672_v25, %v7337_v27  ;;  %v2825_v2 = vmul.f32 %v2672_v25, %v7542_v13 }
 0x414   : > { %5827 = vset.pattern.permute.xlu1 %v8652_v56  ;;  %2493 = vmatmul.mubr.bf16.gmra.mrb[52].mxu0 %v7597_v41 }
 0x415   : > { %2574 = vmatmul.mubr.bf16.gmra.mrb[84].mxu1 %v7597_v41  ;;  %3189 = vperm.xlu1 %5827, %v8665_v50   ;;  %v2936_v61 = vpack.c.bf16 %v2825_v2, %v2824_v38 }
 0x416   : > { %2581 = vmatprep.mubr.bf16.mxu1 %v7614_v49  ;;  %2500 = vmatprep.mubr.bf16.mxu0 %v7614_v49 }
 0x417   : > { %v7873_v3 = vpop.permute.xlu1 %2795 }
 0x419   : > { %5828 = vset.pattern.permute.xlu1 %v8645_v10  ;;  %v2662_v10 = vpop.permute.xlu0 %2661 }
 0x41a   : > { %3109 = vperm.xlu1 %5828, %v8665_v50   ;;  %v2695_v31 = vmul.f32 %v2662_v10, %v7337_v27  ;;  %v2823_v14 = vmul.f32 %v2662_v10, %v7542_v13 }
 0x41c   : > { %v2716_v33 = vpop.permute.xlu1 %2715  ;;  %2501 = vmatmul.mubr.bf16.gmra.mrb[56].mxu0 %v7645_v54  ;;  %v2854_v39 = vpack.c.bf16 %v2695_v31, %v2694_v22  ;;  %v2935_v48 = vpack.c.bf16 %v2823_v14, %v2822_v11 }
 0x41d   : > { %v7887_v59 = vmul.f32 %v2716_v33, %v7470_v32  ;;  %v7890_v52 = vmul.f32 %v2716_v33, %v7628_v4  ;;  %2582 = vmatmul.mubr.bf16.gmra.mrb[88].mxu1 %v7645_v54  ;;  %2508 = vmatprep.mubr.bf16.mxu0 %v7660_v47 }
 0x41e   : > { %5829 = vset.pattern.permute.xlu1 %v8652_v56  ;;  %2589 = vmatprep.mubr.bf16.mxu1 %v7660_v47 }
 0x41f   : > { %v2859_v34 = vpack.c.bf16 %v7887_v59, %v7880_v37  ;;  %v2940_v53 = vpack.c.bf16 %v7890_v52, %v7884_v26  ;;  %3181 = vperm.xlu1 %5829, %v8666_v1  }
 0x421   : > { %v2748_v56 = vpop.permute.xlu1 %2747 }
 0x422   : > { %v2775_v6 = vmul.f32 %v2748_v56, %v7345_v5  ;;  %v2839_v42 = vmul.f32 %v2748_v56, %v7529_v35 }
 0x423   : > { %5830 = vset.pattern.permute.xlu1 %v8648_v46 }
 0x424   : > { %v2862_v18 = vpack.c.bf16 %v2775_v6, %v2774_v60  ;;  %v2943_v58 = vpack.c.bf16 %v2839_v42, %v2838_v51  ;;  %3133 = vperm.xlu1 %5830, %v8660_v21   ;;  %2509 = vmatmul.mubr.bf16.gmra.mrb[60].mxu0 %v7681_v44  ;;  %v2696_v21 = vmul.f32 %v7855_v40, %v7337_v27  ;;  %v2708_v40 = vpop.permute.xlu0 %2707 }
 0x425   : > { %2590 = vmatmul.mubr.bf16.gmra.mrb[92].mxu1 %v7681_v44  ;;  %2902 = vmatprep.mubr.bf16.mxu0 %v7924_v55 }
 0x426   : > { %v2788_v9 = vpop.permute.xlu1 %2787  ;;  %5165 = vmatprep.subr.bf16.mxu0 %v2862_v18  ;;  %5205 = vmatprep.subr.bf16.mxu1 %v2943_v58  ;;  %v2855_v7 = vpack.c.bf16 %v2697_v19, %v2696_v21 }
 0x427   : > { %5166 = vmatpush3.bf16.msra.mxu0 %v2854_v39  ;;  %5206 = vmatpush3.bf16.msra.mxu1 %v2935_v48  ;;  %v2815_v39 = vmul.f32 %v2788_v9, %v7454_v28 }
 0x428   : > { %3137 = vperm.xlu1 %5830, %v8664_v30   ;;  %5167 = vmatprep.subr.bf16.mxu0 %v2863_v15  ;;  %v2687_v20 = vpop.permute.xlu0 %2686 }
 0x429   : > { %5207 = vmatprep.subr.bf16.mxu1 %v2944_v43  ;;  %2983 = vmatprep.mubr.bf16.mxu1 %v7924_v55  ;;  %v2847_v43 = vmul.f32 %v2788_v9, %v7605_v45  ;;  %v2734_v9 = vmul.f32 %v7857_v0, %v7470_v32 }
 0x42b   : > { %v2768_v23 = vpop.permute.xlu1 %2767  ;;  %5168 = vmatpush3.bf16.msra.mxu0 %v2855_v7  ;;  %5208 = vmatpush3.bf16.msra.mxu1 %v2936_v61 }
 0x42c   : > { %5834 = vset.pattern.permute.xlu1 %v8646_v29  ;;  %v7943_v22 = vpop.permute.xlu0 %2727  ;;  %v2780_v18 = vmul.f32 %v2768_v23, %v7345_v5  ;;  %v2844_v58 = vmul.f32 %v2768_v23, %v7529_v35  ;;  %v2814_v23 = vmul.f32 %v7875_v17, %v7454_v28 }
 0x42d   : > { %3225 = vperm.xlu1 %5834, %v8663_v36   ;;  %v2740_v52 = vmul.f32 %v7943_v22, %v7470_v32 }
 0x430   : > { %v7935_v25 = vpop.permute.xlu1 %2807  ;;  %v2760_v36 = vpop.permute.xlu0 %2759 }
 0x431   : > { %3221 = vperm.xlu1 %5834, %v8666_v1   ;;  %v2778_v56 = vmul.f32 %v2760_v36, %v7345_v5 }
 0x434   : > { %v7947_v51 = vpop.permute.xlu0 %2799 }
 0x435   : > { %3229 = vperm.xlu1 %5834, %v8665_v50   ;;  %v2677_v30 = vpop.permute.xlu1 %2676 }
 0x436   : > { %v2826_v31 = vmul.f32 %v2677_v30, %v7542_v13 }
 0x438   : > { %v2682_v11 = vpop.permute.xlu0 %2681 }
 0x439   : > { %5835 = vset.pattern.permute.xlu1 %v8648_v46  ;;  %v2842_v46 = vmul.f32 %v2760_v36, %v7529_v35  ;;  %v2699_v62 = vmul.f32 %v2682_v11, %v7337_v27  ;;  %v2827_v57 = vmul.f32 %v2682_v11, %v7542_v13  ;;  %v2828_v36 = vmul.f32 %v2687_v20, %v7542_v13 }
 0x43a   : > { %3149 = vperm.xlu1 %5835, %v8665_v50   ;;  %v7941_v33 = vpop.permute.xlu1 %2719  ;;  %v2698_v50 = vmul.f32 %v2677_v30, %v7337_v27  ;;  %v2846_v11 = vmul.f32 %v7875_v17, %v7605_v45  ;;  %v2735_v17 = vmul.f32 %v2708_v40, %v7470_v32 }
 0x43b   : > { %v2937_v15 = vpack.c.bf16 %v2827_v57, %v2826_v31  ;;  %v2866_v31 = vpack.c.bf16 %v2815_v39, %v2814_v23 }
 0x43c   : > { %v2856_v2 = vpack.c.bf16 %v2699_v62, %v2698_v50  ;;  %v2849_v50 = vmul.f32 %v7873_v3, %v7605_v45 }
 0x43f   : > { %v2772_v10 = vpop.permute.xlu1 %2771 }
 0x440   : > { %v2781_v6 = vmul.f32 %v2772_v10, %v7345_v5  ;;  %v2845_v42 = vmul.f32 %v2772_v10, %v7529_v35  ;;  %v2700_v10 = vmul.f32 %v2687_v20, %v7337_v27  ;;  %v2817_v20 = vmul.f32 %v7873_v3, %v7454_v28 }
 0x441   : > { %v2858_v3 = vpack.c.bf16 %v2735_v17, %v2734_v9 }
 0x442   : > { %v2865_v7 = vpack.c.bf16 %v2781_v6, %v2780_v18  ;;  %v2946_v61 = vpack.c.bf16 %v2845_v42, %v2844_v58  ;;  %v2831_v6 = vmul.f32 %v2708_v40, %v7628_v4  ;;  %v2818_v58 = vmul.f32 %v7947_v51, %v7454_v28 }
 0x444   : > { %v2692_v29 = vpop.permute.xlu1 %2691 }
 0x445   : > { %v2701_v21 = vmul.f32 %v2692_v29, %v7337_v27  ;;  %v2829_v38 = vmul.f32 %v2692_v29, %v7542_v13  ;;  %v2830_v29 = vmul.f32 %v7857_v0, %v7628_v4  ;;  %v2816_v0 = vmul.f32 %v7825_v24, %v7454_v28 }
 0x447   : > { %v2939_v62 = vpack.c.bf16 %v2831_v6, %v2830_v29  ;;  %v2867_v57 = vpack.c.bf16 %v2817_v20, %v2816_v0 }
 0x449   : > { %v7945_v60 = vpop.permute.xlu1 %2811 }
 0x44e   : > { %v7949_v1 = vpop.permute.xlu1 %2731 }
 0x44f   : > { %v2837_v37 = vmul.f32 %v7949_v1, %v7628_v4 }
 0x453   : > { %v2764_v12 = vpop.permute.xlu1 %2763 }
 0x454   : > { %v2779_v14 = vmul.f32 %v2764_v12, %v7345_v5  ;;  %v2843_v8 = vmul.f32 %v2764_v12, %v7529_v35  ;;  %v2947_v12 = vpack.c.bf16 %v2847_v43, %v2846_v11 }
 0x456   : > { %v2864_v48 = vpack.c.bf16 %v2779_v14, %v2778_v56  ;;  %v2945_v19 = vpack.c.bf16 %v2843_v8, %v2842_v46  ;;  %v2857_v56 = vpack.c.bf16 %v2701_v21, %v2700_v10  ;;  %v2938_v46 = vpack.c.bf16 %v2829_v38, %v2828_v36  ;;  %v2724_v8 = vpop.permute.xlu0 %2723 }
 0x457   : > { %v2848_v14 = vmul.f32 %v7825_v24, %v7605_v45  ;;  %v2853_v21 = vmul.f32 %v7945_v60, %v7605_v45  ;;  %v2741_v36 = vmul.f32 %v7949_v1, %v7470_v32 }
 0x458   : > { %v2804_v30 = vpop.permute.xlu1 %2803  ;;  %5169 = vmatprep.subr.bf16.mxu0 %v2864_v48  ;;  %5209 = vmatprep.subr.bf16.mxu1 %v2945_v19  ;;  %v2850_v48 = vmul.f32 %v7947_v51, %v7605_v45  ;;  %v2738_v19 = vmul.f32 %v7941_v33, %v7470_v32  ;;  %v2739_v51 = vmul.f32 %v2724_v8, %v7470_v32 }
 0x459   : > { %5170 = vmatpush3.bf16.msra.mxu0 %v2856_v2  ;;  %5210 = vmatpush3.bf16.msra.mxu1 %v2937_v15  ;;  %v2948_v39 = vpack.c.bf16 %v2849_v50, %v2848_v14  ;;  %v2819_v18 = vmul.f32 %v2804_v30, %v7454_v28  ;;  %v2851_v40 = vmul.f32 %v2804_v30, %v7605_v45 }
 0x45a   : > { %5171 = vmatprep.subr.bf16.mxu0 %v2865_v7  ;;  %5211 = vmatprep.subr.bf16.mxu1 %v2946_v61  ;;  %v2834_v2 = vmul.f32 %v7941_v33, %v7628_v4  ;;  %v2821_v15 = vmul.f32 %v7945_v60, %v7454_v28  ;;  %v2835_v7 = vmul.f32 %v2724_v8, %v7628_v4  ;;  %v3162_v61 = vpop.permute.xlu0 %3161 }
 0x45b   : > { %v2868_v38 = vpack.c.bf16 %v2819_v18, %v2818_v58  ;;  %v2949_v43 = vpack.c.bf16 %v2851_v40, %v2850_v48  ;;  %v2820_v33 = vmul.f32 %v7935_v25, %v7454_v28  ;;  %v2852_v60 = vmul.f32 %v7935_v25, %v7605_v45 }
 0x45c   : > { %v2860_v30 = vpack.c.bf16 %v2739_v51, %v2738_v19  ;;  %v2941_v10 = vpack.c.bf16 %v2835_v7, %v2834_v2  ;;  %v2861_v23 = vpack.c.bf16 %v2741_v36, %v2740_v52  ;;  %v3192_v17 = vmul.f32 %v3162_v61, %v7345_v5 }
 0x45d   : > { %v7983_v42 = vpop.permute.xlu1 %3169  ;;  %5172 = vmatpush3.bf16.msra.mxu0 %v2857_v56  ;;  %5212 = vmatpush3.bf16.msra.mxu1 %v2938_v46  ;;  %v2950_v26 = vpack.c.bf16 %v2853_v21, %v2852_v60  ;;  %v3256_v6 = vmul.f32 %v3162_v61, %v7529_v35 }
 0x45e   : > { %5173 = vmatprep.subr.bf16.mxu0 %v2866_v31  ;;  %5213 = vmatprep.subr.bf16.mxu1 %v2947_v12  ;;  %v8025_v25 = vpop.permute.xlu0 %3201  ;;  %v3194_v58 = vmul.f32 %v7983_v42, %v7345_v5 }
 0x461   : > { %5174 = vmatpush3.bf16.msra.mxu0 %v2858_v3  ;;  %5214 = vmatpush3.bf16.msra.mxu1 %v2939_v62 }
 0x462   : > { %v7995_v24 = vpop.permute.xlu1 %3209  ;;  %5175 = vmatprep.subr.bf16.mxu0 %v2867_v57  ;;  %5215 = vmatprep.subr.bf16.mxu1 %v2948_v39  ;;  %v8031_v1 = vpop.permute.xlu0 %3177 }
 0x465   : > { %5176 = vmatpush3.bf16.msra.mxu0 %v2859_v34  ;;  %5216 = vmatpush3.bf16.msra.mxu1 %v2940_v53  ;;  %v2869_v34 = vpack.c.bf16 %v2821_v15, %v2820_v33  ;;  %v2836_v53 = vmul.f32 %v7943_v22, %v7628_v4 }
 0x466   : > { %5177 = vmatprep.subr.bf16.mxu0 %v2868_v38  ;;  %5217 = vmatprep.subr.bf16.mxu1 %v2949_v43  ;;  %v8035_v56 = vpop.permute.xlu0 %3217 }
 0x467   : > { %v3075_v59 = vpop.permute.xlu1 %3074  ;;  %v2942_v11 = vpack.c.bf16 %v2837_v37, %v2836_v53 }
 0x468   : > { %v3240_v14 = vmul.f32 %v3075_v59, %v7542_v13 }
 0x469   : > { %5178 = vmatpush3.bf16.msra.mxu0 %v2860_v30  ;;  %5218 = vmatpush3.bf16.msra.mxu1 %v2941_v10 }
 0x46a   : > { %5179 = vmatprep.subr.bf16.mxu0 %v2869_v34  ;;  %5219 = vmatprep.subr.bf16.mxu1 %v2950_v26  ;;  %v3080_v50 = vpop.permute.xlu0 %3079 }
 0x46b   : > { %v3113_v39 = vmul.f32 %v3080_v50, %v7337_v27  ;;  %v3241_v18 = vmul.f32 %v3080_v50, %v7542_v13 }
 0x46c   : > { %v8027_v9 = vpop.permute.xlu1 %3121 }
 0x46d   : > { %5180 = vmatpush3.bf16.msra.mxu0 %v2861_v23  ;;  %5220 = vmatpush3.bf16.msra.mxu1 %v2942_v11  ;;  %v3353_v21 = vpack.c.bf16 %v3241_v18, %v3240_v14 }
 0x46e   : > { %v3085_v40 = vpop.permute.xlu0 %3084 }
 0x46f   : > { %v3242_v30 = vmul.f32 %v3085_v40, %v7542_v13 }
 0x470   : > { %2984 = vmatmul.mubr.bf16.vlgmr.msra.gmra.mrb[96].mxu1 %v7561_v63  ;;  %2903 = vmatmul.mubr.bf16.vlgmr.msra.gmra.mrb[64].mxu0 %v7561_v63 }
 0x471   : > { %v3174_v29 = vpop.permute.xlu1 %3173  ;;  %2991 = vmatprep.mubr.bf16.mxu1 %v7568_v16  ;;  %2910 = vmatprep.mubr.bf16.mxu0 %v7568_v16 }
 0x472   : > { %v3259_v3 = vmul.f32 %v3174_v29, %v7529_v35 }
 0x476   : > { %v3090_v22 = vpop.permute.xlu1 %3089 }
 0x477   : > { %v3115_v38 = vmul.f32 %v3090_v22, %v7337_v27 }
 0x478   : > { %2992 = vmatmul.mubr.bf16.gmra.mrb[100].mxu1 %v7597_v41  ;;  %2911 = vmatmul.mubr.bf16.gmra.mrb[68].mxu0 %v7597_v41  ;;  %v3112_v41 = vmul.f32 %v3075_v59, %v7337_v27 }
 0x479   : > { %2999 = vmatprep.mubr.bf16.mxu1 %v7614_v49  ;;  %2918 = vmatprep.mubr.bf16.mxu0 %v7614_v49  ;;  %v3195_v49 = vmul.f32 %v3174_v29, %v7345_v5 }
 0x47a   : > { %v3272_v15 = vpack.c.bf16 %v3113_v39, %v3112_v41 }
 0x47b   : > { %v8041_v46 = vpop.permute.xlu1 %3213  ;;  %v5021_v63 = vpop.f32.mrb[48].mxu1  ;;  %v3281_v51 = vpack.c.bf16 %v3195_v49, %v3194_v58  ;;  %v8087_v49 = vmul.f32 %v8025_v25, %v7454_v28 }
 0x47c   : > { %v5022_v20 = vpop.f32.mrb[49].mxu1 }
 0x47d   : > { %v8043_v31 = vadd.f32 %v5022_v20, %v5021_v63  ;;  %v5024_v12 = vpop.f32.mrb[50].mxu1  ;;  %v3105_v63 = vpop.permute.xlu0 %3104 }
 0x47e   : > { %v5025_v16 = vpop.f32.mrb[51].mxu1 }
 0x47f   : > { %v8047_v0 = vadd.f32 %v5025_v16, %v5024_v12 }
 0x480   : > { %v3166_v8 = vpop.permute.xlu1 %3165  ;;  %3000 = vmatmul.mubr.bf16.gmra.mrb[104].mxu1 %v7645_v54  ;;  %2919 = vmatmul.mubr.bf16.gmra.mrb[72].mxu0 %v7645_v54  ;;  %v3258_v54 = vmul.f32 %v7983_v42, %v7529_v35  ;;  %v3114_v42 = vmul.f32 %v3085_v40, %v7337_v27 }
 0x481   : > { %v3193_v62 = vmul.f32 %v3166_v8, %v7345_v5  ;;  %v3257_v57 = vmul.f32 %v3166_v8, %v7529_v35  ;;  %3007 = vmatprep.mubr.bf16.mxu1 %v7660_v47  ;;  %2926 = vmatprep.mubr.bf16.mxu0 %v7660_v47  ;;  %v3243_v47 = vmul.f32 %v3090_v22, %v7542_v13  ;;  %v3100_v41 = vpop.permute.xlu0 %3099 }
 0x482   : > { %v3362_v7 = vpack.c.bf16 %v3259_v3, %v3258_v54  ;;  %v3273_v37 = vpack.c.bf16 %v3115_v38, %v3114_v42  ;;  %v3196_v8 = vmul.f32 %v8031_v1, %v7345_v5  ;;  %v8094_v3 = vld [vmem:[%s8603_s2 + $0x6] ss:$0 sm:$0xff]  ;;  %v3117_v39 = vmul.f32 %v3100_v41, %v7337_v27 }
 0x483   : > { %v3280_v48 = vpack.c.bf16 %v3193_v62, %v3192_v17  ;;  %v3361_v19 = vpack.c.bf16 %v3257_v57, %v3256_v6  ;;  %v5027_v2 = vpop.f32.mrb[52].mxu1  ;;  %v3354_v59 = vpack.c.bf16 %v3243_v47, %v3242_v30  ;;  %v3260_v57 = vmul.f32 %v8031_v1, %v7529_v35 }
 0x484   : > { %v5028_v43 = vpop.f32.mrb[53].mxu1  ;;  %v3245_v18 = vmul.f32 %v3100_v41, %v7542_v13  ;;  %v3248_v41 = vmul.f32 %v8027_v9, %v7628_v4 }
 0x485   : > { %v3206_v61 = vpop.permute.xlu1 %3205  ;;  %5245 = vmatprep.subr.bf16.mxu0 %v3280_v48  ;;  %5285 = vmatprep.subr.bf16.mxu1 %v3361_v19  ;;  %v8067_v33 = vadd.f32 %v5028_v43, %v5027_v2  ;;  %v5030_v60 = vpop.f32.mrb[54].mxu1 }
 0x486   : > { %5246 = vmatpush3.bf16.msra.mxu0 %v3272_v15  ;;  %5286 = vmatpush3.bf16.msra.mxu1 %v3353_v21  ;;  %v5031_v10 = vpop.f32.mrb[55].mxu1 }
 0x487   : > { %5247 = vmatprep.subr.bf16.mxu0 %v3281_v51  ;;  %5287 = vmatprep.subr.bf16.mxu1 %v3362_v7  ;;  %v8071_v36 = vadd.f32 %v5031_v10, %v5030_v60  ;;  %v3233_v51 = vmul.f32 %v3206_v61, %v7454_v28  ;;  %v3265_v7 = vmul.f32 %v3206_v61, %v7605_v45 }
 0x488   : > { %3008 = vmatmul.mubr.bf16.gmra.mrb[108].mxu1 %v7681_v44  ;;  %2927 = vmatmul.mubr.bf16.gmra.mrb[76].mxu0 %v7681_v44  ;;  %v3264_v61 = vmul.f32 %v8025_v25, %v7605_v45  ;;  %v3235_v25 = vmul.f32 %v8041_v46, %v7454_v28 }
 0x489   : > { %3401 = vmatprep.mubr.bf16.mxu1 %v7924_v55  ;;  %3320 = vmatprep.mubr.bf16.mxu0 %v7924_v55 }
 0x48a   : > { %v3186_v34 = vpop.permute.xlu1 %3185  ;;  %5248 = vmatpush3.bf16.msra.mxu0 %v3273_v37  ;;  %5288 = vmatpush3.bf16.msra.mxu1 %v3354_v59 }
 0x48b   : > { %v5033_v26 = vpop.f32.mrb[56].mxu1  ;;  %v3198_v60 = vmul.f32 %v3186_v34, %v7345_v5  ;;  %v3262_v42 = vmul.f32 %v3186_v34, %v7529_v35  ;;  %v3118_v34 = vmul.f32 %v3105_v63, %v7337_v27 }
 0x48c   : > { %v5034_v52 = vpop.f32.mrb[57].mxu1 }
 0x48d   : > { %v8077_v53 = vadd.f32 %v5034_v52, %v5033_v26  ;;  %v5036_v23 = vpop.f32.mrb[58].mxu1  ;;  %v3126_v26 = vpop.permute.xlu0 %3125 }
 0x48e   : > { %v5037_v11 = vpop.f32.mrb[59].mxu1 }
 0x48f   : > { %v3095_v29 = vpop.permute.xlu1 %3094  ;;  %v8079_v22 = vadd.f32 %v5037_v11, %v5036_v23 }
 0x490   : > { %v3116_v54 = vmul.f32 %v3095_v29, %v7337_v27  ;;  %v3244_v48 = vmul.f32 %v3095_v29, %v7542_v13 }
 0x492   : > { %v3274_v52 = vpack.c.bf16 %v3117_v39, %v3116_v54  ;;  %v3355_v23 = vpack.c.bf16 %v3245_v18, %v3244_v48  ;;  %v3365_v39 = vpack.c.bf16 %v3265_v7, %v3264_v61  ;;  %v3249_v54 = vmul.f32 %v3126_v26, %v7628_v4  ;;  %v3130_v48 = vpop.permute.xlu0 %3129 }
 0x493   : > { %v5039_v20 = vpop.f32.mrb[60].mxu1 }
 0x494   : > { %v3190_v50 = vpop.permute.xlu1 %3189  ;;  %v5040_v44 = vpop.f32.mrb[61].mxu1 }
 0x495   : > { %v8081_v12 = vadd.f32 %v5040_v44, %v5039_v20  ;;  %v5042_v16 = vpop.f32.mrb[62].mxu1  ;;  %v3199_v19 = vmul.f32 %v3190_v50, %v7345_v5  ;;  %v3263_v2 = vmul.f32 %v3190_v50, %v7529_v35 }
 0x496   : > { %v5043_v55 = vpop.f32.mrb[63].mxu1 }
 0x497   : > { %v8083_v17 = vadd.f32 %v5043_v55, %v5042_v16  ;;  %v3283_v20 = vpack.c.bf16 %v3199_v19, %v3198_v60  ;;  %v3364_v50 = vpack.c.bf16 %v3263_v2, %v3262_v42  ;;  %v3246_v16 = vmul.f32 %v3105_v63, %v7542_v13 }
 0x498   : > { %v3266_v19 = vmul.f32 %v7995_v24, %v7605_v45  ;;  %v3154_v60 = vmul.f32 %v3130_v48, %v7470_v32 }
 0x499   : > { %v3110_v6 = vpop.permute.xlu1 %3109 }
 0x49a   : > { %v3119_v11 = vmul.f32 %v3110_v6, %v7337_v27  ;;  %v3247_v29 = vmul.f32 %v3110_v6, %v7542_v13  ;;  %v3152_v6 = vmul.f32 %v8027_v9, %v7470_v32  ;;  %v3267_v13 = vmul.f32 %v8041_v46, %v7605_v45 }
 0x49b   : > { %v5061_v14 = vpop.f32.mrb[64].mxu1  ;;  %v3234_v46 = vmul.f32 %v7995_v24, %v7454_v28  ;;  %v3250_v24 = vmul.f32 %v3130_v48, %v7628_v4 }
 0x49c   : > { %v5062_v62 = vpop.f32.mrb[65].mxu1  ;;  %v3275_v27 = vpack.c.bf16 %v3119_v11, %v3118_v34  ;;  %v3356_v63 = vpack.c.bf16 %v3247_v29, %v3246_v16 }
 0x49d   : > { %v5063_v40 = vadd.f32 %v5062_v62, %v5061_v14  ;;  %v5064_v58 = vpop.f32.mrb[66].mxu1 }
 0x49e   : > { %v3182_v15 = vpop.permute.xlu1 %3181  ;;  %v5065_v21 = vpop.f32.mrb[67].mxu1 }
 0x49f   : > { %v3197_v38 = vmul.f32 %v3182_v15, %v7345_v5  ;;  %v3261_v1 = vmul.f32 %v3182_v15, %v7529_v35  ;;  %v2150_v47 = vadd.f32 %v5063_v40, %v8094_v3  ;;  %v5066_v43 = vadd.f32 %v5065_v21, %v5064_v58 }
 0x4a0   : > { %v3153_v58 = vmul.f32 %v3126_v26, %v7470_v32  ;;  %v3357_v21 = vpack.c.bf16 %v3249_v54, %v3248_v41 }
 0x4a1   : > { %v3282_v30 = vpack.c.bf16 %v3197_v38, %v3196_v8  ;;  %v3363_v10 = vpack.c.bf16 %v3261_v1, %v3260_v57  ;;  %v4792_v37 = vmul.f32 -1.442695, %v2150_v47  ;;  %v2153_v59 = vadd.f32 %v5066_v43, %v8094_v3 }
 0x4a2   : > { %v3284_v57 = vpack.c.bf16 %v3233_v51, %v8087_v49  ;;  %v3276_v15 = vpack.c.bf16 %v3153_v58, %v3152_v6  ;;  %v3285_v47 = vpack.c.bf16 %v3235_v25, %v3234_v46  ;;  %v3366_v43 = vpack.c.bf16 %v3267_v13, %v3266_v19 }
 0x4a3   : > { %v3134_v44 = vpop.permute.xlu1 %3133  ;;  %5249 = vmatprep.subr.bf16.mxu0 %v3282_v30  ;;  %5289 = vmatprep.subr.bf16.mxu1 %v3363_v10  ;;  %6153 = vpow2.f32 %v4792_v37  ;;  %v4793_v5 = vmul.f32 -1.442695, %v2153_v59  ;;  %v5067_v35 = vpop.f32.mrb[68].mxu1 }
 0x4a4   : > { %5250 = vmatpush3.bf16.msra.mxu0 %v3274_v52  ;;  %5290 = vmatpush3.bf16.msra.mxu1 %v3355_v23  ;;  %v5068_v55 = vpop.f32.mrb[69].mxu1  ;;  %v3155_v38 = vmul.f32 %v3134_v44, %v7470_v32  ;;  %v3251_v1 = vmul.f32 %v3134_v44, %v7628_v4  ;;  %v3142_v44 = vpop.permute.xlu0 %3141 }
 0x4a5   : > { %5251 = vmatprep.subr.bf16.mxu0 %v3283_v20  ;;  %5291 = vmatprep.subr.bf16.mxu1 %v3364_v50  ;;  %6155 = vpow2.f32 %v4793_v5  ;;  %v5069_v14 = vadd.f32 %v5068_v55, %v5067_v35  ;;  %v5070_v8 = vpop.f32.mrb[70].mxu1  ;;  %v3236_v20 = vmul.f32 %v8035_v56, %v7454_v28  ;;  %v3268_v50 = vmul.f32 %v8035_v56, %v7605_v45 }
 0x4a6   : > { %v5071_v62 = vpop.f32.mrb[71].mxu1  ;;  %v3277_v26 = vpack.c.bf16 %v3155_v38, %v3154_v60  ;;  %v3358_v52 = vpack.c.bf16 %v3251_v1, %v3250_v24  ;;  %v3253_v25 = vmul.f32 %v3142_v44, %v7628_v4 }
 0x4a7   : > { %v3138_v18 = vpop.permute.xlu1 %3137  ;;  %v2158_v9 = vadd.f32 %v5069_v14, %v8094_v3  ;;  %v5072_v40 = vadd.f32 %v5071_v62, %v5070_v8  ;;  %v3157_v8 = vmul.f32 %v3142_v44, %v7470_v32 }
 0x4a8   : > { %5252 = vmatpush3.bf16.msra.mxu0 %v3275_v27  ;;  %5292 = vmatpush3.bf16.msra.mxu1 %v3356_v63  ;;  %v3156_v61 = vmul.f32 %v3138_v18, %v7470_v32  ;;  %v3252_v34 = vmul.f32 %v3138_v18, %v7628_v4  ;;  %v8154_v63 = vld [vmem:[%s8603_s2 + $0x5] ss:$0 sm:$0xff] }
 0x4a9   : > { %5253 = vmatprep.subr.bf16.mxu0 %v3284_v57  ;;  %5293 = vmatprep.subr.bf16.mxu1 %v3365_v39  ;;  %v4794_v49 = vmul.f32 -1.442695, %v2158_v9  ;;  %v2161_v2 = vadd.f32 %v5072_v40, %v8094_v3 }
 0x4aa   : > { %v3278_v39 = vpack.c.bf16 %v3157_v8, %v3156_v61  ;;  %v3359_v18 = vpack.c.bf16 %v3253_v25, %v3252_v34  ;;  %v5874_v61 = vld [vmem:[%s8602_s1 + $0x208] sm:$0xff]  }
 0x4ab   : > { %6157 = vpow2.f32 %v4794_v49  ;;  %v4795_v51 = vmul.f32 -1.442695, %v2161_v2  ;;  %v5073_v7 = vpop.f32.mrb[72].mxu1 }
 0x4ac   : > { %v3226_v42 = vpop.permute.xlu1 %3225  ;;  %5254 = vmatpush3.bf16.msra.mxu0 %v3276_v15  ;;  %5294 = vmatpush3.bf16.msra.mxu1 %v3357_v21  ;;  %v5074_v30 = vpop.f32.mrb[73].mxu1  ;;  %v2065_v21 = vadd.f32 %v8043_v31, %v8154_v63 }
 0x4ad   : > { %v6154_v10 = vpop.eup %6153  ;;  %5255 = vmatprep.subr.bf16.mxu0 %v3285_v47  ;;  %5295 = vmatprep.subr.bf16.mxu1 %v3366_v43  ;;  %6159 = vpow2.f32 %v4795_v51  ;;  %v5075_v37 = vadd.f32 %v5074_v30, %v5073_v7  ;;  %v5076_v59 = vpop.f32.mrb[74].mxu1  ;;  %v3238_v9 = vmul.f32 %v3226_v42, %v7454_v28  ;;  %v3270_v40 = vmul.f32 %v3226_v42, %v7605_v45 }
 0x4ae   : > { %v2204_v23 = vadd.f32 1.0, %v6154_v10  ;;  %v5077_v11 = vpop.f32.mrb[75].mxu1  ;;  %v3146_v15 = vpop.permute.xlu0 %3145  ;;  %v2068_v42 = vadd.f32 %v8047_v0, %v8154_v63  ;;  %v5880_v0 = vld [vmem:[%s8602_s1 + $0x1c0] sm:$0xff]  }
 0x4af   : > { %v6156_v29 = vpop.eup %6155  ;;  %v2166_v5 = vadd.f32 %v5075_v37, %v8094_v3  ;;  %v5078_v35 = vadd.f32 %v5077_v11, %v5076_v59  ;;  %v3158_v60 = vmul.f32 %v3146_v15, %v7470_v32  ;;  %v3254_v37 = vmul.f32 %v3146_v15, %v7628_v4 }
 0x4b0   : > { %v3222_v16 = vpop.permute.xlu1 %3221  ;;  %5256 = vmatpush3.bf16.msra.mxu0 %v3277_v26  ;;  %5296 = vmatpush3.bf16.msra.mxu1 %v3358_v52  ;;  %6161 = vrcp.f32 %v2204_v23  ;;  %v2205_v55 = vadd.f32 1.0, %v6156_v29  ;;  %v5873_v52 = vld [vmem:[%s8602_s1 + $0x200] sm:$0xff]   ;;  %v2089_v15 = vadd.f32 %v8081_v12, %v8154_v63 }
 0x4b1   : > { %v3237_v6 = vmul.f32 %v3222_v16, %v7454_v28  ;;  %v3269_v41 = vmul.f32 %v3222_v16, %v7605_v45  ;;  %v4796_v14 = vmul.f32 -1.442695, %v2166_v5  ;;  %v2169_v56 = vadd.f32 %v5078_v35, %v8094_v3 }
 0x4b2   : > { %6163 = vrcp.f32 %v2205_v55  ;;  %v2073_v35 = vadd.f32 %v8067_v33, %v8154_v63  ;;  %v6410_v55 = vld [vmem:[%s8604_s3] ss:$8 sps:$4 sm:$0xff]  }
 0x4b3   : > { %v3286_v13 = vpack.c.bf16 %v3237_v6, %v3236_v20  ;;  %v3367_v27 = vpack.c.bf16 %v3269_v41, %v3268_v50  ;;  %6165 = vpow2.f32 %v4796_v14  ;;  %v4797_v62 = vmul.f32 -1.442695, %v2169_v56  ;;  %v5079_v57 = vpop.f32.mrb[76].mxu1  ;;  %v5882_v33 = vld [vmem:[%s8602_s1 + $0x1c8] sm:$0xff]   ;;  %v6411_v14 = vld [vmem:[%s8604_s3 + $0x14] ss:$8 sps:$4 sm:$0xff]  }
 0x4b4   : > { %v3230_v58 = vpop.permute.xlu1 %3229  ;;  %v5080_v54 = vpop.f32.mrb[77].mxu1  ;;  %v2076_v6 = vadd.f32 %v8071_v36, %v8154_v63  ;;  %v5875_v56 = vld [vmem:[%s8602_s1 + $0x210] sm:$0xff]  }
 0x4b5   : > { %v6158_v48 = vpop.eup %6157  ;;  %v3239_v46 = vmul.f32 %v3230_v58, %v7454_v28  ;;  %v3271_v19 = vmul.f32 %v3230_v58, %v7605_v45  ;;  %5257 = vmatprep.subr.bf16.mxu0 %v3286_v13  ;;  %5297 = vmatprep.subr.bf16.mxu1 %v3367_v27  ;;  %6167 = vpow2.f32 %v4797_v62  ;;  %v5081_v49 = vadd.f32 %v5080_v54, %v5079_v57  ;;  %v5082_v2 = vpop.f32.mrb[78].mxu1  ;;  %v6412_v58 = vld [vmem:[%s8604_s3 + $0x10] ss:$8 sps:$4 sm:$0xff]  }
 0x4b6   : > { %5258 = vmatpush3.bf16.msra.mxu0 %v3278_v39  ;;  %5298 = vmatpush3.bf16.msra.mxu1 %v3359_v18  ;;  %v2206_v38 = vadd.f32 1.0, %v6158_v48  ;;  %v5083_v1 = vpop.f32.mrb[79].mxu1  ;;  %v2081_v57 = vadd.f32 %v8077_v53, %v8154_v63  ;;  %v5876_v39 = vld [vmem:[%s8602_s1 + $0x218] sm:$0xff]   ;;  %v2084_v53 = vadd.f32 %v8079_v22, %v8154_v63  ;;  %v6413_v48 = vld [vmem:[%s8604_s3 + $0x24] ss:$8 sps:$4 sm:$0xff]  }
 0x4b7   : > { %v6160_v47 = vpop.eup %6159  ;;  %v3287_v43 = vpack.c.bf16 %v3239_v46, %v3238_v9  ;;  %v3368_v51 = vpack.c.bf16 %v3271_v19, %v3270_v40  ;;  %v2174_v28 = vadd.f32 %v5081_v49, %v8094_v3  ;;  %v5084_v7 = vadd.f32 %v5083_v1, %v5082_v2  ;;  %v5883_v40 = vld [vmem:[%s8602_s1 + $0x1d0] sm:$0xff]   ;;  %v5884_v46 = vld [vmem:[%s8602_s1 + $0x1d8] sm:$0xff]   ;;  %v5877_v19 = vld [vmem:[%s8602_s1 + $0x220] sm:$0xff]  }
 0x4b8   : > { %6169 = vrcp.f32 %v2206_v38  ;;  %v2207_v45 = vadd.f32 1.0, %v6160_v47  ;;  %v6414_v1 = vld [vmem:[%s8604_s3 + $0x20] ss:$8 sps:$4 sm:$0xff]   ;;  %v2092_v47 = vadd.f32 %v8083_v17, %v8154_v63 }
 0x4b9   : > { %v3150_v24 = vpop.permute.xlu1 %3149  ;;  %5259 = vmatprep.subr.bf16.mxu0 %v3287_v43  ;;  %5299 = vmatprep.subr.bf16.mxu1 %v3368_v51  ;;  %v4798_v30 = vmul.f32 -1.442695, %v2174_v28  ;;  %v2177_v31 = vadd.f32 %v5084_v7, %v8094_v3  ;;  %v5885_v43 = vld [vmem:[%s8602_s1 + $0x1e0] sm:$0xff]   ;;  %v6415_v51 = vld [vmem:[%s8604_s3 + $0x34] ss:$8 sps:$4 sm:$0xff]  }
 0x4ba   : > { %v6162_v10 = vpop.eup %6161  ;;  %v3159_v59 = vmul.f32 %v3150_v24, %v7470_v32  ;;  %v3255_v26 = vmul.f32 %v3150_v24, %v7628_v4  ;;  %6171 = vrcp.f32 %v2207_v45  ;;  %v5879_v28 = vld [vmem:[%s8602_s1 + $0x230] sm:$0xff]  }
 0x4bb   : > { %6173 = vpow2.f32 %v4798_v30  ;;  %v4799_v23 = vmul.f32 -1.442695, %v2177_v31  ;;  %v2228_v11 = vmul.f32 %v6162_v10, %v2065_v21  ;;  %v5878_v21 = vld [vmem:[%s8602_s1 + $0x228] sm:$0xff]   ;;  %v6416_v30 = vld [vmem:[%s8604_s3 + $0x30] ss:$8 sps:$4 sm:$0xff]  }
 0x4bc   : > { %v6164_v29 = vpop.eup %6163  ;;  %v3279_v20 = vpack.c.bf16 %v3159_v59, %v3158_v60  ;;  %v3360_v50 = vpack.c.bf16 %v3255_v26, %v3254_v37  ;;  %v5881_v60 = vld [vmem:[%s8602_s1 + $0x238] sm:$0xff]   ;;  %v5887_v31 = vld [vmem:[%s8602_s1 + $0x1f0] sm:$0xff]  }
 0x4bd   : > { %v6166_v44 = vpop.eup %6165  ;;  %6175 = vpow2.f32 %v4799_v23  ;;  %v2229_v32 = vmul.f32 %v6164_v29, %v2068_v42  ;;  %v5886_v42 = vld [vmem:[%s8602_s1 + $0x1e8] sm:$0xff]   ;;  %v5888_v10 = vld [vmem:[%s8602_s1 + $0x1f8] sm:$0xff]  }
 0x4be   : > { %5260 = vmatpush3.bf16.msra.mxu0 %v3279_v20  ;;  %5300 = vmatpush3.bf16.msra.mxu1 %v3360_v50  ;;  %v2208_v4 = vadd.f32 1.0, %v6166_v44 }
 0x4bf   : > { %v6168_v5 = vpop.eup %6167  ;;  %5589 = vmatprep.subr.bf16.mxu1 %v5873_v52  ;;  %5541 = vmatprep.subr.bf16.mxu0 %v5880_v0  ;;  %v8181_v34 = vpack.c.bf16 %v2229_v32, %v2228_v11 }
 0x4c0   : > { %6177 = vrcp.f32 %v2208_v4  ;;  %v2209_v16 = vadd.f32 1.0, %v6168_v5 }
 0x4c1   : > { %3402 = vmatmul.mubr.bf16.vlgmr.msra.gmra.mrb[112].mxu1 %v6410_v55  ;;  %3321 = vmatmul.mubr.bf16.vlgmr.msra.gmra.mrb[80].mxu0 %v6410_v55 }
 0x4c2   : > { %v6170_v41 = vpop.eup %6169  ;;  %3409 = vmatprep.mubr.bf16.mxu1 %v6411_v14  ;;  %6179 = vrcp.f32 %v2209_v16  ;;  %5590 = vmatpush3.bf16.msra.mxu1 %v5873_v52 }
 0x4c3   : > { %3328 = vmatprep.mubr.bf16.mxu0 %v6411_v14  ;;  %5591 = vmatprep.subr.bf16.mxu1 %v5874_v61  ;;  %v2230_v36 = vmul.f32 %v6170_v41, %v2073_v35 }
 0x4c4   : > { %v6172_v8 = vpop.eup %6171  ;;  %5542 = vmatpush3.bf16.msra.mxu0 %v5880_v0 }
 0x4c5   : > { %v6174_v25 = vpop.eup %6173  ;;  %5543 = vmatprep.subr.bf16.mxu0 %v5882_v33  ;;  %v2231_v13 = vmul.f32 %v6172_v8, %v2076_v6 }
 0x4c6   : > { %v2210_v27 = vadd.f32 1.0, %v6174_v25  ;;  %5592 = vmatpush3.bf16.msra.mxu1 %v5874_v61 }
 0x4c7   : > { %v6176_v62 = vpop.eup %6175  ;;  %5593 = vmatprep.subr.bf16.mxu1 %v5875_v56  ;;  %v8202_v18 = vpack.c.bf16 %v2231_v13, %v2230_v36 }
 0x4c8   : > { %6181 = vrcp.f32 %v2210_v27  ;;  %v2211_v9 = vadd.f32 1.0, %v6176_v62  ;;  %5544 = vmatpush3.bf16.msra.mxu0 %v5882_v33 }
 0x4c9   : > { %3410 = vmatmul.mubr.bf16.gmra.mrb[116].mxu1 %v6412_v58  ;;  %3329 = vmatmul.mubr.bf16.gmra.mrb[84].mxu0 %v6412_v58 }
 0x4ca   : > { %v6178_v54 = vpop.eup %6177  ;;  %3417 = vmatprep.mubr.bf16.mxu1 %v6413_v48  ;;  %6183 = vrcp.f32 %v2211_v9  ;;  %5594 = vmatpush3.bf16.msra.mxu1 %v5875_v56 }
 0x4cb   : > { %3336 = vmatprep.mubr.bf16.mxu0 %v6413_v48  ;;  %5595 = vmatprep.subr.bf16.mxu1 %v5876_v39  ;;  %v2232_v22 = vmul.f32 %v6178_v54, %v2081_v57 }
 0x4cc   : > { %v6180_v49 = vpop.eup %6179  ;;  %5545 = vmatprep.subr.bf16.mxu0 %v5883_v40 }
 0x4cd   : > { %5546 = vmatpush3.bf16.msra.mxu0 %v5883_v40  ;;  %v2233_v2 = vmul.f32 %v6180_v49, %v2084_v53 }
 0x4ce   : > { %5596 = vmatpush3.bf16.msra.mxu1 %v5876_v39  ;;  %5547 = vmatprep.subr.bf16.mxu0 %v5884_v46 }
 0x4cf   : > { %5597 = vmatprep.subr.bf16.mxu1 %v5877_v19  ;;  %v3492_v38 = vpack.c.bf16 %v2233_v2, %v2232_v22 }
 0x4d1   : > { %3418 = vmatmul.mubr.bf16.gmra.mrb[120].mxu1 %v6414_v1  ;;  %3337 = vmatmul.mubr.bf16.gmra.mrb[88].mxu0 %v6414_v1 }
 0x4d2   : > { %v6182_v12 = vpop.eup %6181  ;;  %3425 = vmatprep.mubr.bf16.mxu1 %v6415_v51  ;;  %5598 = vmatpush3.bf16.msra.mxu1 %v5877_v19 }
 0x4d3   : > { %3344 = vmatprep.mubr.bf16.mxu0 %v6415_v51  ;;  %5599 = vmatprep.subr.bf16.mxu1 %v5878_v21  ;;  %v2234_v7 = vmul.f32 %v6182_v12, %v2089_v15 }
 0x4d4   : > { %v6184_v17 = vpop.eup %6183  ;;  %5548 = vmatpush3.bf16.msra.mxu0 %v5884_v46 }
 0x4d5   : > { %v2235_v45 = vmul.f32 %v6184_v17, %v2092_v47  ;;  %5549 = vmatprep.subr.bf16.mxu0 %v5885_v43 }
 0x4d6   : > { %5600 = vmatpush3.bf16.msra.mxu1 %v5878_v21 }
 0x4d7   : > { %5601 = vmatprep.subr.bf16.mxu1 %v5879_v28  ;;  %v3493_v24 = vpack.c.bf16 %v2235_v45, %v2234_v7 }
 0x4d8   : > { %5550 = vmatpush3.bf16.msra.mxu0 %v5885_v43 }
 0x4d9   : > { %3426 = vmatmul.mubr.bf16.gmra.mrb[124].mxu1 %v6416_v30  ;;  %3345 = vmatmul.mubr.bf16.gmra.mrb[92].mxu0 %v6416_v30 }
 0x4da   : > { %5602 = vmatpush3.bf16.msra.mxu1 %v5879_v28  ;;  %5605 = vmatprep.mubr.bf16.mxu1 %v8181_v34 }
 0x4db   : > { %5603 = vmatprep.subr.bf16.mxu1 %v5881_v60  ;;  %5551 = vmatprep.subr.bf16.mxu0 %v5886_v42 }
 0x4dc   : > { %5552 = vmatpush3.bf16.msra.mxu0 %v5886_v42  ;;  %5557 = vmatprep.mubr.bf16.mxu0 %v8181_v34 }
 0x4dd   : > { %5553 = vmatprep.subr.bf16.mxu0 %v5887_v31 }
 0x4de   : > { %5604 = vmatpush3.bf16.msra.mxu1 %v5881_v60 }
 0x4df   : > { %v5101_v37 = vpop.f32.mrb[48].mxu0 }
 0x4e0   : > { %v5141_v59 = vpop.f32.mrb[80].mxu1  ;;  %v5102_v26 = vpop.f32.mrb[49].mxu0  ;;  %5554 = vmatpush3.bf16.msra.mxu0 %v5887_v31 }
 0x4e1   : > { %v5142_v52 = vpop.f32.mrb[81].mxu1  ;;  %5606 = vmatmul.mubr.bf16.vlgmr.msra.gmra.mrb[128].mxu1 %v8202_v18  ;;  %v8258_v23 = vadd.f32 %v5102_v26, %v5101_v37  ;;  %v5104_v0 = vpop.f32.mrb[50].mxu0  ;;  %5555 = vmatprep.subr.bf16.mxu0 %v5888_v10 }
 0x4e2   : > { %v5143_v11 = vadd.f32 %v5142_v52, %v5141_v59  ;;  %v5144_v29 = vpop.f32.mrb[82].mxu1  ;;  %v5105_v20 = vpop.f32.mrb[51].mxu0  ;;  %5609 = vmatprep.mubr.bf16.mxu1 %v3492_v38 }
 0x4e3   : > { %v5145_v50 = vpop.f32.mrb[83].mxu1  ;;  %v8260_v44 = vadd.f32 %v5105_v20, %v5104_v0 }
 0x4e4   : > { %v2568_v32 = vadd.f32 %v5143_v11, %v8094_v3  ;;  %v5146_v4 = vadd.f32 %v5145_v50, %v5144_v29  ;;  %5556 = vmatpush3.bf16.msra.mxu0 %v5888_v10  ;;  %v2487_v29 = vadd.f32 %v8258_v23, %v8154_v63 }
 0x4e6   : > { %v4800_v5 = vmul.f32 -1.442695, %v2568_v32  ;;  %v2571_v35 = vadd.f32 %v5146_v4, %v8094_v3  ;;  %v2490_v4 = vadd.f32 %v8260_v44, %v8154_v63 }
 0x4e7   : > { %v5107_v61 = vpop.f32.mrb[52].mxu0  ;;  %5558 = vmatmul.mubr.bf16.vlgmr.msra.gmra.mrb[96].mxu0 %v8202_v18 }
 0x4e8   : > { %6185 = vpow2.f32 %v4800_v5  ;;  %v4801_v34 = vmul.f32 -1.442695, %v2571_v35  ;;  %v5147_v16 = vpop.f32.mrb[84].mxu1  ;;  %v5108_v55 = vpop.f32.mrb[53].mxu0  ;;  %5561 = vmatprep.mubr.bf16.mxu0 %v3492_v38 }
 0x4e9   : > { %v5148_v6 = vpop.f32.mrb[85].mxu1  ;;  %v8265_v33 = vadd.f32 %v5108_v55, %v5107_v61  ;;  %v5110_v41 = vpop.f32.mrb[54].mxu0  ;;  %5610 = vmatmul.mubr.bf16.gmra.mrb[132].mxu1 %v3493_v24 }
 0x4ea   : > { %6187 = vpow2.f32 %v4801_v34  ;;  %v5149_v14 = vadd.f32 %v5148_v6, %v5147_v16  ;;  %v5150_v56 = vpop.f32.mrb[86].mxu1  ;;  %v5111_v36 = vpop.f32.mrb[55].mxu0 }
 0x4eb   : > { %v5151_v8 = vpop.f32.mrb[87].mxu1  ;;  %v8267_v25 = vadd.f32 %v5111_v36, %v5110_v41  ;;  %v2495_v23 = vadd.f32 %v8265_v33, %v8154_v63 }
 0x4ec   : > { %v2576_v13 = vadd.f32 %v5149_v14, %v8094_v3  ;;  %v5152_v27 = vadd.f32 %v5151_v8, %v5150_v56 }
 0x4ed   : > { %v2498_v44 = vadd.f32 %v8267_v25, %v8154_v63 }
 0x4ee   : > { %v4802_v62 = vmul.f32 -1.442695, %v2576_v13  ;;  %v2579_v57 = vadd.f32 %v5152_v27, %v8094_v3 }
 0x4ef   : > { %v5113_v39 = vpop.f32.mrb[56].mxu0  ;;  %5562 = vmatmul.mubr.bf16.gmra.mrb[100].mxu0 %v3493_v24 }
 0x4f0   : > { %6189 = vpow2.f32 %v4802_v62  ;;  %v4803_v18 = vmul.f32 -1.442695, %v2579_v57  ;;  %v5153_v9 = vpop.f32.mrb[88].mxu1  ;;  %v5114_v40 = vpop.f32.mrb[57].mxu0 }
 0x4f1   : > { %v5154_v58 = vpop.f32.mrb[89].mxu1  ;;  %v8271_v53 = vadd.f32 %v5114_v40, %v5113_v39  ;;  %v5116_v54 = vpop.f32.mrb[58].mxu0 }
 0x4f2   : > { %v6186_v48 = vpop.eup %6185  ;;  %6191 = vpow2.f32 %v4803_v18  ;;  %v5155_v46 = vadd.f32 %v5154_v58, %v5153_v9  ;;  %v5156_v19 = vpop.f32.mrb[90].mxu1 }
 0x4f3   : > { %v5117_v22 = vpop.f32.mrb[59].mxu0  ;;  %v2622_v49 = vadd.f32 1.0, %v6186_v48  ;;  %v5157_v2 = vpop.f32.mrb[91].mxu1  ;;  %v2503_v33 = vadd.f32 %v8271_v53, %v8154_v63 }
 0x4f4   : > { %v8273_v15 = vadd.f32 %v5117_v22, %v5116_v54  ;;  %v6188_v21 = vpop.eup %6187  ;;  %v2584_v38 = vadd.f32 %v5155_v46, %v8094_v3  ;;  %v5158_v1 = vadd.f32 %v5157_v2, %v5156_v19 }
 0x4f5   : > { %6193 = vrcp.f32 %v2622_v49  ;;  %v2623_v47 = vadd.f32 1.0, %v6188_v21 }
 0x4f6   : > { %v4804_v43 = vmul.f32 -1.442695, %v2584_v38  ;;  %v2587_v12 = vadd.f32 %v5158_v1, %v8094_v3  ;;  %v2506_v25 = vadd.f32 %v8273_v15, %v8154_v63 }
 0x4f7   : > { %6195 = vrcp.f32 %v2623_v47  ;;  %v5119_v51 = vpop.f32.mrb[60].mxu0 }
 0x4f8   : > { %6197 = vpow2.f32 %v4804_v43  ;;  %v4805_v28 = vmul.f32 -1.442695, %v2587_v12  ;;  %v5159_v7 = vpop.f32.mrb[92].mxu1  ;;  %v5120_v17 = vpop.f32.mrb[61].mxu0 }
 0x4f9   : > { %v5160_v45 = vpop.f32.mrb[93].mxu1  ;;  %v5121_v60 = vadd.f32 %v5120_v17, %v5119_v51  ;;  %v5122_v24 = vpop.f32.mrb[62].mxu0 }
 0x4fa   : > { %v6190_v42 = vpop.eup %6189  ;;  %6199 = vpow2.f32 %v4805_v28  ;;  %v5161_v30 = vadd.f32 %v5160_v45, %v5159_v7  ;;  %v5162_v31 = vpop.f32.mrb[94].mxu1 }
 0x4fb   : > { %v5123_v10 = vpop.f32.mrb[63].mxu0  ;;  %v2624_v37 = vadd.f32 1.0, %v6190_v42  ;;  %v5163_v59 = vpop.f32.mrb[95].mxu1  ;;  %v2511_v46 = vadd.f32 %v5121_v60, %v8154_v63 }
 0x4fc   : > { %v5124_v26 = vadd.f32 %v5123_v10, %v5122_v24  ;;  %v6192_v52 = vpop.eup %6191  ;;  %v2592_v0 = vadd.f32 %v5161_v30, %v8094_v3  ;;  %v5164_v11 = vadd.f32 %v5163_v59, %v5162_v31 }
 0x4fd   : > { %6201 = vrcp.f32 %v2624_v37  ;;  %v2625_v20 = vadd.f32 1.0, %v6192_v52 }
 0x4fe   : > { %v4806_v50 = vmul.f32 -1.442695, %v2592_v0  ;;  %v2595_v32 = vadd.f32 %v5164_v11, %v8094_v3  ;;  %v2514_v22 = vadd.f32 %v5124_v26, %v8154_v63 }
 0x4ff   : > { %v6194_v5 = vpop.eup %6193  ;;  %6203 = vrcp.f32 %v2625_v20 }
 0x500   : > { %6205 = vpow2.f32 %v4806_v50  ;;  %v4807_v35 = vmul.f32 -1.442695, %v2595_v32  ;;  %v2646_v61 = vmul.f32 %v6194_v5, %v2487_v29 }
 0x501   : > { %v6196_v34 = vpop.eup %6195 }
 0x502   : > { %v6198_v16 = vpop.eup %6197  ;;  %6207 = vpow2.f32 %v4807_v35  ;;  %v2647_v55 = vmul.f32 %v6196_v34, %v2490_v4 }
 0x503   : > { %v2626_v6 = vadd.f32 1.0, %v6198_v16  ;;  %v5889_v16 = vld [vmem:[%s8602_s1 + $0x240] sm:$0xff]  }
 0x504   : > { %v6200_v41 = vpop.eup %6199  ;;  %v3494_v14 = vpack.c.bf16 %v2647_v55, %v2646_v61  ;;  %v5890_v55 = vld [vmem:[%s8602_s1 + $0x248] sm:$0xff]   ;;  %5637 = vmatprep.subr.bf16.mxu0 %v5889_v16 }
 0x505   : > { %6209 = vrcp.f32 %v2626_v6  ;;  %v2627_v56 = vadd.f32 1.0, %v6200_v41  ;;  %5638 = vmatpush3.bf16.msra.mxu0 %v5889_v16 }
 0x506   : > { %5613 = vmatprep.mubr.bf16.mxu1 %v3494_v14  ;;  %5565 = vmatprep.mubr.bf16.mxu0 %v3494_v14 }
 0x507   : > { %v6202_v36 = vpop.eup %6201  ;;  %6211 = vrcp.f32 %v2627_v56  ;;  %5639 = vmatprep.subr.bf16.mxu0 %v5890_v55 }
 0x508   : > { %v2648_v8 = vmul.f32 %v6202_v36, %v2495_v23 }
 0x509   : > { %v6204_v13 = vpop.eup %6203  ;;  %5640 = vmatpush3.bf16.msra.mxu0 %v5890_v55 }
 0x50a   : > { %v6206_v27 = vpop.eup %6205  ;;  %v2649_v62 = vmul.f32 %v6204_v13, %v2498_v44 }
 0x50b   : > { %v2628_v57 = vadd.f32 1.0, %v6206_v27 }
 0x50c   : > { %v6208_v39 = vpop.eup %6207  ;;  %v3495_v18 = vpack.c.bf16 %v2649_v62, %v2648_v8 }
 0x50d   : > { %6213 = vrcp.f32 %v2628_v57  ;;  %v2629_v9 = vadd.f32 1.0, %v6208_v39 }
 0x50e   : > { %5614 = vmatmul.mubr.bf16.gmra.mrb[136].mxu1 %v3495_v18  ;;  %5566 = vmatmul.mubr.bf16.gmra.mrb[104].mxu0 %v3495_v18  ;;  %v5891_v18 = vld [vmem:[%s8602_s1 + $0x250] sm:$0xff]  }
 0x50f   : > { %v6210_v40 = vpop.eup %6209  ;;  %6215 = vrcp.f32 %v2629_v9  ;;  %5641 = vmatprep.subr.bf16.mxu0 %v5891_v18 }
 0x510   : > { %v2650_v58 = vmul.f32 %v6210_v40, %v2503_v33  ;;  %5642 = vmatpush3.bf16.msra.mxu0 %v5891_v18 }
 0x511   : > { %v6212_v54 = vpop.eup %6211 }
 0x512   : > { %v2651_v48 = vmul.f32 %v6212_v54, %v2506_v25 }
 0x514   : > { %v3496_v19 = vpack.c.bf16 %v2651_v48, %v2650_v58 }
 0x516   : > { %5617 = vmatprep.mubr.bf16.mxu1 %v3496_v19  ;;  %5569 = vmatprep.mubr.bf16.mxu0 %v3496_v19 }
 0x517   : > { %v6214_v53 = vpop.eup %6213 }
 0x518   : > { %v2652_v49 = vmul.f32 %v6214_v53, %v2511_v46 }
 0x519   : > { %v6216_v2 = vpop.eup %6215 }
 0x51a   : > { %v2653_v21 = vmul.f32 %v6216_v2, %v2514_v22 }
 0x51c   : > { %v3497_v38 = vpack.c.bf16 %v2653_v21, %v2652_v49 }
 0x51e   : > { %5618 = vmatmul.mubr.bf16.gmra.mrb[140].mxu1 %v3497_v38  ;;  %5570 = vmatmul.mubr.bf16.gmra.mrb[108].mxu0 %v3497_v38 }
 0x543   : > { %v5221_v15 = vpop.f32.mrb[96].mxu1  ;;  %v5181_v1 = vpop.f32.mrb[64].mxu0 }
 0x544   : > { %v5222_v47 = vpop.f32.mrb[97].mxu1  ;;  %v5182_v43 = vpop.f32.mrb[65].mxu0 }
 0x545   : > { %v5223_v12 = vadd.f32 %v5222_v47, %v5221_v15  ;;  %v5224_v51 = vpop.f32.mrb[98].mxu1  ;;  %v8293_v28 = vadd.f32 %v5182_v43, %v5181_v1  ;;  %v5184_v7 = vpop.f32.mrb[66].mxu0 }
 0x546   : > { %v5225_v17 = vpop.f32.mrb[99].mxu1  ;;  %v5185_v45 = vpop.f32.mrb[67].mxu0 }
 0x547   : > { %v2986_v60 = vadd.f32 %v5223_v12, %v8094_v3  ;;  %v5226_v24 = vadd.f32 %v5225_v17, %v5224_v51  ;;  %v8296_v42 = vadd.f32 %v5185_v45, %v5184_v7  ;;  %v2905_v45 = vadd.f32 %v8293_v28, %v8154_v63 }
 0x549   : > { %v4808_v30 = vmul.f32 -1.442695, %v2986_v60  ;;  %v2989_v31 = vadd.f32 %v5226_v24, %v8094_v3 }
 0x54b   : > { %6217 = vpow2.f32 %v4808_v30  ;;  %v4809_v10 = vmul.f32 -1.442695, %v2989_v31  ;;  %v5227_v37 = vpop.f32.mrb[100].mxu1  ;;  %v5187_v59 = vpop.f32.mrb[68].mxu0 }
 0x54c   : > { %v5228_v26 = vpop.f32.mrb[101].mxu1  ;;  %v5188_v52 = vpop.f32.mrb[69].mxu0 }
 0x54d   : > { %6219 = vpow2.f32 %v4809_v10  ;;  %v5229_v0 = vadd.f32 %v5228_v26, %v5227_v37  ;;  %v5230_v11 = vpop.f32.mrb[102].mxu1  ;;  %v8299_v29 = vadd.f32 %v5188_v52, %v5187_v59  ;;  %v5190_v20 = vpop.f32.mrb[70].mxu0  ;;  %v2908_v10 = vadd.f32 %v8296_v42, %v8154_v63 }
 0x54e   : > { %v5231_v50 = vpop.f32.mrb[103].mxu1  ;;  %v5191_v32 = vpop.f32.mrb[71].mxu0 }
 0x54f   : > { %v2994_v4 = vadd.f32 %v5229_v0, %v8094_v3  ;;  %v5232_v5 = vadd.f32 %v5231_v50, %v5230_v11  ;;  %v8302_v35 = vadd.f32 %v5191_v32, %v5190_v20  ;;  %v2913_v50 = vadd.f32 %v8299_v29, %v8154_v63 }
 0x551   : > { %v4810_v61 = vmul.f32 -1.442695, %v2994_v4  ;;  %v2997_v34 = vadd.f32 %v5232_v5, %v8094_v3  ;;  %v2916_v42 = vadd.f32 %v8302_v35, %v8154_v63 }
 0x553   : > { %6221 = vpow2.f32 %v4810_v61  ;;  %v4811_v6 = vmul.f32 -1.442695, %v2997_v34  ;;  %v5233_v41 = vpop.f32.mrb[104].mxu1  ;;  %v5193_v23 = vpop.f32.mrb[72].mxu0 }
 0x554   : > { %v5234_v14 = vpop.f32.mrb[105].mxu1  ;;  %v5194_v56 = vpop.f32.mrb[73].mxu0 }
 0x555   : > { %v6218_v44 = vpop.eup %6217  ;;  %6223 = vpow2.f32 %v4811_v6  ;;  %v5235_v36 = vadd.f32 %v5234_v14, %v5233_v41  ;;  %v5236_v8 = vpop.f32.mrb[106].mxu1  ;;  %v8311_v13 = vadd.f32 %v5194_v56, %v5193_v23 }
 0x556   : > { %v5196_v27 = vpop.f32.mrb[74].mxu0  ;;  %v3040_v62 = vadd.f32 1.0, %v6218_v44  ;;  %v5237_v57 = vpop.f32.mrb[107].mxu1 }
 0x557   : > { %v5197_v39 = vpop.f32.mrb[75].mxu0  ;;  %v6220_v33 = vpop.eup %6219  ;;  %v3002_v9 = vadd.f32 %v5235_v36, %v8094_v3  ;;  %v5238_v25 = vadd.f32 %v5237_v57, %v5236_v8  ;;  %v2921_v29 = vadd.f32 %v8311_v13, %v8154_v63  ;;  %v5892_v36 = vld [vmem:[%s8602_s1 + $0x258] sm:$0xff]   ;;  %v5893_v13 = vld [vmem:[%s8602_s1 + $0x260] sm:$0xff]   ;;  %v5894_v57 = vld [vmem:[%s8602_s1 + $0x268] sm:$0xff]  }
 0x558   : > { %v8317_v40 = vadd.f32 %v5197_v39, %v5196_v27  ;;  %6225 = vrcp.f32 %v3040_v62  ;;  %v3041_v58 = vadd.f32 1.0, %v6220_v33  ;;  %5643 = vmatprep.subr.bf16.mxu0 %v5892_v36 }
 0x559   : > { %v4812_v54 = vmul.f32 -1.442695, %v3002_v9  ;;  %v3005_v48 = vadd.f32 %v5238_v25, %v8094_v3  ;;  %5644 = vmatpush3.bf16.msra.mxu0 %v5892_v36  ;;  %v5895_v25 = vld [vmem:[%s8602_s1 + $0x270] sm:$0xff]  }
 0x55a   : > { %6227 = vrcp.f32 %v3041_v58  ;;  %v2924_v35 = vadd.f32 %v8317_v40, %v8154_v63  ;;  %5645 = vmatprep.subr.bf16.mxu0 %v5893_v13 }
 0x55b   : > { %6229 = vpow2.f32 %v4812_v54  ;;  %v4813_v46 = vmul.f32 -1.442695, %v3005_v48  ;;  %v5239_v19 = vpop.f32.mrb[108].mxu1  ;;  %v5199_v22 = vpop.f32.mrb[76].mxu0 }
 0x55c   : > { %v5240_v53 = vpop.f32.mrb[109].mxu1  ;;  %v5200_v49 = vpop.f32.mrb[77].mxu0 }
 0x55d   : > { %v6222_v2 = vpop.eup %6221  ;;  %6231 = vpow2.f32 %v4813_v46  ;;  %v5241_v21 = vadd.f32 %v5240_v53, %v5239_v19  ;;  %v5242_v38 = vpop.f32.mrb[110].mxu1  ;;  %v5201_v15 = vadd.f32 %v5200_v49, %v5199_v22  ;;  %5646 = vmatpush3.bf16.msra.mxu0 %v5893_v13 }
 0x55e   : > { %v5202_v1 = vpop.f32.mrb[78].mxu0  ;;  %v3042_v47 = vadd.f32 1.0, %v6222_v2  ;;  %v5243_v43 = vpop.f32.mrb[111].mxu1  ;;  %5647 = vmatprep.subr.bf16.mxu0 %v5894_v57 }
 0x55f   : > { %v5203_v12 = vpop.f32.mrb[79].mxu0  ;;  %v6224_v51 = vpop.eup %6223  ;;  %v3010_v7 = vadd.f32 %v5241_v21, %v8094_v3  ;;  %v5244_v17 = vadd.f32 %v5243_v43, %v5242_v38  ;;  %v2929_v27 = vadd.f32 %v5201_v15, %v8154_v63  ;;  %v8356_v15 = vld [vmem:[%s8603_s2 + $0x6] ss:$0 sm:$0xff] }
 0x560   : > { %v5204_v60 = vadd.f32 %v5203_v12, %v5202_v1  ;;  %6233 = vrcp.f32 %v3042_v47  ;;  %v3043_v24 = vadd.f32 1.0, %v6224_v51 }
 0x561   : > { %v4814_v30 = vmul.f32 -1.442695, %v3010_v7  ;;  %v3013_v31 = vadd.f32 %v5244_v17, %v8094_v3  ;;  %5648 = vmatpush3.bf16.msra.mxu0 %v5894_v57 }
 0x562   : > { %v6226_v37 = vpop.eup %6225  ;;  %6235 = vrcp.f32 %v3043_v24  ;;  %v2932_v39 = vadd.f32 %v5204_v60, %v8154_v63  ;;  %5649 = vmatprep.subr.bf16.mxu0 %v5895_v25  ;;  %v5896_v63 = vld [vmem:[%s8602_s1 + $0x278] sm:$0xff]  }
 0x563   : > { %6237 = vpow2.f32 %v4814_v30  ;;  %v4815_v59 = vmul.f32 -1.442695, %v3013_v31  ;;  %v3064_v26 = vmul.f32 %v6226_v37, %v2905_v45 }
 0x564   : > { %v6228_v52 = vpop.eup %6227 }
 0x565   : > { %v6230_v0 = vpop.eup %6229  ;;  %6239 = vpow2.f32 %v4815_v59  ;;  %v3065_v11 = vmul.f32 %v6228_v52, %v2908_v10  ;;  %5650 = vmatpush3.bf16.msra.mxu0 %v5895_v25 }
 0x566   : > { %v3044_v20 = vadd.f32 1.0, %v6230_v0  ;;  %5651 = vmatprep.subr.bf16.mxu0 %v5896_v63 }
 0x567   : > { %v6232_v28 = vpop.eup %6231  ;;  %v3498_v32 = vpack.c.bf16 %v3065_v11, %v3064_v26 }
 0x568   : > { %6241 = vrcp.f32 %v3044_v20  ;;  %v3045_v3 = vadd.f32 1.0, %v6232_v28 }
 0x569   : > { %5621 = vmatprep.mubr.bf16.mxu1 %v3498_v32  ;;  %5573 = vmatprep.mubr.bf16.mxu0 %v3498_v32 }
 0x56a   : > { %v6234_v4 = vpop.eup %6233  ;;  %6243 = vrcp.f32 %v3045_v3  ;;  %5652 = vmatpush3.bf16.msra.mxu0 %v5896_v63 }
 0x56b   : > { %v3066_v5 = vmul.f32 %v6234_v4, %v2913_v50 }
 0x56c   : > { %v6236_v61 = vpop.eup %6235 }
 0x56d   : > { %v6238_v34 = vpop.eup %6237  ;;  %v3067_v16 = vmul.f32 %v6236_v61, %v2916_v42 }
 0x56e   : > { %v3046_v55 = vadd.f32 1.0, %v6238_v34 }
 0x56f   : > { %v6240_v6 = vpop.eup %6239  ;;  %v3499_v41 = vpack.c.bf16 %v3067_v16, %v3066_v5 }
 0x570   : > { %6245 = vrcp.f32 %v3046_v55  ;;  %v3047_v23 = vadd.f32 1.0, %v6240_v6 }
 0x571   : > { %5622 = vmatmul.mubr.bf16.gmra.mrb[144].mxu1 %v3499_v41  ;;  %5574 = vmatmul.mubr.bf16.gmra.mrb[112].mxu0 %v3499_v41 }
 0x572   : > { %v6242_v14 = vpop.eup %6241  ;;  %6247 = vrcp.f32 %v3047_v23 }
 0x573   : > { %v3068_v56 = vmul.f32 %v6242_v14, %v2921_v29 }
 0x574   : > { %v6244_v44 = vpop.eup %6243 }
 0x575   : > { %v3069_v8 = vmul.f32 %v6244_v44, %v2924_v35 }
 0x577   : > { %v3500_v62 = vpack.c.bf16 %v3069_v8, %v3068_v56 }
 0x579   : > { %5625 = vmatprep.mubr.bf16.mxu1 %v3500_v62  ;;  %5577 = vmatprep.mubr.bf16.mxu0 %v3500_v62 }
 0x57a   : > { %v6246_v18 = vpop.eup %6245 }
 0x57b   : > { %v3070_v33 = vmul.f32 %v6246_v18, %v2929_v27 }
 0x57c   : > { %v6248_v9 = vpop.eup %6247 }
 0x57d   : > { %v3071_v40 = vmul.f32 %v6248_v9, %v2932_v39 }
 0x57f   : > { %v3501_v58 = vpack.c.bf16 %v3071_v40, %v3070_v33 }
 0x581   : > { %5626 = vmatmul.mubr.bf16.gmra.mrb[148].mxu1 %v3501_v58  ;;  %5578 = vmatmul.mubr.bf16.gmra.mrb[116].mxu0 %v3501_v58 }
 0x594   : > { %v5301_v54 = vpop.f32.mrb[112].mxu1  ;;  %v5261_v48 = vpop.f32.mrb[80].mxu0 }
 0x595   : > { %v5302_v46 = vpop.f32.mrb[113].mxu1  ;;  %v5262_v19 = vpop.f32.mrb[81].mxu0 }
 0x596   : > { %v5303_v22 = vadd.f32 %v5302_v46, %v5301_v54  ;;  %v5304_v53 = vpop.f32.mrb[114].mxu1  ;;  %v8351_v49 = vadd.f32 %v5262_v19, %v5261_v48  ;;  %v5264_v2 = vpop.f32.mrb[82].mxu0  ;;  %v8379_v46 = vld [vmem:[%s8603_s2 + $0x5] ss:$0 sm:$0xff] }
 0x597   : > { %v5305_v21 = vpop.f32.mrb[115].mxu1  ;;  %v5265_v38 = vpop.f32.mrb[83].mxu0 }
 0x598   : > { %v3404_v1 = vadd.f32 %v8356_v15, %v5303_v22  ;;  %v5306_v47 = vadd.f32 %v5305_v21, %v5304_v53  ;;  %v8359_v43 = vadd.f32 %v5265_v38, %v5264_v2  ;;  %v3323_v19 = vadd.f32 %v8379_v46, %v8351_v49 }
 0x59a   : > { %v4816_v12 = vmul.f32 -1.442695, %v3404_v1  ;;  %v3407_v51 = vadd.f32 %v8356_v15, %v5306_v47  ;;  %v8390_v47 = vld [vmem:[%s8603_s2 + $0x8] ss:$0 sm:$0xff]  ;;  %v3326_v49 = vadd.f32 %v8379_v46, %v8359_v43 }
 0x59c   : > { %6249 = vpow2.f32 %v4816_v12  ;;  %v4817_v7 = vmul.f32 -1.442695, %v3407_v51  ;;  %v5307_v17 = vpop.f32.mrb[116].mxu1  ;;  %v5267_v45 = vpop.f32.mrb[84].mxu0 }
 0x59d   : > { %v5308_v60 = vpop.f32.mrb[117].mxu1  ;;  %v5268_v24 = vpop.f32.mrb[85].mxu0 }
 0x59e   : > { %6251 = vpow2.f32 %v4817_v7  ;;  %v5309_v30 = vadd.f32 %v5308_v60, %v5307_v17  ;;  %v5310_v31 = vpop.f32.mrb[118].mxu1  ;;  %v8362_v10 = vadd.f32 %v5268_v24, %v5267_v45  ;;  %v5270_v37 = vpop.f32.mrb[86].mxu0 }
 0x59f   : > { %v5311_v59 = vpop.f32.mrb[119].mxu1  ;;  %v5271_v26 = vpop.f32.mrb[87].mxu0 }
 0x5a0   : > { %v3412_v52 = vadd.f32 %v8356_v15, %v5309_v30  ;;  %v5312_v0 = vadd.f32 %v5311_v59, %v5310_v31  ;;  %v8365_v11 = vadd.f32 %v5271_v26, %v5270_v37  ;;  %v3331_v43 = vadd.f32 %v8379_v46, %v8362_v10 }
 0x5a2   : > { %v4818_v20 = vmul.f32 -1.442695, %v3412_v52  ;;  %v3415_v28 = vadd.f32 %v8356_v15, %v5312_v0  ;;  %v3334_v10 = vadd.f32 %v8379_v46, %v8365_v11 }
 0x5a4   : > { %6253 = vpow2.f32 %v4818_v20  ;;  %v4819_v50 = vmul.f32 -1.442695, %v3415_v28  ;;  %v5313_v32 = vpop.f32.mrb[120].mxu1  ;;  %v5273_v3 = vpop.f32.mrb[88].mxu0 }
 0x5a5   : > { %v5314_v42 = vpop.f32.mrb[121].mxu1  ;;  %v5274_v4 = vpop.f32.mrb[89].mxu0 }
 0x5a6   : > { %v6250_v5 = vpop.eup %6249  ;;  %6255 = vpow2.f32 %v4819_v50  ;;  %v5315_v61 = vadd.f32 %v5314_v42, %v5313_v32  ;;  %v5316_v34 = vpop.f32.mrb[122].mxu1  ;;  %v8368_v16 = vadd.f32 %v5274_v4, %v5273_v3 }
 0x5a7   : > { %v5276_v55 = vpop.f32.mrb[90].mxu0  ;;  %v3458_v6 = vadd.f32 1.0, %v6250_v5  ;;  %v5317_v41 = vpop.f32.mrb[123].mxu1 }
 0x5a8   : > { %v5277_v29 = vpop.f32.mrb[91].mxu0  ;;  %v6252_v23 = vpop.eup %6251  ;;  %v3420_v35 = vadd.f32 %v8356_v15, %v5315_v61  ;;  %v5318_v14 = vadd.f32 %v5317_v41, %v5316_v34 }
 0x5a9   : > { %v8371_v56 = vadd.f32 %v5277_v29, %v5276_v55  ;;  %6257 = vrcp.f32 %v3458_v6  ;;  %v3459_v44 = vadd.f32 1.0, %v6252_v23 }
 0x5aa   : > { %v4820_v36 = vmul.f32 -1.442695, %v3420_v35  ;;  %v3423_v8 = vadd.f32 %v8356_v15, %v5318_v14 }
 0x5ab   : > { %6259 = vrcp.f32 %v3459_v44 }
 0x5ac   : > { %6261 = vpow2.f32 %v4820_v36  ;;  %v4821_v13 = vmul.f32 -1.442695, %v3423_v8  ;;  %v5319_v27 = vpop.f32.mrb[124].mxu1  ;;  %v5279_v62 = vpop.f32.mrb[92].mxu0 }
 0x5ad   : > { %v5320_v57 = vpop.f32.mrb[125].mxu1  ;;  %v5280_v39 = vpop.f32.mrb[93].mxu0 }
 0x5ae   : > { %v6254_v18 = vpop.eup %6253  ;;  %6263 = vpow2.f32 %v4821_v13  ;;  %v5321_v33 = vadd.f32 %v5320_v57, %v5319_v27  ;;  %v5322_v9 = vpop.f32.mrb[126].mxu1  ;;  %v8374_v25 = vadd.f32 %v5280_v39, %v5279_v62 }
 0x5af   : > { %v5282_v40 = vpop.f32.mrb[94].mxu0  ;;  %v3460_v58 = vadd.f32 1.0, %v6254_v18  ;;  %v5323_v63 = vpop.f32.mrb[127].mxu1  ;;  %v3339_v18 = vadd.f32 %v8379_v46, %v8368_v16  ;;  %v3342_v16 = vadd.f32 %v8379_v46, %v8371_v56 }
 0x5b0   : > { %v5283_v54 = vpop.f32.mrb[95].mxu0  ;;  %v6256_v48 = vpop.eup %6255  ;;  %v3428_v22 = vadd.f32 %v8356_v15, %v5321_v33  ;;  %v5324_v53 = vadd.f32 %v5323_v63, %v5322_v9 }
 0x5b1   : > { %v8384_v2 = vadd.f32 %v5283_v54, %v5282_v40  ;;  %6265 = vrcp.f32 %v3460_v58  ;;  %v3461_v21 = vadd.f32 1.0, %v6256_v48 }
 0x5b2   : > { %v4822_v38 = vmul.f32 -1.442695, %v3428_v22  ;;  %v3431_v1 = vadd.f32 %v8356_v15, %v5324_v53 }
 0x5b3   : > { %v6258_v12 = vpop.eup %6257  ;;  %6267 = vrcp.f32 %v3461_v21 }
 0x5b4   : > { %v3482_v51 = vmul.f32 %v6258_v12, %v3323_v19  ;;  %6269 = vpow2.f32 %v4822_v38  ;;  %v4823_v7 = vmul.f32 -1.442695, %v3431_v1  ;;  %v5607_v17 = vpop.f32.mrb[128].mxu1 }
 0x5b5   : > { %v6260_v45 = vpop.eup %6259  ;;  %v3850_v60 = vadd.f32 %v5607_v17, %v8390_v47  ;;  %v3841_v24 = vpop.f32.mrb[129].mxu1 }
 0x5b6   : > { %v6262_v30 = vpop.eup %6261  ;;  %v3483_v15 = vmul.f32 %v6260_v45, %v3326_v49  ;;  %6271 = vpow2.f32 %v4823_v7  ;;  %v3842_v31 = vadd.f32 %v8390_v47, %v3841_v24  ;;  %v5608_v37 = vpop.f32.mrb[130].mxu1  ;;  %v3347_v24 = vadd.f32 %v8379_v46, %v8374_v25 }
 0x5b7   : > { %v3462_v59 = vadd.f32 1.0, %v6262_v30  ;;  %v4876_v26 = vmul.f32 -1.442695, %v3850_v60  ;;  %v3853_v52 = vadd.f32 %v5608_v37, %v8390_v47  ;;  %v3844_v0 = vpop.f32.mrb[131].mxu1  ;;  %v8423_v37 = vld [vmem:[%s8603_s2 + $0x7] ss:$0 sm:$0xff] }
 0x5b8   : > { %v6264_v20 = vpop.eup %6263  ;;  %v3502_v28 = vpack.c.bf16 %v3483_v15, %v3482_v51  ;;  %v4874_v50 = vmul.f32 -1.442695, %v3842_v31  ;;  %v3845_v32 = vadd.f32 %v8390_v47, %v3844_v0 }
 0x5b9   : > { %6273 = vrcp.f32 %v3462_v59  ;;  %v3463_v3 = vadd.f32 1.0, %v6264_v20  ;;  %v4877_v42 = vmul.f32 -1.442695, %v3853_v52  ;;  %v3350_v52 = vadd.f32 %v8379_v46, %v8384_v2 }
 0x5ba   : > { %5581 = vmatprep.mubr.bf16.mxu0 %v3502_v28  ;;  %5629 = vmatprep.mubr.bf16.mxu1 %v3502_v28  ;;  %6275 = vpow2.f32 %v4876_v26  ;;  %v4875_v4 = vmul.f32 -1.442695, %v3845_v32  ;;  %v8400_v5 = vpop.f32.mrb[96].mxu0 }
 0x5bb   : > { %v6266_v61 = vpop.eup %6265  ;;  %6277 = vrcp.f32 %v3463_v3  ;;  %v8402_v34 = vpop.f32.mrb[97].mxu0  ;;  %v3619_v28 = vadd.f32 %v8400_v5, %v8423_v37 }
 0x5bc   : > { %v3484_v55 = vmul.f32 %v6266_v61, %v3331_v43  ;;  %6279 = vpow2.f32 %v4874_v50  ;;  %v5611_v6 = vpop.f32.mrb[132].mxu1  ;;  %v8406_v41 = vpop.f32.mrb[98].mxu0  ;;  %v3611_v61 = vadd.f32 %v8423_v37, %v8402_v34 }
 0x5bd   : > { %v6268_v29 = vpop.eup %6267  ;;  %6281 = vpow2.f32 %v4877_v42  ;;  %v3866_v23 = vadd.f32 %v5611_v6, %v8390_v47  ;;  %v3857_v35 = vpop.f32.mrb[133].mxu1  ;;  %v3622_v46 = vadd.f32 %v8406_v41, %v8423_v37 }
 0x5be   : > { %v8409_v14 = vpop.f32.mrb[99].mxu0  ;;  %v6270_v44 = vpop.eup %6269  ;;  %v3485_v36 = vmul.f32 %v6268_v29, %v3334_v10  ;;  %6283 = vpow2.f32 %v4875_v4  ;;  %v3858_v8 = vadd.f32 %v8390_v47, %v3857_v35 }
 0x5bf   : > { %v5612_v13 = vpop.f32.mrb[134].mxu1  ;;  %v3464_v27 = vadd.f32 1.0, %v6270_v44  ;;  %v4880_v62 = vmul.f32 -1.442695, %v3866_v23  ;;  %v3614_v5 = vadd.f32 %v8423_v37, %v8409_v14 }
 0x5c0   : > { %v3869_v11 = vadd.f32 %v5612_v13, %v8390_v47  ;;  %v3860_v57 = vpop.f32.mrb[135].mxu1  ;;  %v6272_v39 = vpop.eup %6271  ;;  %v3503_v33 = vpack.c.bf16 %v3485_v36, %v3484_v55  ;;  %v4878_v9 = vmul.f32 -1.442695, %v3858_v8 }
 0x5c1   : > { %v3861_v40 = vadd.f32 %v8390_v47, %v3860_v57  ;;  %6285 = vrcp.f32 %v3464_v27  ;;  %v3465_v58 = vadd.f32 1.0, %v6272_v39 }
 0x5c2   : > { %v4881_v63 = vmul.f32 -1.442695, %v3869_v11  ;;  %5582 = vmatmul.mubr.bf16.gmra.mrb[120].mxu0 %v3503_v33  ;;  %5630 = vmatmul.mubr.bf16.gmra.mrb[152].mxu1 %v3503_v33  ;;  %6287 = vpow2.f32 %v4880_v62  ;;  %v5563_v48 = vpop.f32.mrb[100].mxu0 }
 0x5c3   : > { %v4879_v54 = vmul.f32 -1.442695, %v3861_v40  ;;  %v6274_v19 = vpop.eup %6273  ;;  %6289 = vrcp.f32 %v3465_v58  ;;  %v3626_v22 = vpop.f32.mrb[101].mxu0  ;;  %v3635_v36 = vadd.f32 %v5563_v48, %v8423_v37 }
 0x5c4   : > { %v6276_v53 = vpop.eup %6275  ;;  %v3486_v21 = vmul.f32 %v6274_v19, %v3339_v18  ;;  %6291 = vpow2.f32 %v4878_v9  ;;  %v5564_v38 = vpop.f32.mrb[102].mxu0  ;;  %v3627_v13 = vadd.f32 %v8423_v37, %v3626_v22 }
 0x5c5   : > { %v6278_v1 = vpop.eup %6277  ;;  %v4066_v12 = vadd.f32 1.0, %v6276_v53  ;;  %6293 = vpow2.f32 %v4881_v63  ;;  %v3629_v51 = vpop.f32.mrb[103].mxu0  ;;  %v3638_v62 = vadd.f32 %v5564_v38, %v8423_v37 }
 0x5c6   : > { %v6280_v49 = vpop.eup %6279  ;;  %v3487_v7 = vmul.f32 %v6278_v1, %v3342_v16  ;;  %6295 = vpow2.f32 %v4879_v54  ;;  %v3630_v14 = vadd.f32 %v8423_v37, %v3629_v51 }
 0x5c7   : > { %v6282_v17 = vpop.eup %6281  ;;  %6297 = vrcp.f32 %v4066_v12  ;;  %v4064_v45 = vadd.f32 1.0, %v6280_v49 }
 0x5c8   : > { %v6284_v60 = vpop.eup %6283  ;;  %v3504_v30 = vpack.c.bf16 %v3487_v7, %v3486_v21  ;;  %v4067_v15 = vadd.f32 1.0, %v6282_v17 }
 0x5c9   : > { %6299 = vrcp.f32 %v4064_v45  ;;  %v4065_v56 = vadd.f32 1.0, %v6284_v60 }
 0x5ca   : > { %5585 = vmatprep.mubr.bf16.mxu0 %v3504_v30  ;;  %5633 = vmatprep.mubr.bf16.mxu1 %v3504_v30  ;;  %6301 = vrcp.f32 %v4067_v15 }
 0x5cb   : > { %v6286_v31 = vpop.eup %6285  ;;  %6303 = vrcp.f32 %v4065_v56 }
 0x5cc   : > { %v6288_v59 = vpop.eup %6287  ;;  %v3488_v26 = vmul.f32 %v6286_v31, %v3347_v24 }
 0x5cd   : > { %v6290_v25 = vpop.eup %6289  ;;  %v4070_v0 = vadd.f32 1.0, %v6288_v59 }
 0x5ce   : > { %v6292_v20 = vpop.eup %6291  ;;  %v3489_v43 = vmul.f32 %v6290_v25, %v3350_v52 }
 0x5cf   : > { %v6294_v50 = vpop.eup %6293  ;;  %6305 = vrcp.f32 %v4070_v0  ;;  %v4068_v32 = vadd.f32 1.0, %v6292_v20 }
 0x5d0   : > { %v6296_v3 = vpop.eup %6295  ;;  %v3505_v42 = vpack.c.bf16 %v3489_v43, %v3488_v26  ;;  %v4071_v4 = vadd.f32 1.0, %v6294_v50 }
 0x5d1   : > { %v6298_v55 = vpop.eup %6297  ;;  %6307 = vrcp.f32 %v4068_v32  ;;  %v4069_v10 = vadd.f32 1.0, %v6296_v3 }
 0x5d2   : > { %5586 = vmatmul.mubr.bf16.gmra.mrb[124].mxu0 %v3505_v42  ;;  %5634 = vmatmul.mubr.bf16.gmra.mrb[156].mxu1 %v3505_v42  ;;  %6309 = vrcp.f32 %v4071_v4  ;;  %v4162_v2 = vmul.f32 %v6298_v55, %v3619_v28 }
 0x5d3   : > { %v6300_v6 = vpop.eup %6299  ;;  %6311 = vrcp.f32 %v4069_v10 }
 0x5d4   : > { %v6302_v29 = vpop.eup %6301  ;;  %v4160_v23 = vmul.f32 %v6300_v6, %v3611_v61 }
 0x5d5   : > { %v6304_v35 = vpop.eup %6303  ;;  %v4163_v44 = vmul.f32 %v6302_v29, %v3622_v46 }
 0x5d6   : > { %v4161_v34 = vmul.f32 %v6304_v35, %v3614_v5 }
 0x5d7   : > { %v4193_v8 = vpack.c.bf16 %v4163_v44, %v4162_v2 }
 0x5d8   : > { %v4192_v41 = vpack.c.bf16 %v4161_v34, %v4160_v23 }
 0x5d9   : > { %v6306_v27 = vpop.eup %6305 }
 0x5da   : > { %v4166_v11 = vmul.f32 %v6306_v27, %v3635_v36  ;;  %5653 = vmatprep.mubr.bf16.mxu0 %v4192_v41 }
 0x5db   : > { %v6308_v57 = vpop.eup %6307  ;;  %5654 = vmatmul.mubr.bf16.vlgmr.msra.gmra.mrb[128].mxu0 %v4193_v8 }
 0x5dc   : > { %v6310_v39 = vpop.eup %6309  ;;  %v4164_v18 = vmul.f32 %v6308_v57, %v3627_v13 }
 0x5dd   : > { %v6312_v33 = vpop.eup %6311  ;;  %v4167_v9 = vmul.f32 %v6310_v39, %v3638_v62 }
 0x5de   : > { %v4165_v40 = vmul.f32 %v6312_v33, %v3630_v14 }
 0x5df   : > { %v4195_v58 = vpack.c.bf16 %v4167_v9, %v4166_v11 }
 0x5e0   : > { %v4194_v63 = vpack.c.bf16 %v4165_v40, %v4164_v18 }
 0x5e1   : > { %v5615_v54 = vpop.f32.mrb[136].mxu1  ;;  %v5567_v48 = vpop.f32.mrb[104].mxu0 }
 0x5e2   : > { %v3882_v19 = vadd.f32 %v5615_v54, %v8390_v47  ;;  %v3873_v22 = vpop.f32.mrb[137].mxu1  ;;  %v3642_v53 = vpop.f32.mrb[105].mxu0  ;;  %5657 = vmatprep.mubr.bf16.mxu0 %v4194_v63  ;;  %v3651_v6 = vadd.f32 %v5567_v48, %v8423_v37 }
 0x5e3   : > { %v3874_v21 = vadd.f32 %v8390_v47, %v3873_v22  ;;  %v5616_v16 = vpop.f32.mrb[138].mxu1  ;;  %v5568_v38 = vpop.f32.mrb[106].mxu0  ;;  %5658 = vmatmul.mubr.bf16.gmra.mrb[132].mxu0 %v4195_v58  ;;  %v3643_v29 = vadd.f32 %v8423_v37, %v3642_v53 }
 0x5e4   : > { %v4884_v1 = vmul.f32 -1.442695, %v3882_v19  ;;  %v3885_v12 = vadd.f32 %v5616_v16, %v8390_v47  ;;  %v3876_v51 = vpop.f32.mrb[139].mxu1  ;;  %v3645_v49 = vpop.f32.mrb[107].mxu0  ;;  %v3654_v23 = vadd.f32 %v5568_v38, %v8423_v37 }
 0x5e5   : > { %v4882_v7 = vmul.f32 -1.442695, %v3874_v21  ;;  %v3877_v17 = vadd.f32 %v8390_v47, %v3876_v51  ;;  %v3646_v44 = vadd.f32 %v8423_v37, %v3645_v49 }
 0x5e6   : > { %6313 = vpow2.f32 %v4884_v1  ;;  %v4885_v45 = vmul.f32 -1.442695, %v3885_v12 }
 0x5e7   : > { %6315 = vpow2.f32 %v4882_v7  ;;  %v4883_v60 = vmul.f32 -1.442695, %v3877_v17 }
 0x5e8   : > { %6317 = vpow2.f32 %v4885_v45 }
 0x5e9   : > { %6319 = vpow2.f32 %v4883_v60 }
 0x5f0   : > { %v6314_v24 = vpop.eup %6313 }
 0x5f1   : > { %v6316_v30 = vpop.eup %6315  ;;  %v4074_v15 = vadd.f32 1.0, %v6314_v24  ;;  %v5619_v56 = vpop.f32.mrb[140].mxu1 }
 0x5f2   : > { %v5571_v31 = vpop.f32.mrb[108].mxu0  ;;  %v6318_v59 = vpop.eup %6317  ;;  %v4072_v26 = vadd.f32 1.0, %v6316_v30  ;;  %v3898_v52 = vadd.f32 %v5619_v56, %v8390_v47 }
 0x5f3   : > { %v3889_v25 = vpop.f32.mrb[141].mxu1  ;;  %v3658_v0 = vpop.f32.mrb[109].mxu0  ;;  %6321 = vrcp.f32 %v4074_v15  ;;  %v4075_v43 = vadd.f32 1.0, %v6318_v59  ;;  %v3667_v54 = vadd.f32 %v5571_v31, %v8423_v37 }
 0x5f4   : > { %v6320_v20 = vpop.eup %6319  ;;  %v3890_v28 = vadd.f32 %v8390_v47, %v3889_v25  ;;  %v5620_v50 = vpop.f32.mrb[142].mxu1  ;;  %6323 = vrcp.f32 %v4072_v26  ;;  %v4888_v42 = vmul.f32 -1.442695, %v3898_v52  ;;  %v3659_v48 = vadd.f32 %v8423_v37, %v3658_v0 }
 0x5f5   : > { %v5572_v32 = vpop.f32.mrb[110].mxu0  ;;  %v4073_v3 = vadd.f32 1.0, %v6320_v20  ;;  %v3901_v4 = vadd.f32 %v5620_v50, %v8390_v47  ;;  %v3892_v61 = vpop.f32.mrb[143].mxu1  ;;  %6325 = vrcp.f32 %v4075_v43 }
 0x5f6   : > { %v3661_v55 = vpop.f32.mrb[111].mxu0  ;;  %v4886_v10 = vmul.f32 -1.442695, %v3890_v28  ;;  %v3893_v46 = vadd.f32 %v8390_v47, %v3892_v61  ;;  %v3670_v19 = vadd.f32 %v5572_v32, %v8423_v37 }
 0x5f7   : > { %6327 = vrcp.f32 %v4073_v3  ;;  %v4889_v2 = vmul.f32 -1.442695, %v3901_v4  ;;  %v3662_v53 = vadd.f32 %v8423_v37, %v3661_v55 }
 0x5f8   : > { %6329 = vpow2.f32 %v4888_v42  ;;  %v4887_v5 = vmul.f32 -1.442695, %v3893_v46 }
 0x5f9   : > { %6331 = vpow2.f32 %v4886_v10 }
 0x5fa   : > { %6333 = vpow2.f32 %v4889_v2 }
 0x5fb   : > { %6335 = vpow2.f32 %v4887_v5 }
 0x5fd   : > { %v6322_v35 = vpop.eup %6321 }
 0x5fe   : > { %v6324_v34 = vpop.eup %6323  ;;  %v4170_v36 = vmul.f32 %v6322_v35, %v3651_v6 }
 0x5ff   : > { %v6326_v8 = vpop.eup %6325  ;;  %v4168_v13 = vmul.f32 %v6324_v34, %v3643_v29 }
 0x600   : > { %v4171_v27 = vmul.f32 %v6326_v8, %v3654_v23 }
 0x601   : > { %v6328_v41 = vpop.eup %6327 }
 0x602   : > { %v6330_v62 = vpop.eup %6329  ;;  %v4169_v11 = vmul.f32 %v6328_v41, %v3646_v44  ;;  %v4197_v39 = vpack.c.bf16 %v4171_v27, %v4170_v36 }
 0x603   : > { %v6332_v14 = vpop.eup %6331  ;;  %v4078_v57 = vadd.f32 1.0, %v6330_v62 }
 0x604   : > { %v6334_v18 = vpop.eup %6333  ;;  %v4076_v33 = vadd.f32 1.0, %v6332_v14  ;;  %v4196_v9 = vpack.c.bf16 %v4169_v11, %v4168_v13 }
 0x605   : > { %v6336_v40 = vpop.eup %6335  ;;  %6337 = vrcp.f32 %v4078_v57  ;;  %v4079_v58 = vadd.f32 1.0, %v6334_v18 }
 0x606   : > { %6339 = vrcp.f32 %v4076_v33  ;;  %v4077_v63 = vadd.f32 1.0, %v6336_v40  ;;  %5661 = vmatprep.mubr.bf16.mxu0 %v4196_v9 }
 0x607   : > { %6341 = vrcp.f32 %v4079_v58  ;;  %5662 = vmatmul.mubr.bf16.gmra.mrb[136].mxu0 %v4197_v39 }
 0x608   : > { %6343 = vrcp.f32 %v4077_v63 }
 0x60f   : > { %v6338_v22 = vpop.eup %6337 }
 0x610   : > { %v6340_v21 = vpop.eup %6339  ;;  %v4174_v16 = vmul.f32 %v6338_v22, %v3667_v54 }
 0x611   : > { %v6342_v38 = vpop.eup %6341  ;;  %v4172_v1 = vmul.f32 %v6340_v21, %v3659_v48 }
 0x612   : > { %v6344_v12 = vpop.eup %6343  ;;  %v4175_v51 = vmul.f32 %v6342_v38, %v3670_v19 }
 0x613   : > { %v4173_v49 = vmul.f32 %v6344_v12, %v3662_v53 }
 0x614   : > { %v4199_v7 = vpack.c.bf16 %v4175_v51, %v4174_v16 }
 0x615   : > { %v4198_v17 = vpack.c.bf16 %v4173_v49, %v4172_v1 }
 0x617   : > { %5665 = vmatprep.mubr.bf16.mxu0 %v4198_v17 }
 0x618   : > { %5666 = vmatmul.mubr.bf16.gmra.mrb[140].mxu0 %v4199_v7 }
 0x644   : > { %v5623_v45 = vpop.f32.mrb[144].mxu1  ;;  %v5575_v60 = vpop.f32.mrb[112].mxu0 }
 0x645   : > { %v3914_v24 = vadd.f32 %v5623_v45, %v8390_v47  ;;  %v3905_v30 = vpop.f32.mrb[145].mxu1  ;;  %v3674_v15 = vpop.f32.mrb[113].mxu0  ;;  %v3683_v57 = vadd.f32 %v5575_v60, %v8423_v37 }
 0x646   : > { %v3906_v56 = vadd.f32 %v8390_v47, %v3905_v30  ;;  %v5624_v31 = vpop.f32.mrb[146].mxu1  ;;  %v5576_v59 = vpop.f32.mrb[114].mxu0  ;;  %v3675_v39 = vadd.f32 %v8423_v37, %v3674_v15 }
 0x647   : > { %v4892_v26 = vmul.f32 -1.442695, %v3914_v24  ;;  %v3917_v52 = vadd.f32 %v5624_v31, %v8390_v47  ;;  %v3908_v25 = vpop.f32.mrb[147].mxu1  ;;  %v3677_v0 = vpop.f32.mrb[115].mxu0  ;;  %v3686_v18 = vadd.f32 %v5576_v59, %v8423_v37 }
 0x648   : > { %v4890_v20 = vmul.f32 -1.442695, %v3906_v56  ;;  %v3909_v43 = vadd.f32 %v8390_v47, %v3908_v25  ;;  %v3678_v9 = vadd.f32 %v8423_v37, %v3677_v0 }
 0x649   : > { %6345 = vpow2.f32 %v4892_v26  ;;  %v4893_v28 = vmul.f32 -1.442695, %v3917_v52 }
 0x64a   : > { %6347 = vpow2.f32 %v4890_v20  ;;  %v4891_v50 = vmul.f32 -1.442695, %v3909_v43 }
 0x64b   : > { %6349 = vpow2.f32 %v4893_v28 }
 0x64c   : > { %6351 = vpow2.f32 %v4891_v50 }
 0x653   : > { %v6346_v32 = vpop.eup %6345 }
 0x654   : > { %v6348_v3 = vpop.eup %6347  ;;  %v4082_v42 = vadd.f32 1.0, %v6346_v32  ;;  %v5627_v4 = vpop.f32.mrb[148].mxu1 }
 0x655   : > { %v5579_v61 = vpop.f32.mrb[116].mxu0  ;;  %v6350_v55 = vpop.eup %6349  ;;  %v4080_v10 = vadd.f32 1.0, %v6348_v3  ;;  %v3930_v46 = vadd.f32 %v5627_v4, %v8390_v47 }
 0x656   : > { %v3921_v2 = vpop.f32.mrb[149].mxu1  ;;  %v3690_v5 = vpop.f32.mrb[117].mxu0  ;;  %6353 = vrcp.f32 %v4082_v42  ;;  %v4083_v29 = vadd.f32 1.0, %v6350_v55  ;;  %v3699_v45 = vadd.f32 %v5579_v61, %v8423_v37 }
 0x657   : > { %v6352_v6 = vpop.eup %6351  ;;  %v3922_v23 = vadd.f32 %v8390_v47, %v3921_v2  ;;  %v5628_v35 = vpop.f32.mrb[150].mxu1  ;;  %6355 = vrcp.f32 %v4080_v10  ;;  %v4896_v36 = vmul.f32 -1.442695, %v3930_v46  ;;  %v3691_v60 = vadd.f32 %v8423_v37, %v3690_v5 }
 0x658   : > { %v5580_v44 = vpop.f32.mrb[118].mxu0  ;;  %v4081_v34 = vadd.f32 1.0, %v6352_v6  ;;  %v3933_v8 = vadd.f32 %v5628_v35, %v8390_v47  ;;  %v3924_v13 = vpop.f32.mrb[151].mxu1  ;;  %6357 = vrcp.f32 %v4083_v29 }
 0x659   : > { %v3693_v41 = vpop.f32.mrb[119].mxu0  ;;  %v4894_v27 = vmul.f32 -1.442695, %v3922_v23  ;;  %v3925_v62 = vadd.f32 %v8390_v47, %v3924_v13  ;;  %v3702_v24 = vadd.f32 %v5580_v44, %v8423_v37 }
 0x65a   : > { %6359 = vrcp.f32 %v4081_v34  ;;  %v4897_v11 = vmul.f32 -1.442695, %v3933_v8  ;;  %v3694_v15 = vadd.f32 %v8423_v37, %v3693_v41 }
 0x65b   : > { %6361 = vpow2.f32 %v4896_v36  ;;  %v4895_v14 = vmul.f32 -1.442695, %v3925_v62 }
 0x65c   : > { %6363 = vpow2.f32 %v4894_v27 }
 0x65d   : > { %6365 = vpow2.f32 %v4897_v11 }
 0x65e   : > { %6367 = vpow2.f32 %v4895_v14 }
 0x660   : > { %v6354_v33 = vpop.eup %6353 }
 0x661   : > { %v6356_v40 = vpop.eup %6355  ;;  %v4178_v58 = vmul.f32 %v6354_v33, %v3683_v57 }
 0x662   : > { %v6358_v63 = vpop.eup %6357  ;;  %v4176_v54 = vmul.f32 %v6356_v40, %v3675_v39 }
 0x663   : > { %v4179_v19 = vmul.f32 %v6358_v63, %v3686_v18 }
 0x664   : > { %v6360_v48 = vpop.eup %6359 }
 0x665   : > { %v6362_v22 = vpop.eup %6361  ;;  %v4177_v53 = vmul.f32 %v6360_v48, %v3678_v9  ;;  %v4201_v38 = vpack.c.bf16 %v4179_v19, %v4178_v58 }
 0x666   : > { %v6364_v21 = vpop.eup %6363  ;;  %v4086_v16 = vadd.f32 1.0, %v6362_v22 }
 0x667   : > { %v6366_v1 = vpop.eup %6365  ;;  %v4084_v12 = vadd.f32 1.0, %v6364_v21  ;;  %v4200_v51 = vpack.c.bf16 %v4177_v53, %v4176_v54 }
 0x668   : > { %v6368_v49 = vpop.eup %6367  ;;  %6369 = vrcp.f32 %v4086_v16  ;;  %v4087_v7 = vadd.f32 1.0, %v6366_v1 }
 0x669   : > { %6371 = vrcp.f32 %v4084_v12  ;;  %v4085_v17 = vadd.f32 1.0, %v6368_v49  ;;  %5669 = vmatprep.mubr.bf16.mxu0 %v4200_v51 }
 0x66a   : > { %6373 = vrcp.f32 %v4087_v7  ;;  %5670 = vmatmul.mubr.bf16.gmra.mrb[144].mxu0 %v4201_v38 }
 0x66b   : > { %6375 = vrcp.f32 %v4085_v17 }
 0x672   : > { %v6370_v30 = vpop.eup %6369 }
 0x673   : > { %v6372_v56 = vpop.eup %6371  ;;  %v4182_v31 = vmul.f32 %v6370_v30, %v3699_v45 }
 0x674   : > { %v6374_v59 = vpop.eup %6373  ;;  %v4180_v26 = vmul.f32 %v6372_v56, %v3691_v60 }
 0x675   : > { %v6376_v52 = vpop.eup %6375  ;;  %v4183_v25 = vmul.f32 %v6374_v59, %v3702_v24 }
 0x676   : > { %v4181_v0 = vmul.f32 %v6376_v52, %v3694_v15 }
 0x677   : > { %v4203_v20 = vpack.c.bf16 %v4183_v25, %v4182_v31 }
 0x678   : > { %v4202_v43 = vpack.c.bf16 %v4181_v0, %v4180_v26 }
 0x67a   : > { %5673 = vmatprep.mubr.bf16.mxu0 %v4202_v43 }
 0x67b   : > { %5674 = vmatmul.mubr.bf16.gmra.mrb[148].mxu0 %v4203_v20 }
 0x695   : > { %v5583_v28 = vpop.f32.mrb[120].mxu0  ;;  %v5631_v50 = vpop.f32.mrb[152].mxu1 }
 0x696   : > { %v3946_v32 = vadd.f32 %v5631_v50, %v8390_v47  ;;  %v3706_v3 = vpop.f32.mrb[121].mxu0  ;;  %v3937_v42 = vpop.f32.mrb[153].mxu1  ;;  %v3715_v1 = vadd.f32 %v5583_v28, %v8423_v37 }
 0x697   : > { %v3938_v4 = vadd.f32 %v8390_v47, %v3937_v42  ;;  %v5584_v61 = vpop.f32.mrb[122].mxu0  ;;  %v5632_v55 = vpop.f32.mrb[154].mxu1  ;;  %v3707_v49 = vadd.f32 %v8423_v37, %v3706_v3 }
 0x698   : > { %v4900_v10 = vmul.f32 -1.442695, %v3946_v32  ;;  %v3949_v46 = vadd.f32 %v5632_v55, %v8390_v47  ;;  %v3709_v2 = vpop.f32.mrb[123].mxu0  ;;  %v3940_v5 = vpop.f32.mrb[155].mxu1  ;;  %v3718_v17 = vadd.f32 %v5584_v61, %v8423_v37 }
 0x699   : > { %v4898_v6 = vmul.f32 -1.442695, %v3938_v4  ;;  %v3941_v29 = vadd.f32 %v8390_v47, %v3940_v5  ;;  %v3710_v24 = vadd.f32 %v8423_v37, %v3709_v2 }
 0x69a   : > { %6377 = vpow2.f32 %v4900_v10  ;;  %v4901_v23 = vmul.f32 -1.442695, %v3949_v46 }
 0x69b   : > { %6379 = vpow2.f32 %v4898_v6  ;;  %v4899_v35 = vmul.f32 -1.442695, %v3941_v29 }
 0x69c   : > { %6381 = vpow2.f32 %v4901_v23 }
 0x69d   : > { %6383 = vpow2.f32 %v4899_v35 }
 0x6a4   : > { %v6378_v44 = vpop.eup %6377 }
 0x6a5   : > { %v6380_v34 = vpop.eup %6379  ;;  %v4090_v36 = vadd.f32 1.0, %v6378_v44  ;;  %v8475_v8 = vpop.f32.mrb[124].mxu0 }
 0x6a6   : > { %v5635_v13 = vpop.f32.mrb[156].mxu1  ;;  %v6382_v41 = vpop.eup %6381  ;;  %v4088_v27 = vadd.f32 1.0, %v6380_v34  ;;  %v3731_v55 = vadd.f32 %v8475_v8, %v8423_v37  ;;  %v8509_v8 = vld [vmem:[%s8603_s2 + $0x9] ss:$0 sm:$0xff] }
 0x6a7   : > { %v3962_v62 = vadd.f32 %v5635_v13, %v8390_v47  ;;  %v3722_v11 = vpop.f32.mrb[125].mxu0  ;;  %v3953_v14 = vpop.f32.mrb[157].mxu1  ;;  %6385 = vrcp.f32 %v4090_v36  ;;  %v4091_v39 = vadd.f32 1.0, %v6382_v41 }
 0x6a8   : > { %v6384_v57 = vpop.eup %6383  ;;  %v3954_v18 = vadd.f32 %v8390_v47, %v3953_v14  ;;  %v5588_v33 = vpop.f32.mrb[126].mxu0  ;;  %6387 = vrcp.f32 %v4088_v27  ;;  %v3723_v46 = vadd.f32 %v8423_v37, %v3722_v11 }
 0x6a9   : > { %v5636_v9 = vpop.f32.mrb[158].mxu1  ;;  %v4089_v40 = vadd.f32 1.0, %v6384_v57  ;;  %v4904_v58 = vmul.f32 -1.442695, %v3962_v62  ;;  %v3725_v63 = vpop.f32.mrb[127].mxu0  ;;  %6389 = vrcp.f32 %v4091_v39  ;;  %v3734_v5 = vadd.f32 %v5588_v33, %v8423_v37 }
 0x6aa   : > { %v3956_v54 = vpop.f32.mrb[159].mxu1  ;;  %v4902_v48 = vmul.f32 -1.442695, %v3954_v18  ;;  %v3965_v19 = vadd.f32 %v5636_v9, %v8390_v47  ;;  %v3726_v23 = vadd.f32 %v8423_v37, %v3725_v63 }
 0x6ab   : > { %6391 = vrcp.f32 %v4089_v40  ;;  %v3957_v22 = vadd.f32 %v8390_v47, %v3956_v54 }
 0x6ac   : > { %6393 = vpow2.f32 %v4904_v58  ;;  %v4905_v53 = vmul.f32 -1.442695, %v3965_v19 }
 0x6ad   : > { %6395 = vpow2.f32 %v4902_v48  ;;  %v4903_v21 = vmul.f32 -1.442695, %v3957_v22 }
 0x6ae   : > { %6397 = vpow2.f32 %v4905_v53  ;;  %v8481_v16 = vpop.f32.mrb[128].mxu0 }
 0x6af   : > { %6399 = vpow2.f32 %v4903_v21  ;;  %v8483_v38 = vpop.f32.mrb[129].mxu0 }
 0x6b0   : > { %v8486_v12 = vpop.f32.mrb[130].mxu0 }
 0x6b1   : > { %v6386_v51 = vpop.eup %6385  ;;  %v8489_v7 = vpop.f32.mrb[131].mxu0 }
 0x6b2   : > { %v6388_v47 = vpop.eup %6387  ;;  %v4186_v45 = vmul.f32 %v6386_v51, %v3715_v1 }
 0x6b3   : > { %v6390_v60 = vpop.eup %6389  ;;  %v4184_v30 = vmul.f32 %v6388_v47, %v3707_v49 }
 0x6b4   : > { %v4187_v56 = vmul.f32 %v6390_v60, %v3718_v17 }
 0x6b5   : > { %v6392_v15 = vpop.eup %6391 }
 0x6b6   : > { %v6394_v31 = vpop.eup %6393  ;;  %v4185_v59 = vmul.f32 %v6392_v15, %v3710_v24  ;;  %v4205_v25 = vpack.c.bf16 %v4187_v56, %v4186_v45  ;;  %v8493_v0 = vpop.f32.mrb[132].mxu0 }
 0x6b7   : > { %v6396_v26 = vpop.eup %6395  ;;  %v4094_v52 = vadd.f32 1.0, %v6394_v31  ;;  %v8495_v50 = vpop.f32.mrb[133].mxu0 }
 0x6b8   : > { %v6398_v20 = vpop.eup %6397  ;;  %v4092_v43 = vadd.f32 1.0, %v6396_v26  ;;  %v4204_v28 = vpack.c.bf16 %v4185_v59, %v4184_v30  ;;  %v8497_v42 = vpop.f32.mrb[134].mxu0 }
 0x6b9   : > { %v6400_v32 = vpop.eup %6399  ;;  %6401 = vrcp.f32 %v4094_v52  ;;  %v4095_v3 = vadd.f32 1.0, %v6398_v20  ;;  %v8499_v61 = vpop.f32.mrb[135].mxu0 }
 0x6ba   : > { %6403 = vrcp.f32 %v4092_v43  ;;  %v4093_v4 = vadd.f32 1.0, %v6400_v32  ;;  %5677 = vmatprep.mubr.bf16.mxu0 %v4204_v28 }
 0x6bb   : > { %6405 = vrcp.f32 %v4095_v3  ;;  %5678 = vmatmul.mubr.bf16.gmra.mrb[152].mxu0 %v4205_v25 }
 0x6bc   : > { %6407 = vrcp.f32 %v4093_v4 }
 0x6c3   : > { %v6402_v10 = vpop.eup %6401 }
 0x6c4   : > { %v6404_v2 = vpop.eup %6403  ;;  %v4190_v6 = vmul.f32 %v6402_v10, %v3731_v55 }
 0x6c5   : > { %v6406_v29 = vpop.eup %6405  ;;  %v4188_v35 = vmul.f32 %v6404_v2, %v3723_v46 }
 0x6c6   : > { %v6408_v44 = vpop.eup %6407  ;;  %v4191_v34 = vmul.f32 %v6406_v29, %v3734_v5 }
 0x6c7   : > { %v4189_v36 = vmul.f32 %v6408_v44, %v3726_v23 }
 0x6c8   : > { %v4207_v13 = vpack.c.bf16 %v4191_v34, %v4190_v6 }
 0x6c9   : > { %v4206_v41 = vpack.c.bf16 %v4189_v36, %v4188_v35 }
 0x6cb   : > { %5681 = vmatprep.mubr.bf16.mxu0 %v4206_v41 }
 0x6cc   : > { %5682 = vmatmul.mubr.bf16.gmra.mrb[156].mxu0 %v4207_v13 }
 0x6da   : > { %v5663_v27 = vpop.f32.mrb[136].mxu0 }
 0x6db   : > { %v4353_v62 = vadd.f32 %v5663_v27, %v8509_v8  ;;  %v4344_v11 = vpop.f32.mrb[137].mxu0 }
 0x6dc   : > { %v5664_v14 = vpop.f32.mrb[138].mxu0  ;;  %v4345_v37 = vadd.f32 %v8509_v8, %v4344_v11 }
 0x6dd   : > { %v4356_v57 = vadd.f32 %v5664_v14, %v8509_v8  ;;  %4451 = vrot.lane.b32.xlu0 %v4353_v62, %s6431_s18  ;;  %v4347_v39 = vpop.f32.mrb[139].mxu0 }
 0x6de   : > { %v4348_v18 = vadd.f32 %v8509_v8, %v4347_v39 }
 0x6df   : > { %4453 = vrot.lane.b32.xlu1 %v4356_v57, %s6431_s18 }
 0x6e1   : > { %4447 = vrot.lane.b32.xlu0 %v4345_v37, %s6431_s18 }
 0x6e3   : > { %4449 = vrot.lane.b32.xlu1 %v4348_v18, %s6431_s18 }
 0x6eb   : > { %v5667_v33 = vpop.f32.mrb[140].mxu0 }
 0x6ec   : > { %v4369_v9 = vadd.f32 %v5667_v33, %v8509_v8  ;;  %v4360_v40 = vpop.f32.mrb[141].mxu0  ;;  %v4321_v33 = vadd.f32 %v8481_v16, %v8509_v8  ;;  %v4313_v16 = vadd.f32 %v8509_v8, %v8483_v38 }
 0x6ed   : > { %v5668_v58 = vpop.f32.mrb[142].mxu0  ;;  %v4361_v63 = vadd.f32 %v8509_v8, %v4360_v40  ;;  %v4324_v40 = vadd.f32 %v8486_v12, %v8509_v8 }
 0x6ee   : > { %v4372_v54 = vadd.f32 %v5668_v58, %v8509_v8  ;;  %4459 = vrot.lane.b32.xlu0 %v4369_v9, %s6431_s18  ;;  %v4363_v48 = vpop.f32.mrb[143].mxu0 }
 0x6ef   : > { %v4364_v19 = vadd.f32 %v8509_v8, %v4363_v48 }
 0x6f0   : > { %4461 = vrot.lane.b32.xlu1 %v4372_v54, %s6431_s18 }
 0x6f2   : > { %4455 = vrot.lane.b32.xlu0 %v4361_v63, %s6431_s18 }
 0x6f4   : > { %4457 = vrot.lane.b32.xlu1 %v4364_v19, %s6431_s18 }
 0x73d   : > { %v5671_v22 = vpop.f32.mrb[144].mxu0 }
 0x73e   : > { %v4385_v53 = vadd.f32 %v5671_v22, %v8509_v8  ;;  %v4376_v21 = vpop.f32.mrb[145].mxu0 }
 0x73f   : > { %v5672_v1 = vpop.f32.mrb[146].mxu0  ;;  %v4377_v51 = vadd.f32 %v8509_v8, %v4376_v21 }
 0x740   : > { %v4388_v49 = vadd.f32 %v5672_v1, %v8509_v8  ;;  %4483 = vrot.lane.b32.xlu0 %v4385_v53, %s6432_s19  ;;  %v4379_v47 = vpop.f32.mrb[147].mxu0  ;;  %v4316_v53 = vadd.f32 %v8509_v8, %v8489_v7 }
 0x741   : > { %v4380_v17 = vadd.f32 %v8509_v8, %v4379_v47 }
 0x742   : > { %4485 = vrot.lane.b32.xlu1 %v4388_v49, %s6432_s19 }
 0x744   : > { %4479 = vrot.lane.b32.xlu0 %v4377_v51, %s6432_s19 }
 0x746   : > { %4481 = vrot.lane.b32.xlu1 %v4380_v17, %s6432_s19 }
 0x74e   : > { %v5675_v45 = vpop.f32.mrb[148].mxu0 }
 0x74f   : > { %v4401_v60 = vadd.f32 %v5675_v45, %v8509_v8  ;;  %v4392_v24 = vpop.f32.mrb[149].mxu0  ;;  %v4452_v23 = vpop.permute.xlu0 %4451 }
 0x750   : > { %v5676_v30 = vpop.f32.mrb[150].mxu0  ;;  %v4393_v15 = vadd.f32 %v8509_v8, %v4392_v24  ;;  %v4538_v58 = vsel %vm4535_vm0, %v4321_v33, %v4452_v23  ;;  %v4332_v24 = vadd.f32 %v8509_v8, %v8499_v61  ;;  %v4340_v61 = vadd.f32 %v8497_v42, %v8509_v8 }
 0x751   : > { %v4404_v56 = vadd.f32 %v5676_v30, %v8509_v8  ;;  %4491 = vrot.lane.b32.xlu0 %v4401_v60, %s6432_s19  ;;  %v4395_v31 = vpop.f32.mrb[151].mxu0  ;;  %v4454_v35 = vpop.permute.xlu1 %4453  ;;  %v4329_v60 = vadd.f32 %v8509_v8, %v8495_v50 }
 0x752   : > { %v4396_v59 = vadd.f32 %v8509_v8, %v4395_v31  ;;  %v4539_v48 = vsel %vm4535_vm0, %v4324_v40, %v4454_v35  ;;  %v4337_v31 = vadd.f32 %v8493_v0, %v8509_v8 }
 0x753   : > { %4493 = vrot.lane.b32.xlu1 %v4404_v56, %s6432_s19  ;;  %v4448_v44 = vpop.permute.xlu0 %4447 }
 0x754   : > { %v4536_v21 = vsel %vm4535_vm0, %v4313_v16, %v4448_v44 }
 0x755   : > { %4487 = vrot.lane.b32.xlu0 %v4393_v15, %s6432_s19  ;;  %v4450_v34 = vpop.permute.xlu1 %4449 }
 0x756   : > { %v4537_v49 = vsel %vm4535_vm0, %v4316_v53, %v4450_v34 }
 0x757   : > { %4489 = vrot.lane.b32.xlu1 %v4396_v59, %s6432_s19 }
 0x760   : > { %v4460_v36 = vpop.permute.xlu0 %4459 }
 0x762   : > { %v4462_v13 = vpop.permute.xlu1 %4461 }
 0x764   : > { %v4456_v41 = vpop.permute.xlu0 %4455 }
 0x765   : > { %v4540_v30 = vsel %vm4535_vm0, %v4329_v60, %v4456_v41 }
 0x766   : > { %v4458_v27 = vpop.permute.xlu1 %4457 }
 0x767   : > { %v4541_v59 = vsel %vm4535_vm0, %v4332_v24, %v4458_v27 }
 0x78e   : > { %v5679_v26 = vpop.f32.mrb[152].mxu0 }
 0x78f   : > { %v4417_v52 = vadd.f32 %v5679_v26, %v8509_v8  ;;  %v4408_v25 = vpop.f32.mrb[153].mxu0 }
 0x790   : > { %v5680_v20 = vpop.f32.mrb[154].mxu0  ;;  %v4409_v32 = vadd.f32 %v8509_v8, %v4408_v25  ;;  %v4542_v25 = vsel %vm4535_vm0, %v4337_v31, %v4460_v36 }
 0x791   : > { %v4420_v43 = vadd.f32 %v5680_v20, %v8509_v8  ;;  %4515 = vrot.lane.b32.xlu0 %v4417_v52, %s6433_s20  ;;  %v4411_v28 = vpop.f32.mrb[155].mxu0 }
 0x792   : > { %v4412_v3 = vadd.f32 %v8509_v8, %v4411_v28  ;;  %v4543_v28 = vsel %vm4535_vm0, %v4340_v61, %v4462_v13 }
 0x793   : > { %4517 = vrot.lane.b32.xlu1 %v4420_v43, %s6433_s20 }
 0x795   : > { %4511 = vrot.lane.b32.xlu0 %v4409_v32, %s6433_s20 }
 0x797   : > { %4513 = vrot.lane.b32.xlu1 %v4412_v3, %s6433_s20 }
 0x79f   : > { %v5683_v4 = vpop.f32.mrb[156].mxu0 }
 0x7a0   : > { %v4424_v55 = vpop.f32.mrb[157].mxu0  ;;  %v4433_v6 = vadd.f32 %v5683_v4, %v8509_v8 }
 0x7a1   : > { %v4425_v10 = vadd.f32 %v8509_v8, %v4424_v55  ;;  %v5684_v46 = vpop.f32.mrb[158].mxu0 }
 0x7a2   : > { %v4427_v2 = vpop.f32.mrb[159].mxu0  ;;  %v4436_v29 = vadd.f32 %v5684_v46, %v8509_v8 }
 0x7a3   : > { %v4428_v5 = vadd.f32 %v8509_v8, %v4427_v2  ;;  %4519 = vrot.lane.b32.xlu0 %v4425_v10, %s6433_s20 }
 0x7a5   : > { %4521 = vrot.lane.b32.xlu1 %v4428_v5, %s6433_s20 }
 0x7a7   : > { %4523 = vrot.lane.b32.xlu0 %v4433_v6, %s6433_s20 }
 0x7a9   : > { %4525 = vrot.lane.b32.xlu1 %v4436_v29, %s6433_s20 }
 0x7b2   : > { %v4484_v62 = vpop.permute.xlu0 %4483 }
 0x7b3   : > { %v4547_v63 = vsel %vm4544_vm1, %v4538_v58, %v4484_v62 }
 0x7b4   : > { %v4486_v11 = vpop.permute.xlu1 %4485 }
 0x7b5   : > { %v4548_v19 = vsel %vm4544_vm1, %v4539_v48, %v4486_v11 }
 0x7b6   : > { %v4480_v14 = vpop.permute.xlu0 %4479 }
 0x7b7   : > { %v4545_v51 = vsel %vm4544_vm1, %v4536_v21, %v4480_v14 }
 0x7b8   : > { %v4482_v37 = vpop.permute.xlu1 %4481 }
 0x7b9   : > { %v4546_v17 = vsel %vm4544_vm1, %v4537_v49, %v4482_v37 }
 0x7c3   : > { %v4492_v57 = vpop.permute.xlu0 %4491 }
 0x7c4   : > { %v4551_v43 = vsel %vm4544_vm1, %v4542_v25, %v4492_v57 }
 0x7c5   : > { %v4494_v39 = vpop.permute.xlu1 %4493 }
 0x7c6   : > { %v4552_v3 = vsel %vm4544_vm1, %v4543_v28, %v4494_v39 }
 0x7c7   : > { %v4488_v18 = vpop.permute.xlu0 %4487 }
 0x7c8   : > { %v4549_v15 = vsel %vm4544_vm1, %v4540_v30, %v4488_v18 }
 0x7c9   : > { %v4490_v9 = vpop.permute.xlu1 %4489 }
 0x7ca   : > { %v4550_v52 = vsel %vm4544_vm1, %v4541_v59, %v4490_v9 }
 0x803   : > { %v4516_v54 = vpop.permute.xlu0 %4515 }
 0x804   : > { %v4556_v12 = vsel %vm4553_vm2, %v4547_v63, %v4516_v54 }
 0x805   : > { %4565 = vst.msk [vmem:[%s8545_s24 + $0x10] sm:$0xff] %vm4562_vm3, %v4556_v12  ;;  %v4518_v22 = vpop.permute.xlu1 %4517 }
 0x806   : > { %v4557_v1 = vsel %vm4553_vm2, %v4548_v19, %v4518_v22 }
 0x807   : > { %4566 = vst.msk [vmem:[%s8545_s24 + $0x18] sm:$0xff] %vm4562_vm3, %v4557_v1  ;;  %v4512_v38 = vpop.permute.xlu0 %4511 }
 0x808   : > { %v4554_v47 = vsel %vm4553_vm2, %v4545_v51, %v4512_v38 }
 0x809   : > { %4563 = vst.msk [vmem:[%s8545_s24] sm:$0xff] %vm4562_vm3, %v4554_v47  ;;  %v4514_v45 = vpop.permute.xlu1 %4513 }
 0x80a   : > { %v4555_v7 = vsel %vm4553_vm2, %v4546_v17, %v4514_v45 }
 0x80b   : > { %4564 = vst.msk [vmem:[%s8545_s24 + $0x8] sm:$0xff] %vm4562_vm3, %v4555_v7 }
 0x815   : > { %v4520_v56 = vpop.permute.xlu0 %4519 }
 0x816   : > { %v4558_v26 = vsel %vm4553_vm2, %v4549_v15, %v4520_v56 }
 0x817   : > { %4567 = vst.msk [vmem:[%s8545_s24 + $0x20] sm:$0xff] %vm4562_vm3, %v4558_v26  ;;  %v4522_v50 = vpop.permute.xlu1 %4521 }
 0x818   : > { %v4559_v20 = vsel %vm4553_vm2, %v4550_v52, %v4522_v50 }
 0x819   : > { %4568 = vst.msk [vmem:[%s8545_s24 + $0x28] sm:$0xff] %vm4562_vm3, %v4559_v20  ;;  %v4524_v0 = vpop.permute.xlu0 %4523 }
 0x81a   : > { %v4560_v32 = vsel %vm4553_vm2, %v4551_v43, %v4524_v0 }
 0x81b   : > { %4569 = vst.msk [vmem:[%s8545_s24 + $0x30] sm:$0xff] %vm4562_vm3, %v4560_v32  ;;  %v4526_v4 = vpop.permute.xlu1 %4525 }
 0x81c   : > { %v4561_v42 = vsel %vm4553_vm2, %v4552_v3, %v4526_v4 }
 0x81d   : > { %4570 = vst.msk [vmem:[%s8545_s24 + $0x38] sm:$0xff] %vm4562_vm3, %v4561_v42 }
 0x81e PF: > { %s14_s15 = sadd.s32 1, %s6425_s15  }
 0x81f   : > { %p11_p5 = scmp.ge.s32.totalorder %s14_s15, 6  }
 0x821   :  { %13 = sbr.rel (!%p11_p5) target bundleno = 1 (0x1), region = 75 }

</bundles_post_ra>
